<compile_context>
chip_gen: v7x
topology: tpu7x:2x2x1
jax: 0.10.0
libtpu: 0.0.40
codegen_flags: <defaults>
</compile_context>

<pallas_src>
import math

import jax
import jax.numpy as jnp
from jax.experimental import pallas as pl
from jax.experimental.pallas import tpu as pltpu


# ----------------------------------------------------------------------------
# Config (small synthetic Qwen3-like backbone)
# ----------------------------------------------------------------------------
VOCAB = 256          # synthetic vocab (stands in for Qwen vocab + motion tokens)
D_MODEL = 128        # hidden size
N_LAYERS = 2
N_HEADS = 4
N_KV_HEADS = 2
HEAD_DIM = 32
FFN_DIM = 256
MAX_LEN = 32         # stands in for max_length=256 in the module
RMS_EPS = 1e-6
ROPE_THETA = 1e6
ACT_DTYPE = jnp.bfloat16   # module loads the backbone in bfloat16

Q_DIM = N_HEADS * HEAD_DIM           # 128
KV_DIM = N_KV_HEADS * HEAD_DIM       # 64
QK_DIM = Q_DIM + KV_DIM              # 192
QKV_DIM = Q_DIM + 2 * KV_DIM         # 256  (q | k | v packed along lanes)
GQA_REP = N_HEADS // N_KV_HEADS      # q heads per kv head
_NEG_INF = float(jnp.finfo(jnp.float32).min) / 2.0


# ----------------------------------------------------------------------------
# Fused decoder-layer kernel (one grid step per batch element)
# ----------------------------------------------------------------------------
def _decoder_layer_kernel(x_ref, mask_ref, ln1_ref, wqkv_ref, qkg_ref, avg_ref,
                          rot_ref, cos_ref, sin_ref, wo_ref, ln2_ref, wg_ref,
                          wu_ref, wd_ref, o_ref):
    S = x_ref.shape[1]
    x = x_ref[0].astype(jnp.float32)                         # (S, D)

    # ---- RMSNorm(ln1) fused into the (wq|wk|wv) projection ----
    var = jnp.mean(x * x, axis=-1, keepdims=True)
    xn = ((x * jax.lax.rsqrt(var + RMS_EPS)) *
          ln1_ref[...].astype(jnp.float32)).astype(wqkv_ref.dtype)
    qkv = jnp.dot(xn, wqkv_ref[...],
                  preferred_element_type=jnp.float32)        # (S, QKV_DIM) fp32

    # ---- per-head q/k RMSNorm + RoPE on the packed 256-lane layout ----
    # per-head mean(x^2), broadcast within each 32-lane head, via block-diag MXU matmul
    var_h = jnp.dot(qkv * qkv, avg_ref[...],
                    preferred_element_type=jnp.float32)      # (S, QKV_DIM)
    # packed gamma: q lanes carry q_norm * 1/sqrt(Dh) (scale pre-folded, RoPE is
    # linear), k lanes carry k_norm, v lanes are zero (v taken from raw qkv).
    qkn = qkv * jax.lax.rsqrt(var_h + RMS_EPS) * qkg_ref[...]
    # signed rotate-half per head as one block-diagonal MXU matmul
    rot = jnp.dot(qkn, rot_ref[...], preferred_element_type=jnp.float32)
    qk = qkn * cos_ref[...] + rot * sin_ref[...]             # (S, QKV_DIM); v lanes = 0

    q = qk[:, :Q_DIM]                                        # (S, 128)  scale pre-folded
    k = qk[:, Q_DIM:QK_DIM]                                  # (S, 64)
    v = qkv[:, QK_DIM:]                                      # (S, 64)   pass-through

    # ---- attention: all heads of this batch element, GQA groups stacked on rows ----
    row = jax.lax.broadcasted_iota(jnp.int32, (GQA_REP * S, S), 0)
    col = jax.lax.broadcasted_iota(jnp.int32, (GQA_REP * S, S), 1)
    qpos = row
    for _ in range(GQA_REP - 1):                             # row mod S without rem op
        qpos = jnp.where(qpos >= S, qpos - S, qpos)
    key_ok = mask_ref[0] > 0                                 # (1, S) valid (non-pad) keys
    allowed = jnp.logical_and(col <= qpos, key_ok)           # (rep*S, S) causal & key-valid

    pieces = []
    for g in range(N_KV_HEADS):
        qg = jnp.concatenate(
            [q[:, (g * GQA_REP + r) * HEAD_DIM:(g * GQA_REP + r + 1) * HEAD_DIM]
             for r in range(GQA_REP)], axis=0).astype(jnp.bfloat16)     # (rep*S, Dh)
        kg = k[:, g * HEAD_DIM:(g + 1) * HEAD_DIM].astype(jnp.bfloat16)  # (S, Dh)
        vg = v[:, g * HEAD_DIM:(g + 1) * HEAD_DIM].astype(jnp.bfloat16)
        s = jax.lax.dot_general(qg, kg, (((1,), (1,)), ((), ())),
                                preferred_element_type=jnp.float32)      # (rep*S, S)
        s = jnp.where(allowed, s, _NEG_INF)
        s = s - jnp.max(s, axis=-1, keepdims=True)
        p = jnp.exp(s)
        p = p * pl.reciprocal(jnp.sum(p, axis=-1, keepdims=True), approx=True)
        og = jnp.dot(p.astype(jnp.bfloat16), vg,
                     preferred_element_type=jnp.float32)                 # (rep*S, Dh)
        for r in range(GQA_REP):
            pieces.append(og[r * S:(r + 1) * S, :])
    attn = jnp.concatenate(pieces, axis=-1).astype(jnp.bfloat16)         # (S, 128)

    # ---- output projection + residual ----
    h = jnp.dot(attn, wo_ref[...], preferred_element_type=jnp.float32) + x

    # ---- MLP: RMSNorm(ln2) + gate/up + SwiGLU + down proj + residual ----
    var2 = jnp.mean(h * h, axis=-1, keepdims=True)
    hn = ((h * jax.lax.rsqrt(var2 + RMS_EPS)) *
          ln2_ref[...].astype(jnp.float32)).astype(jnp.bfloat16)
    gate = jnp.dot(hn, wg_ref[...], preferred_element_type=jnp.float32)
    up = jnp.dot(hn, wu_ref[...], preferred_element_type=jnp.float32)
    act = (gate * jax.nn.sigmoid(gate) * up).astype(jnp.bfloat16)
    out = jnp.dot(act, wd_ref[...], preferred_element_type=jnp.float32) + h
    o_ref[0] = out.astype(o_ref.dtype)


def pallas_decoder_layer(x, mask_b1s, layer, cos, sin, avg_m, rot_m):
    """x: [B, S, D] bf16 -> [B, S, D] bf16, one fused kernel, grid=(B,)."""
    # TODO(synk): for real Qwen3-0.6B shapes (D=1024, FFN=3072, S=256, long K/N)
    # this fused layer would need K/N tiling (inner emit_pipeline) to respect
    # v7x's 64 MiB VMEM; at the toy shapes everything fits trivially.
    B, S, D = x.shape

    def bcast(*shape):
        return pl.BlockSpec(shape, lambda b, _n=len(shape): (0,) * _n)

    return pl.pallas_call(
        _decoder_layer_kernel,
        out_shape=jax.ShapeDtypeStruct((B, S, D), x.dtype),
        grid_spec=pltpu.PrefetchScalarGridSpec(
            num_scalar_prefetch=0,
            grid=(B,),
            in_specs=[
                pl.BlockSpec((1, S, D), lambda b: (b, 0, 0)),   # x
                pl.BlockSpec((1, 1, S), lambda b: (b, 0, 0)),   # attention mask
                bcast(1, D),                                    # ln1 gamma
                bcast(D, QKV_DIM),                              # fused wq|wk|wv
                bcast(1, QKV_DIM),                              # packed q/k gamma (+scale)
                bcast(QKV_DIM, QKV_DIM),                        # per-head mean matrix
                bcast(QKV_DIM, QKV_DIM),                        # signed rotate-half matrix
                bcast(S, QKV_DIM),                              # cos (packed per head)
                bcast(S, QKV_DIM),                              # sin (packed per head)
                bcast(Q_DIM, D),                                # wo
                bcast(1, D),                                    # ln2 gamma
                bcast(D, FFN_DIM),                              # wg
                bcast(D, FFN_DIM),                              # wu
                bcast(FFN_DIM, D),                              # wd
            ],
            out_specs=pl.BlockSpec((1, S, D), lambda b: (b, 0, 0)),
        ),
        compiler_params=pltpu.CompilerParams(
            dimension_semantics=("parallel",)),
    )(x, mask_b1s, layer["ln1"], layer["w_qkv"], layer["qk_gamma"], avg_m,
      rot_m, cos, sin, layer["wo"], layer["ln2"], layer["wg"], layer["wu"],
      layer["wd"])


# ----------------------------------------------------------------------------
# Fused final-norm + tied lm_head + causal-LM cross-entropy kernel
# ----------------------------------------------------------------------------
def _head_ce_kernel(x_ref, g_ref, w_ref, lab_ref, val_ref, logits_ref, loss_ref):
    @pl.when(pl.program_id(0) == 0)
    def _():
        loss_ref[...] = jnp.zeros_like(loss_ref)

    x = x_ref[...].astype(jnp.float32)
    var = jnp.mean(x * x, axis=-1, keepdims=True)
    xn = ((x * jax.lax.rsqrt(var + RMS_EPS)) *
          g_ref[...].astype(jnp.float32)).astype(w_ref.dtype)
    logits = jnp.dot(xn, w_ref[...], preferred_element_type=jnp.float32)   # (tm, V)
    logits_ref[...] = logits.astype(logits_ref.dtype)      # bf16 writeback (HF-style)

    # per-token NLL on the fp32 logits kept in VMEM (no HBM round-trip)
    m = jnp.max(logits, axis=-1, keepdims=True)
    lse = jnp.log(jnp.sum(jnp.exp(logits - m), axis=-1, keepdims=True)) + m
    ids = jax.lax.broadcasted_iota(jnp.int32, logits.shape, 1)
    onehot = (ids == lab_ref[...]).astype(jnp.float32)
    label_logit = jnp.sum(logits * onehot, axis=-1, keepdims=True)
    nll = (lse - label_logit) * val_ref[...]                # zero at last pos per seq
    loss_ref[...] += jnp.sum(nll, axis=0, keepdims=True)


def pallas_head_ce(x2d, gamma, lm_head, labels, valid):
    """x2d: [M, D], gamma: [1, D], lm_head: [D, V], labels/valid: [M, 1].

    Returns (bf16 logits [M, V], fp32 loss sum [1, 1])."""
    # TODO(synk): at real Qwen vocab (~152k) also tile the vocab axis with an
    # online max/log-sum-exp accumulator so a (tm, V) fp32 block fits VMEM.
    M, D = x2d.shape
    _, V = lm_head.shape
    tm = M if M <= 256 else 256
    assert M % tm == 0
    return pl.pallas_call(
        _head_ce_kernel,
        out_shape=(jax.ShapeDtypeStruct((M, V), jnp.bfloat16),
                   jax.ShapeDtypeStruct((1, 1), jnp.float32)),
        grid_spec=pltpu.PrefetchScalarGridSpec(
            num_scalar_prefetch=0,
            grid=(M // tm,),
            in_specs=[
                pl.BlockSpec((tm, D), lambda i: (i, 0)),
                pl.BlockSpec((1, D), lambda i: (0, 0)),
                pl.BlockSpec((D, V), lambda i: (0, 0)),
                pl.BlockSpec((tm, 1), lambda i: (i, 0)),
                pl.BlockSpec((tm, 1), lambda i: (i, 0)),
            ],
            out_specs=(pl.BlockSpec((tm, V), lambda i: (i, 0)),
                       pl.BlockSpec((1, 1), lambda i: (0, 0))),
        ),
        compiler_params=pltpu.CompilerParams(
            dimension_semantics=("arbitrary",)),
    )(x2d, gamma, lm_head, labels, valid)


# ----------------------------------------------------------------------------
# Plain-JAX glue: RoPE / head-mixing tables, embedding gather, params
# ----------------------------------------------------------------------------
def rope_tables_packed(seq_len):
    """cos/sin tiled to the packed [S, QKV_DIM] lane layout (one copy per head)."""
    inv_freq = 1.0 / (ROPE_THETA ** (jnp.arange(0, HEAD_DIM, 2, dtype=jnp.float32)
                                     / HEAD_DIM))
    pos = jnp.arange(seq_len, dtype=jnp.float32)
    freqs = pos[:, None] * inv_freq[None, :]                              # (S, Dh/2)
    cos_h = jnp.concatenate([jnp.cos(freqs), jnp.cos(freqs)], axis=-1)    # (S, Dh)
    sin_h = jnp.concatenate([jnp.sin(freqs), jnp.sin(freqs)], axis=-1)
    reps = QKV_DIM // HEAD_DIM
    return jnp.tile(cos_h, (1, reps)), jnp.tile(sin_h, (1, reps))         # (S, QKV_DIM)


def head_mixing_matrices():
    """Block-diagonal constants so per-head RMSNorm & rotate-half run on the MXU."""
    n_qk_heads = N_HEADS + N_KV_HEADS
    half = HEAD_DIM // 2
    eye = jnp.eye(half, dtype=jnp.float32)
    zeros = jnp.zeros((half, half), jnp.float32)
    blk_avg = jnp.full((HEAD_DIM, HEAD_DIM), 1.0 / HEAD_DIM, dtype=jnp.float32)
    # x @ blk_rot == concat([-x2, x1]) within each head (signed rotate-half)
    blk_rot = jnp.block([[zeros, eye], [-eye, zeros]])
    avg = jnp.zeros((QKV_DIM, QKV_DIM), jnp.float32)
    rot = jnp.zeros((QKV_DIM, QKV_DIM), jnp.float32)
    for h in range(n_qk_heads):                      # v block stays zero
        sl = slice(h * HEAD_DIM, (h + 1) * HEAD_DIM)
        avg = avg.at[sl, sl].set(blk_avg)
        rot = rot.at[sl, sl].set(blk_rot)
    return avg, rot


def init_params(key):
    def nrm(k, shape):
        return (0.02 * jax.random.normal(k, shape, dtype=jnp.float32)).astype(ACT_DTYPE)

    keys = jax.random.split(key, 1 + 5 * N_LAYERS)
    embed = nrm(keys[0], (VOCAB, D_MODEL))
    scale = 1.0 / math.sqrt(HEAD_DIM)
    params = {
        "embed": embed,                               # gather table
        "lm_head": jnp.asarray(embed.T),              # tied head, pre-transposed once
        "final_norm": jnp.ones((1, D_MODEL), ACT_DTYPE),
        "layers": [],
    }
    ki = 1
    for _ in range(N_LAYERS):
        q_gamma = jnp.ones((HEAD_DIM,), jnp.float32)   # Qwen3 q_norm / k_norm weights
        k_gamma = jnp.ones((HEAD_DIM,), jnp.float32)
        # packed q|k|v lane gamma: attention scale folded into the q lanes,
        # zeros on the v lanes (v bypasses the norm/RoPE path in the kernel)
        qk_gamma = jnp.concatenate([
            jnp.tile(q_gamma * scale, N_HEADS),
            jnp.tile(k_gamma, N_KV_HEADS),
            jnp.zeros((KV_DIM,), jnp.float32)]).reshape(1, QKV_DIM)
        layer = {
            "ln1": jnp.ones((1, D_MODEL), ACT_DTYPE),
            "ln2": jnp.ones((1, D_MODEL), ACT_DTYPE),
            "qk_gamma": qk_gamma,
            "w_qkv": nrm(keys[ki + 0], (D_MODEL, QKV_DIM)),   # wq|wk|wv fused
            "wo": nrm(keys[ki + 1], (Q_DIM, D_MODEL)),
            "wg": nrm(keys[ki + 2], (D_MODEL, FFN_DIM)),
            "wu": nrm(keys[ki + 3], (D_MODEL, FFN_DIM)),
            "wd": nrm(keys[ki + 4], (FFN_DIM, D_MODEL)),
        }
        params["layers"].append(layer)
        ki += 5
    return params


def qwen_mlm_forward(params, input_ids, attention_mask):
    """Mirrors `language_model(input_ids, attention_mask, labels=input_ids)`.

    Returns (loss, logits); backbone layers, final norm + lm_head and the
    cross-entropy all run inside Pallas kernels (3 launches total)."""
    B, S = input_ids.shape
    x = jnp.take(params["embed"], input_ids, axis=0)          # (B, S, D) gather (glue)
    mask_b1s = attention_mask.astype(jnp.int32).reshape(B, 1, S)
    cos, sin = rope_tables_packed(S)
    avg_m, rot_m = head_mixing_matrices()

    for layer in params["layers"]:
        x = pallas_decoder_layer(x, mask_b1s, layer, cos, sin, avg_m, rot_m)

    # HF causal-LM loss with labels=input_ids: predict token t+1 at position t,
    # averaged over all B*(S-1) shifted positions (labels are raw ids, not -100,
    # so padded targets are included — matches `labels=input_ids` in the module).
    shifted_labels = jnp.roll(input_ids, shift=-1, axis=1).reshape(-1, 1).astype(jnp.int32)
    valid = jnp.tile((jnp.arange(S) < S - 1).astype(jnp.float32)[None, :],
                     (B, 1)).reshape(-1, 1)
    logits2d, loss_sum = pallas_head_ce(x.reshape(B * S, D_MODEL),
                                        params["final_norm"], params["lm_head"],
                                        shifted_labels, valid)
    loss = loss_sum[0, 0] / (B * (S - 1))
    return loss, logits2d.reshape(B, S, VOCAB)


# ----------------------------------------------------------------------------
# Main
# ----------------------------------------------------------------------------
if __name__ == "__main__":
    # TODO(synk): tokenizer / chat-template / motion-token string processing has
    # no Pallas equivalent; deterministic synthetic token ids stand in for it.
    key = jax.random.PRNGKey(0)
    k_param, k_ids = jax.random.split(key)

    params = init_params(k_param)

    B = 2
    lengths = [MAX_LEN, MAX_LEN - 8]                          # right-padded batch
    input_ids = jax.random.randint(k_ids, (B, MAX_LEN), 0, VOCAB, dtype=jnp.int32)
    pos = jnp.arange(MAX_LEN)[None, :]
    attention_mask = (pos < jnp.array(lengths)[:, None]).astype(jnp.int32)
    pad_id = VOCAB - 1
    input_ids = jnp.where(attention_mask == 1, input_ids, pad_id)

    forward = jax.jit(qwen_mlm_forward)
    loss, logits = forward(params, input_ids, attention_mask)
    jax.block_until_ready((loss, logits))

    assert logits.shape == (B, MAX_LEN, VOCAB)
    assert jnp.isfinite(loss)
    print("KERNEL_OK")
</pallas_src>

<mosaic_0001>
module attributes {stable_mosaic.version = 11 : i64} {
  func.func @_decoder_layer_kernel(%arg0: i32, %arg1: memref<1x32x128xbf16, #tpu.memory_space<vmem>>, %arg2: memref<1x1x32xi32, #tpu.memory_space<vmem>>, %arg3: memref<1x128xbf16, #tpu.memory_space<vmem>>, %arg4: memref<128x256xbf16, #tpu.memory_space<vmem>>, %arg5: memref<1x256xf32, #tpu.memory_space<vmem>>, %arg6: memref<256x256xf32, #tpu.memory_space<vmem>>, %arg7: memref<256x256xf32, #tpu.memory_space<vmem>>, %arg8: memref<32x256xf32, #tpu.memory_space<vmem>>, %arg9: memref<32x256xf32, #tpu.memory_space<vmem>>, %arg10: memref<128x128xbf16, #tpu.memory_space<vmem>>, %arg11: memref<1x128xbf16, #tpu.memory_space<vmem>>, %arg12: memref<128x256xbf16, #tpu.memory_space<vmem>>, %arg13: memref<128x256xbf16, #tpu.memory_space<vmem>>, %arg14: memref<256x128xbf16, #tpu.memory_space<vmem>>, %arg15: memref<1x32x128xbf16, #tpu.memory_space<vmem>>) attributes {dimension_semantics = [#tpu.dimension_semantics<parallel>], iteration_bounds = array<i64: 2>, scalar_prefetch = 0 : i64, scratch_operands = 0 : i64, tpu.core_type = #tpu.core_type<tc>, window_params = [{transform_indices = @transform_0, window_bounds = array<i64: 1, 32, 128>}, {transform_indices = @transform_1, window_bounds = array<i64: 1, 1, 32>}, {pipeline_mode = #tpu.pipeline_mode<synchronous>, transform_indices = @transform_2, window_bounds = array<i64: 1, 128>}, {pipeline_mode = #tpu.pipeline_mode<synchronous>, transform_indices = @transform_3, window_bounds = array<i64: 128, 256>}, {pipeline_mode = #tpu.pipeline_mode<synchronous>, transform_indices = @transform_4, window_bounds = array<i64: 1, 256>}, {pipeline_mode = #tpu.pipeline_mode<synchronous>, transform_indices = @transform_5, window_bounds = array<i64: 256, 256>}, {pipeline_mode = #tpu.pipeline_mode<synchronous>, transform_indices = @transform_6, window_bounds = array<i64: 256, 256>}, {pipeline_mode = #tpu.pipeline_mode<synchronous>, transform_indices = @transform_7, window_bounds = array<i64: 32, 256>}, {pipeline_mode = #tpu.pipeline_mode<synchronous>, transform_indices = @transform_8, window_bounds = array<i64: 32, 256>}, {pipeline_mode = #tpu.pipeline_mode<synchronous>, transform_indices = @transform_9, window_bounds = array<i64: 128, 128>}, {pipeline_mode = #tpu.pipeline_mode<synchronous>, transform_indices = @transform_10, window_bounds = array<i64: 1, 128>}, {pipeline_mode = #tpu.pipeline_mode<synchronous>, transform_indices = @transform_11, window_bounds = array<i64: 128, 256>}, {pipeline_mode = #tpu.pipeline_mode<synchronous>, transform_indices = @transform_12, window_bounds = array<i64: 128, 256>}, {pipeline_mode = #tpu.pipeline_mode<synchronous>, transform_indices = @transform_13, window_bounds = array<i64: 256, 128>}, {transform_indices = @transform_14, window_bounds = array<i64: 1, 32, 128>}]} {
    %c0 = arith.constant 0 : index
    %c0_0 = arith.constant 0 : index
    %c0_1 = arith.constant 0 : index
    %0 = vector.load %arg1[%c0, %c0_0, %c0_1] : memref<1x32x128xbf16, #tpu.memory_space<vmem>>, vector<1x32x128xbf16>
    %1 = vector.shape_cast %0 : vector<1x32x128xbf16> to vector<32x128xbf16>
    %2 = arith.extf %1 : vector<32x128xbf16> to vector<32x128xf32>
    %3 = arith.mulf %2, %2 : vector<32x128xf32>
    %cst = arith.constant dense<0.000000e+00> : vector<32xf32>
    %4 = vector.multi_reduction <add>, %3, %cst [1] : vector<32x128xf32> to vector<32xf32>
    %5 = vector.shape_cast %4 : vector<32xf32> to vector<32x1xf32>
    %cst_2 = arith.constant 1.280000e+02 : f32
    %6 = vector.broadcast %cst_2 : f32 to vector<32x1xf32>
    %7 = arith.divf %5, %6 : vector<32x1xf32>
    %cst_3 = arith.constant 9.99999997E-7 : f32
    %8 = vector.broadcast %cst_3 : f32 to vector<32x1xf32>
    %9 = arith.addf %7, %8 : vector<32x1xf32>
    %10 = math.rsqrt %9 : vector<32x1xf32>
    %11 = vector.broadcast %10 : vector<32x1xf32> to vector<32x128xf32>
    %12 = arith.mulf %2, %11 : vector<32x128xf32>
    %c0_4 = arith.constant 0 : index
    %c0_5 = arith.constant 0 : index
    %13 = vector.load %arg3[%c0_4, %c0_5] : memref<1x128xbf16, #tpu.memory_space<vmem>>, vector<1x128xbf16>
    %14 = arith.extf %13 : vector<1x128xbf16> to vector<1x128xf32>
    %15 = vector.broadcast %14 : vector<1x128xf32> to vector<32x128xf32>
    %16 = arith.mulf %12, %15 : vector<32x128xf32>
    %17 = arith.truncf %16 : vector<32x128xf32> to vector<32x128xbf16>
    %c0_6 = arith.constant 0 : index
    %c0_7 = arith.constant 0 : index
    %18 = vector.load %arg4[%c0_6, %c0_7] : memref<128x256xbf16, #tpu.memory_space<vmem>>, vector<128x256xbf16>
    %cst_8 = arith.constant dense<0.000000e+00> : vector<32x256xf32>
    %19 = tpu.matmul %17, %18, %cst_8 {dimension_numbers = #tpu.dot_dimension_numbers<[1], [0], [0], [1], [0, 0, 1, 1], [], []>} : vector<32x128xbf16>, vector<128x256xbf16>, vector<32x256xf32> -> vector<32x256xf32>
    %20 = arith.mulf %19, %19 : vector<32x256xf32>
    %c0_9 = arith.constant 0 : index
    %c0_10 = arith.constant 0 : index
    %21 = vector.load %arg6[%c0_9, %c0_10] : memref<256x256xf32, #tpu.memory_space<vmem>>, vector<256x256xf32>
    %cst_11 = arith.constant dense<0.000000e+00> : vector<32x256xf32>
    %22 = tpu.matmul %20, %21, %cst_11 {dimension_numbers = #tpu.dot_dimension_numbers<[1], [0], [0], [1], [0, 0, 1, 1], [], []>} : vector<32x256xf32>, vector<256x256xf32>, vector<32x256xf32> -> vector<32x256xf32>
    %cst_12 = arith.constant 9.99999997E-7 : f32
    %23 = vector.broadcast %cst_12 : f32 to vector<32x256xf32>
    %24 = arith.addf %22, %23 : vector<32x256xf32>
    %25 = math.rsqrt %24 : vector<32x256xf32>
    %26 = arith.mulf %19, %25 : vector<32x256xf32>
    %c0_13 = arith.constant 0 : index
    %c0_14 = arith.constant 0 : index
    %27 = vector.load %arg5[%c0_13, %c0_14] : memref<1x256xf32, #tpu.memory_space<vmem>>, vector<1x256xf32>
    %28 = vector.broadcast %27 : vector<1x256xf32> to vector<32x256xf32>
    %29 = arith.mulf %26, %28 : vector<32x256xf32>
    %c0_15 = arith.constant 0 : index
    %c0_16 = arith.constant 0 : index
    %30 = vector.load %arg7[%c0_15, %c0_16] : memref<256x256xf32, #tpu.memory_space<vmem>>, vector<256x256xf32>
    %cst_17 = arith.constant dense<0.000000e+00> : vector<32x256xf32>
    %31 = tpu.matmul %29, %30, %cst_17 {dimension_numbers = #tpu.dot_dimension_numbers<[1], [0], [0], [1], [0, 0, 1, 1], [], []>} : vector<32x256xf32>, vector<256x256xf32>, vector<32x256xf32> -> vector<32x256xf32>
    %c0_18 = arith.constant 0 : index
    %c0_19 = arith.constant 0 : index
    %32 = vector.load %arg8[%c0_18, %c0_19] : memref<32x256xf32, #tpu.memory_space<vmem>>, vector<32x256xf32>
    %33 = arith.mulf %29, %32 : vector<32x256xf32>
    %c0_20 = arith.constant 0 : index
    %c0_21 = arith.constant 0 : index
    %34 = vector.load %arg9[%c0_20, %c0_21] : memref<32x256xf32, #tpu.memory_space<vmem>>, vector<32x256xf32>
    %35 = arith.mulf %31, %34 : vector<32x256xf32>
    %36 = arith.addf %33, %35 : vector<32x256xf32>
    %37 = vector.extract_strided_slice %36 {offsets = [0, 0], sizes = [32, 128], strides = [1, 1]} : vector<32x256xf32> to vector<32x128xf32>
    %38 = vector.extract_strided_slice %36 {offsets = [0, 128], sizes = [32, 64], strides = [1, 1]} : vector<32x256xf32> to vector<32x64xf32>
    %39 = vector.extract_strided_slice %19 {offsets = [0, 192], sizes = [32, 64], strides = [1, 1]} : vector<32x256xf32> to vector<32x64xf32>
    %40 = tpu.iota {dimensions = array<i32: 0>} : vector<64x32xi32>
    %41 = tpu.iota {dimensions = array<i32: 1>} : vector<64x32xi32>
    %c32_i32 = arith.constant 32 : i32
    %42 = vector.broadcast %c32_i32 : i32 to vector<64x32xi32>
    %43 = arith.cmpi sge, %40, %42 : vector<64x32xi32>
    %c32_i32_22 = arith.constant 32 : i32
    %44 = vector.broadcast %c32_i32_22 : i32 to vector<64x32xi32>
    %45 = arith.subi %40, %44 : vector<64x32xi32>
    %46 = arith.select %43, %45, %40 : vector<64x32xi1>, vector<64x32xi32>
    %c0_23 = arith.constant 0 : index
    %c0_24 = arith.constant 0 : index
    %c0_25 = arith.constant 0 : index
    %47 = vector.load %arg2[%c0_23, %c0_24, %c0_25] : memref<1x1x32xi32, #tpu.memory_space<vmem>>, vector<1x1x32xi32>
    %48 = vector.shape_cast %47 : vector<1x1x32xi32> to vector<1x32xi32>
    %c0_i32 = arith.constant 0 : i32
    %49 = vector.broadcast %c0_i32 : i32 to vector<1x32xi32>
    %50 = arith.cmpi sgt, %48, %49 : vector<1x32xi32>
    %51 = arith.cmpi sle, %41, %46 : vector<64x32xi32>
    %52 = vector.broadcast %50 : vector<1x32xi1> to vector<64x32xi1>
    %53 = arith.andi %51, %52 : vector<64x32xi1>
    %54 = vector.extract_strided_slice %37 {offsets = [0, 0], sizes = [32, 32], strides = [1, 1]} : vector<32x128xf32> to vector<32x32xf32>
    %55 = vector.extract_strided_slice %37 {offsets = [0, 32], sizes = [32, 32], strides = [1, 1]} : vector<32x128xf32> to vector<32x32xf32>
    %56 = tpu.concatenate %54, %55 in 0 : vector<32x32xf32>, vector<32x32xf32> -> vector<64x32xf32>
    %57 = arith.truncf %56 : vector<64x32xf32> to vector<64x32xbf16>
    %58 = vector.extract_strided_slice %38 {offsets = [0, 0], sizes = [32, 32], strides = [1, 1]} : vector<32x64xf32> to vector<32x32xf32>
    %59 = arith.truncf %58 : vector<32x32xf32> to vector<32x32xbf16>
    %60 = vector.extract_strided_slice %39 {offsets = [0, 0], sizes = [32, 32], strides = [1, 1]} : vector<32x64xf32> to vector<32x32xf32>
    %61 = arith.truncf %60 : vector<32x32xf32> to vector<32x32xbf16>
    %cst_26 = arith.constant dense<0.000000e+00> : vector<64x32xf32>
    %62 = tpu.matmul %57, %59, %cst_26 {dimension_numbers = #tpu.dot_dimension_numbers<[1], [1], [0], [0], [0, 0, 1, 0], [], []>} : vector<64x32xbf16>, vector<32x32xbf16>, vector<64x32xf32> -> vector<64x32xf32>
    %cst_27 = arith.constant -1.70141173E+38 : f32
    %63 = vector.broadcast %cst_27 : f32 to vector<64x32xf32>
    %64 = arith.select %53, %62, %63 : vector<64x32xi1>, vector<64x32xf32>
    %cst_28 = arith.constant dense<0xFF800000> : vector<64xf32>
    %65 = vector.multi_reduction <maximumf>, %64, %cst_28 [1] : vector<64x32xf32> to vector<64xf32>
    %66 = vector.shape_cast %65 : vector<64xf32> to vector<64x1xf32>
    %67 = vector.broadcast %66 : vector<64x1xf32> to vector<64x32xf32>
    %68 = arith.subf %64, %67 : vector<64x32xf32>
    %69 = math.exp %68 : vector<64x32xf32>
    %cst_29 = arith.constant dense<0.000000e+00> : vector<64xf32>
    %70 = vector.multi_reduction <add>, %69, %cst_29 [1] : vector<64x32xf32> to vector<64xf32>
    %71 = vector.shape_cast %70 : vector<64xf32> to vector<64x1xf32>
    %72 = tpu.reciprocal %71 {approx = true} : vector<64x1xf32> -> vector<64x1xf32>
    %73 = vector.broadcast %72 : vector<64x1xf32> to vector<64x32xf32>
    %74 = arith.mulf %69, %73 : vector<64x32xf32>
    %75 = arith.truncf %74 : vector<64x32xf32> to vector<64x32xbf16>
    %cst_30 = arith.constant dense<0.000000e+00> : vector<64x32xf32>
    %76 = tpu.matmul %75, %61, %cst_30 {dimension_numbers = #tpu.dot_dimension_numbers<[1], [0], [0], [1], [0, 0, 1, 1], [], []>} : vector<64x32xbf16>, vector<32x32xbf16>, vector<64x32xf32> -> vector<64x32xf32>
    %77 = vector.extract_strided_slice %76 {offsets = [0, 0], sizes = [32, 32], strides = [1, 1]} : vector<64x32xf32> to vector<32x32xf32>
    %78 = vector.extract_strided_slice %76 {offsets = [32, 0], sizes = [32, 32], strides = [1, 1]} : vector<64x32xf32> to vector<32x32xf32>
    %79 = vector.extract_strided_slice %37 {offsets = [0, 64], sizes = [32, 32], strides = [1, 1]} : vector<32x128xf32> to vector<32x32xf32>
    %80 = vector.extract_strided_slice %37 {offsets = [0, 96], sizes = [32, 32], strides = [1, 1]} : vector<32x128xf32> to vector<32x32xf32>
    %81 = tpu.concatenate %79, %80 in 0 : vector<32x32xf32>, vector<32x32xf32> -> vector<64x32xf32>
    %82 = arith.truncf %81 : vector<64x32xf32> to vector<64x32xbf16>
    %83 = vector.extract_strided_slice %38 {offsets = [0, 32], sizes = [32, 32], strides = [1, 1]} : vector<32x64xf32> to vector<32x32xf32>
    %84 = arith.truncf %83 : vector<32x32xf32> to vector<32x32xbf16>
    %85 = vector.extract_strided_slice %39 {offsets = [0, 32], sizes = [32, 32], strides = [1, 1]} : vector<32x64xf32> to vector<32x32xf32>
    %86 = arith.truncf %85 : vector<32x32xf32> to vector<32x32xbf16>
    %cst_31 = arith.constant dense<0.000000e+00> : vector<64x32xf32>
    %87 = tpu.matmul %82, %84, %cst_31 {dimension_numbers = #tpu.dot_dimension_numbers<[1], [1], [0], [0], [0, 0, 1, 0], [], []>} : vector<64x32xbf16>, vector<32x32xbf16>, vector<64x32xf32> -> vector<64x32xf32>
    %cst_32 = arith.constant -1.70141173E+38 : f32
    %88 = vector.broadcast %cst_32 : f32 to vector<64x32xf32>
    %89 = arith.select %53, %87, %88 : vector<64x32xi1>, vector<64x32xf32>
    %cst_33 = arith.constant dense<0xFF800000> : vector<64xf32>
    %90 = vector.multi_reduction <maximumf>, %89, %cst_33 [1] : vector<64x32xf32> to vector<64xf32>
    %91 = vector.shape_cast %90 : vector<64xf32> to vector<64x1xf32>
    %92 = vector.broadcast %91 : vector<64x1xf32> to vector<64x32xf32>
    %93 = arith.subf %89, %92 : vector<64x32xf32>
    %94 = math.exp %93 : vector<64x32xf32>
    %cst_34 = arith.constant dense<0.000000e+00> : vector<64xf32>
    %95 = vector.multi_reduction <add>, %94, %cst_34 [1] : vector<64x32xf32> to vector<64xf32>
    %96 = vector.shape_cast %95 : vector<64xf32> to vector<64x1xf32>
    %97 = tpu.reciprocal %96 {approx = true} : vector<64x1xf32> -> vector<64x1xf32>
    %98 = vector.broadcast %97 : vector<64x1xf32> to vector<64x32xf32>
    %99 = arith.mulf %94, %98 : vector<64x32xf32>
    %100 = arith.truncf %99 : vector<64x32xf32> to vector<64x32xbf16>
    %cst_35 = arith.constant dense<0.000000e+00> : vector<64x32xf32>
    %101 = tpu.matmul %100, %86, %cst_35 {dimension_numbers = #tpu.dot_dimension_numbers<[1], [0], [0], [1], [0, 0, 1, 1], [], []>} : vector<64x32xbf16>, vector<32x32xbf16>, vector<64x32xf32> -> vector<64x32xf32>
    %102 = vector.extract_strided_slice %101 {offsets = [0, 0], sizes = [32, 32], strides = [1, 1]} : vector<64x32xf32> to vector<32x32xf32>
    %103 = vector.extract_strided_slice %101 {offsets = [32, 0], sizes = [32, 32], strides = [1, 1]} : vector<64x32xf32> to vector<32x32xf32>
    %104 = tpu.concatenate %77, %78, %102, %103 in 1 : vector<32x32xf32>, vector<32x32xf32>, vector<32x32xf32>, vector<32x32xf32> -> vector<32x128xf32>
    %105 = arith.truncf %104 : vector<32x128xf32> to vector<32x128xbf16>
    %c0_36 = arith.constant 0 : index
    %c0_37 = arith.constant 0 : index
    %106 = vector.load %arg10[%c0_36, %c0_37] : memref<128x128xbf16, #tpu.memory_space<vmem>>, vector<128x128xbf16>
    %cst_38 = arith.constant dense<0.000000e+00> : vector<32x128xf32>
    %107 = tpu.matmul %105, %106, %cst_38 {dimension_numbers = #tpu.dot_dimension_numbers<[1], [0], [0], [1], [0, 0, 1, 1], [], []>} : vector<32x128xbf16>, vector<128x128xbf16>, vector<32x128xf32> -> vector<32x128xf32>
    %108 = arith.addf %107, %2 : vector<32x128xf32>
    %109 = arith.mulf %108, %108 : vector<32x128xf32>
    %cst_39 = arith.constant dense<0.000000e+00> : vector<32xf32>
    %110 = vector.multi_reduction <add>, %109, %cst_39 [1] : vector<32x128xf32> to vector<32xf32>
    %111 = vector.shape_cast %110 : vector<32xf32> to vector<32x1xf32>
    %cst_40 = arith.constant 1.280000e+02 : f32
    %112 = vector.broadcast %cst_40 : f32 to vector<32x1xf32>
    %113 = arith.divf %111, %112 : vector<32x1xf32>
    %cst_41 = arith.constant 9.99999997E-7 : f32
    %114 = vector.broadcast %cst_41 : f32 to vector<32x1xf32>
    %115 = arith.addf %113, %114 : vector<32x1xf32>
    %116 = math.rsqrt %115 : vector<32x1xf32>
    %117 = vector.broadcast %116 : vector<32x1xf32> to vector<32x128xf32>
    %118 = arith.mulf %108, %117 : vector<32x128xf32>
    %c0_42 = arith.constant 0 : index
    %c0_43 = arith.constant 0 : index
    %119 = vector.load %arg11[%c0_42, %c0_43] : memref<1x128xbf16, #tpu.memory_space<vmem>>, vector<1x128xbf16>
    %120 = arith.extf %119 : vector<1x128xbf16> to vector<1x128xf32>
    %121 = vector.broadcast %120 : vector<1x128xf32> to vector<32x128xf32>
    %122 = arith.mulf %118, %121 : vector<32x128xf32>
    %123 = arith.truncf %122 : vector<32x128xf32> to vector<32x128xbf16>
    %c0_44 = arith.constant 0 : index
    %c0_45 = arith.constant 0 : index
    %124 = vector.load %arg12[%c0_44, %c0_45] : memref<128x256xbf16, #tpu.memory_space<vmem>>, vector<128x256xbf16>
    %cst_46 = arith.constant dense<0.000000e+00> : vector<32x256xf32>
    %125 = tpu.matmul %123, %124, %cst_46 {dimension_numbers = #tpu.dot_dimension_numbers<[1], [0], [0], [1], [0, 0, 1, 1], [], []>} : vector<32x128xbf16>, vector<128x256xbf16>, vector<32x256xf32> -> vector<32x256xf32>
    %c0_47 = arith.constant 0 : index
    %c0_48 = arith.constant 0 : index
    %126 = vector.load %arg13[%c0_47, %c0_48] : memref<128x256xbf16, #tpu.memory_space<vmem>>, vector<128x256xbf16>
    %cst_49 = arith.constant dense<0.000000e+00> : vector<32x256xf32>
    %127 = tpu.matmul %123, %126, %cst_49 {dimension_numbers = #tpu.dot_dimension_numbers<[1], [0], [0], [1], [0, 0, 1, 1], [], []>} : vector<32x128xbf16>, vector<128x256xbf16>, vector<32x256xf32> -> vector<32x256xf32>
    %128 = arith.negf %125 : vector<32x256xf32>
    %129 = math.exp %128 : vector<32x256xf32>
    %cst_50 = arith.constant 1.000000e+00 : f32
    %130 = vector.broadcast %cst_50 : f32 to vector<32x256xf32>
    %131 = arith.addf %130, %129 : vector<32x256xf32>
    %132 = arith.divf %130, %131 : vector<32x256xf32>
    %133 = arith.mulf %125, %132 : vector<32x256xf32>
    %134 = arith.mulf %133, %127 : vector<32x256xf32>
    %135 = arith.truncf %134 : vector<32x256xf32> to vector<32x256xbf16>
    %c0_51 = arith.constant 0 : index
    %c0_52 = arith.constant 0 : index
    %136 = vector.load %arg14[%c0_51, %c0_52] : memref<256x128xbf16, #tpu.memory_space<vmem>>, vector<256x128xbf16>
    %cst_53 = arith.constant dense<0.000000e+00> : vector<32x128xf32>
    %137 = tpu.matmul %135, %136, %cst_53 {dimension_numbers = #tpu.dot_dimension_numbers<[1], [0], [0], [1], [0, 0, 1, 1], [], []>} : vector<32x256xbf16>, vector<256x128xbf16>, vector<32x128xf32> -> vector<32x128xf32>
    %138 = arith.addf %137, %108 : vector<32x128xf32>
    %139 = arith.truncf %138 : vector<32x128xf32> to vector<32x128xbf16>
    %c0_54 = arith.constant 0 : index
    %c0_55 = arith.constant 0 : index
    %c0_56 = arith.constant 0 : index
    %140 = vector.load %arg15[%c0_54, %c0_55, %c0_56] : memref<1x32x128xbf16, #tpu.memory_space<vmem>>, vector<1x32x128xbf16>
    %141 = vector.shape_cast %140 : vector<1x32x128xbf16> to vector<32x128xbf16>
    %142 = vector.shape_cast %139 : vector<32x128xbf16> to vector<1x32x128xbf16>
    tpu.vector_store %arg15[%c0_54, %c0_55, %c0_56], %142 {strides = array<i32>} : memref<1x32x128xbf16, #tpu.memory_space<vmem>>, vector<1x32x128xbf16>,
    return
  }
  func.func @transform_0(%arg0: i32) -> (i32, i32, i32) {
    %c0_i32 = arith.constant 0 : i32
    %c0_i32_0 = arith.constant 0 : i32
    %c0_i32_1 = arith.constant 0 : i32
    return %arg0, %c0_i32, %c0_i32_0 : i32, i32, i32
  }
  func.func @transform_1(%arg0: i32) -> (i32, i32, i32) {
    %c0_i32 = arith.constant 0 : i32
    %c0_i32_0 = arith.constant 0 : i32
    %c0_i32_1 = arith.constant 0 : i32
    return %arg0, %c0_i32, %c0_i32_0 : i32, i32, i32
  }
  func.func @transform_2(%arg0: i32) -> (i32, i32) {
    %c0_i32 = arith.constant 0 : i32
    %c0_i32_0 = arith.constant 0 : i32
    %c0_i32_1 = arith.constant 0 : i32
    return %c0_i32, %c0_i32_0 : i32, i32
  }
  func.func @transform_3(%arg0: i32) -> (i32, i32) {
    %c0_i32 = arith.constant 0 : i32
    %c0_i32_0 = arith.constant 0 : i32
    %c0_i32_1 = arith.constant 0 : i32
    return %c0_i32, %c0_i32_0 : i32, i32
  }
  func.func @transform_4(%arg0: i32) -> (i32, i32) {
    %c0_i32 = arith.constant 0 : i32
    %c0_i32_0 = arith.constant 0 : i32
    %c0_i32_1 = arith.constant 0 : i32
    return %c0_i32, %c0_i32_0 : i32, i32
  }
  func.func @transform_5(%arg0: i32) -> (i32, i32) {
    %c0_i32 = arith.constant 0 : i32
    %c0_i32_0 = arith.constant 0 : i32
    %c0_i32_1 = arith.constant 0 : i32
    return %c0_i32, %c0_i32_0 : i32, i32
  }
  func.func @transform_6(%arg0: i32) -> (i32, i32) {
    %c0_i32 = arith.constant 0 : i32
    %c0_i32_0 = arith.constant 0 : i32
    %c0_i32_1 = arith.constant 0 : i32
    return %c0_i32, %c0_i32_0 : i32, i32
  }
  func.func @transform_7(%arg0: i32) -> (i32, i32) {
    %c0_i32 = arith.constant 0 : i32
    %c0_i32_0 = arith.constant 0 : i32
    %c0_i32_1 = arith.constant 0 : i32
    return %c0_i32, %c0_i32_0 : i32, i32
  }
  func.func @transform_8(%arg0: i32) -> (i32, i32) {
    %c0_i32 = arith.constant 0 : i32
    %c0_i32_0 = arith.constant 0 : i32
    %c0_i32_1 = arith.constant 0 : i32
    return %c0_i32, %c0_i32_0 : i32, i32
  }
  func.func @transform_9(%arg0: i32) -> (i32, i32) {
    %c0_i32 = arith.constant 0 : i32
    %c0_i32_0 = arith.constant 0 : i32
    %c0_i32_1 = arith.constant 0 : i32
    return %c0_i32, %c0_i32_0 : i32, i32
  }
  func.func @transform_10(%arg0: i32) -> (i32, i32) {
    %c0_i32 = arith.constant 0 : i32
    %c0_i32_0 = arith.constant 0 : i32
    %c0_i32_1 = arith.constant 0 : i32
    return %c0_i32, %c0_i32_0 : i32, i32
  }
  func.func @transform_11(%arg0: i32) -> (i32, i32) {
    %c0_i32 = arith.constant 0 : i32
    %c0_i32_0 = arith.constant 0 : i32
    %c0_i32_1 = arith.constant 0 : i32
    return %c0_i32, %c0_i32_0 : i32, i32
  }
  func.func @transform_12(%arg0: i32) -> (i32, i32) {
    %c0_i32 = arith.constant 0 : i32
    %c0_i32_0 = arith.constant 0 : i32
    %c0_i32_1 = arith.constant 0 : i32
    return %c0_i32, %c0_i32_0 : i32, i32
  }
  func.func @transform_13(%arg0: i32) -> (i32, i32) {
    %c0_i32 = arith.constant 0 : i32
    %c0_i32_0 = arith.constant 0 : i32
    %c0_i32_1 = arith.constant 0 : i32
    return %c0_i32, %c0_i32_0 : i32, i32
  }
  func.func @transform_14(%arg0: i32) -> (i32, i32, i32) {
    %c0_i32 = arith.constant 0 : i32
    %c0_i32_0 = arith.constant 0 : i32
    %c0_i32_1 = arith.constant 0 : i32
    return %arg0, %c0_i32, %c0_i32_0 : i32, i32, i32
  }
}

module attributes {stable_mosaic.version = 11 : i64} {
  func.func @_head_ce_kernel(%arg0: i32, %arg1: memref<64x128xbf16, #tpu.memory_space<vmem>>, %arg2: memref<1x128xbf16, #tpu.memory_space<vmem>>, %arg3: memref<128x256xbf16, #tpu.memory_space<vmem>>, %arg4: memref<64x1xi32, #tpu.memory_space<vmem>>, %arg5: memref<64x1xf32, #tpu.memory_space<vmem>>, %arg6: memref<64x256xbf16, #tpu.memory_space<vmem>>, %arg7: memref<1x1xf32, #tpu.memory_space<vmem>>) attributes {dimension_semantics = [#tpu.dimension_semantics<arbitrary>], iteration_bounds = array<i64: 1>, scalar_prefetch = 0 : i64, scratch_operands = 0 : i64, tpu.core_type = #tpu.core_type<tc>, window_params = [{transform_indices = @transform_0, window_bounds = array<i64: 64, 128>}, {pipeline_mode = #tpu.pipeline_mode<synchronous>, transform_indices = @transform_1, window_bounds = array<i64: 1, 128>}, {pipeline_mode = #tpu.pipeline_mode<synchronous>, transform_indices = @transform_2, window_bounds = array<i64: 128, 256>}, {transform_indices = @transform_3, window_bounds = array<i64: 64, 1>}, {transform_indices = @transform_4, window_bounds = array<i64: 64, 1>}, {transform_indices = @transform_5, window_bounds = array<i64: 64, 256>}, {pipeline_mode = #tpu.pipeline_mode<synchronous>, transform_indices = @transform_6, window_bounds = array<i64: 1, 1>}]} {
    %c0_i32 = arith.constant 0 : i32
    %0 = arith.cmpi eq, %arg0, %c0_i32 : i32
    %1 = arith.extui %0 : i1 to i32
    %c0_i32_0 = arith.constant 0 : i32
    %2 = arith.cmpi ne, %1, %c0_i32_0 : i32
    scf.if %2 {
      %cst_23 = arith.constant 0.000000e+00 : f32
      %50 = vector.broadcast %cst_23 : f32 to vector<1x1xf32>
      %c0_24 = arith.constant 0 : index
      %c0_25 = arith.constant 0 : index
      %51 = vector.load %arg7[%c0_24, %c0_25] : memref<1x1xf32, #tpu.memory_space<vmem>>, vector<1x1xf32>
      tpu.vector_store %arg7[%c0_24, %c0_25], %50 {strides = array<i32>} : memref<1x1xf32, #tpu.memory_space<vmem>>, vector<1x1xf32>,
    } else {
    }
    %c0 = arith.constant 0 : index
    %c0_1 = arith.constant 0 : index
    %3 = vector.load %arg1[%c0, %c0_1] : memref<64x128xbf16, #tpu.memory_space<vmem>>, vector<64x128xbf16>
    %4 = arith.extf %3 : vector<64x128xbf16> to vector<64x128xf32>
    %5 = arith.mulf %4, %4 : vector<64x128xf32>
    %cst = arith.constant dense<0.000000e+00> : vector<64xf32>
    %6 = vector.multi_reduction <add>, %5, %cst [1] : vector<64x128xf32> to vector<64xf32>
    %7 = vector.shape_cast %6 : vector<64xf32> to vector<64x1xf32>
    %cst_2 = arith.constant 1.280000e+02 : f32
    %8 = vector.broadcast %cst_2 : f32 to vector<64x1xf32>
    %9 = arith.divf %7, %8 : vector<64x1xf32>
    %cst_3 = arith.constant 9.99999997E-7 : f32
    %10 = vector.broadcast %cst_3 : f32 to vector<64x1xf32>
    %11 = arith.addf %9, %10 : vector<64x1xf32>
    %12 = math.rsqrt %11 : vector<64x1xf32>
    %13 = vector.broadcast %12 : vector<64x1xf32> to vector<64x128xf32>
    %14 = arith.mulf %4, %13 : vector<64x128xf32>
    %c0_4 = arith.constant 0 : index
    %c0_5 = arith.constant 0 : index
    %15 = vector.load %arg2[%c0_4, %c0_5] : memref<1x128xbf16, #tpu.memory_space<vmem>>, vector<1x128xbf16>
    %16 = arith.extf %15 : vector<1x128xbf16> to vector<1x128xf32>
    %17 = vector.broadcast %16 : vector<1x128xf32> to vector<64x128xf32>
    %18 = arith.mulf %14, %17 : vector<64x128xf32>
    %19 = arith.truncf %18 : vector<64x128xf32> to vector<64x128xbf16>
    %c0_6 = arith.constant 0 : index
    %c0_7 = arith.constant 0 : index
    %20 = vector.load %arg3[%c0_6, %c0_7] : memref<128x256xbf16, #tpu.memory_space<vmem>>, vector<128x256xbf16>
    %cst_8 = arith.constant dense<0.000000e+00> : vector<64x256xf32>
    %21 = tpu.matmul %19, %20, %cst_8 {dimension_numbers = #tpu.dot_dimension_numbers<[1], [0], [0], [1], [0, 0, 1, 1], [], []>} : vector<64x128xbf16>, vector<128x256xbf16>, vector<64x256xf32> -> vector<64x256xf32>
    %22 = arith.truncf %21 : vector<64x256xf32> to vector<64x256xbf16>
    %c0_9 = arith.constant 0 : index
    %c0_10 = arith.constant 0 : index
    %23 = vector.load %arg6[%c0_9, %c0_10] : memref<64x256xbf16, #tpu.memory_space<vmem>>, vector<64x256xbf16>
    tpu.vector_store %arg6[%c0_9, %c0_10], %22 {strides = array<i32>} : memref<64x256xbf16, #tpu.memory_space<vmem>>, vector<64x256xbf16>,
    %cst_11 = arith.constant dense<0xFF800000> : vector<64xf32>
    %24 = vector.multi_reduction <maximumf>, %21, %cst_11 [1] : vector<64x256xf32> to vector<64xf32>
    %25 = vector.shape_cast %24 : vector<64xf32> to vector<64x1xf32>
    %26 = vector.broadcast %25 : vector<64x1xf32> to vector<64x256xf32>
    %27 = arith.subf %21, %26 : vector<64x256xf32>
    %28 = math.exp %27 : vector<64x256xf32>
    %cst_12 = arith.constant dense<0.000000e+00> : vector<64xf32>
    %29 = vector.multi_reduction <add>, %28, %cst_12 [1] : vector<64x256xf32> to vector<64xf32>
    %30 = vector.shape_cast %29 : vector<64xf32> to vector<64x1xf32>
    %31 = math.log %30 : vector<64x1xf32>
    %32 = arith.addf %31, %25 : vector<64x1xf32>
    %33 = tpu.iota {dimensions = array<i32: 1>} : vector<64x256xi32>
    %c0_13 = arith.constant 0 : index
    %c0_14 = arith.constant 0 : index
    %34 = vector.load %arg4[%c0_13, %c0_14] : memref<64x1xi32, #tpu.memory_space<vmem>>, vector<64x1xi32>
    %35 = vector.broadcast %34 : vector<64x1xi32> to vector<64x256xi32>
    %36 = arith.cmpi eq, %33, %35 : vector<64x256xi32>
    %37 = arith.extui %36 : vector<64x256xi1> to vector<64x256xi32>
    %38 = arith.sitofp %37 : vector<64x256xi32> to vector<64x256xf32>
    %39 = arith.mulf %21, %38 : vector<64x256xf32>
    %cst_15 = arith.constant dense<0.000000e+00> : vector<64xf32>
    %40 = vector.multi_reduction <add>, %39, %cst_15 [1] : vector<64x256xf32> to vector<64xf32>
    %41 = vector.shape_cast %40 : vector<64xf32> to vector<64x1xf32>
    %42 = arith.subf %32, %41 : vector<64x1xf32>
    %c0_16 = arith.constant 0 : index
    %c0_17 = arith.constant 0 : index
    %43 = vector.load %arg5[%c0_16, %c0_17] : memref<64x1xf32, #tpu.memory_space<vmem>>, vector<64x1xf32>
    %44 = arith.mulf %42, %43 : vector<64x1xf32>
    %c0_18 = arith.constant 0 : index
    %c0_19 = arith.constant 0 : index
    %45 = vector.load %arg7[%c0_18, %c0_19] : memref<1x1xf32, #tpu.memory_space<vmem>>, vector<1x1xf32>
    %cst_20 = arith.constant dense<0.000000e+00> : vector<1xf32>
    %46 = vector.multi_reduction <add>, %44, %cst_20 [0] : vector<64x1xf32> to vector<1xf32>
    %47 = vector.shape_cast %46 : vector<1xf32> to vector<1x1xf32>
    %48 = arith.addf %45, %47 : vector<1x1xf32>
    %c0_21 = arith.constant 0 : index
    %c0_22 = arith.constant 0 : index
    %49 = vector.load %arg7[%c0_21, %c0_22] : memref<1x1xf32, #tpu.memory_space<vmem>>, vector<1x1xf32>
    tpu.vector_store %arg7[%c0_21, %c0_22], %48 {strides = array<i32>} : memref<1x1xf32, #tpu.memory_space<vmem>>, vector<1x1xf32>,
    return
  }
  func.func @transform_0(%arg0: i32) -> (i32, i32) {
    %c0_i32 = arith.constant 0 : i32
    %c0_i32_0 = arith.constant 0 : i32
    return %arg0, %c0_i32 : i32, i32
  }
  func.func @transform_1(%arg0: i32) -> (i32, i32) {
    %c0_i32 = arith.constant 0 : i32
    %c0_i32_0 = arith.constant 0 : i32
    %c0_i32_1 = arith.constant 0 : i32
    return %c0_i32, %c0_i32_0 : i32, i32
  }
  func.func @transform_2(%arg0: i32) -> (i32, i32) {
    %c0_i32 = arith.constant 0 : i32
    %c0_i32_0 = arith.constant 0 : i32
    %c0_i32_1 = arith.constant 0 : i32
    return %c0_i32, %c0_i32_0 : i32, i32
  }
  func.func @transform_3(%arg0: i32) -> (i32, i32) {
    %c0_i32 = arith.constant 0 : i32
    %c0_i32_0 = arith.constant 0 : i32
    return %arg0, %c0_i32 : i32, i32
  }
  func.func @transform_4(%arg0: i32) -> (i32, i32) {
    %c0_i32 = arith.constant 0 : i32
    %c0_i32_0 = arith.constant 0 : i32
    return %arg0, %c0_i32 : i32, i32
  }
  func.func @transform_5(%arg0: i32) -> (i32, i32) {
    %c0_i32 = arith.constant 0 : i32
    %c0_i32_0 = arith.constant 0 : i32
    return %arg0, %c0_i32 : i32, i32
  }
  func.func @transform_6(%arg0: i32) -> (i32, i32) {
    %c0_i32 = arith.constant 0 : i32
    %c0_i32_0 = arith.constant 0 : i32
    %c0_i32_1 = arith.constant 0 : i32
    return %c0_i32, %c0_i32_0 : i32, i32
  }
}

</mosaic_0001>

<bundles_post_ra>
// kernel: tile.18
= control target key start
LH: loop header
LB: loop body
LE: loop exit
PB: predicated region body
PF: predicated region fallthrough
CT: control target
= control target key end

     0   :  { %vm92_vm0 = vcmask 1047556   ;;  %s459_s14 = smov 96   ;;  %s460_s26 = smov 64   ;;  %vm3_vm1 = vcmask 261120   ;;  %vm96_vm2 = vcmask 1048320   ;;  %vm183_vm3 = vcmask 785920   ;;  %s904_s0 = inlined_call_operand.vmem [shape: f32[32,8,32], index: 0, kind: input, shape index: {}]   ;;  %s905_s1 = inlined_call_operand.vmem [shape: f32[32,256], index: 1, kind: output, shape index: {}]  }
   0x1   :  { %v392_v0 = vld [vmem:[%s904_s0 + $0x7] ss:$8 sm:$0xf]   ;;  %v387_v3 = vld [vmem:[%s904_s0 + $0x3] ss:$8 sm:$0xf]  }
   0x2   :  { %v393_v1 = vld [vmem:[%s904_s0 + $0x7] ss:$8 sm:$0xf0]   ;;  %v388_v4 = vld [vmem:[%s904_s0 + $0x3] ss:$8 sm:$0xf0]  }
   0x3   :  { %v114_v2 = vsel %vm92_vm0, %v393_v1, %v392_v0  ;;  %v93_v5 = vsel %vm92_vm0, %v388_v4, %v387_v3  ;;  %v395_v6 = vld [vmem:[%s904_s0 + $0x87] ss:$8 sm:$0xf]   ;;  %v389_v9 = vld [vmem:[%s904_s0 + $0x83] ss:$8 sm:$0xf]  }
   0x4   :  { %115 = vrot.lane.b32.xlu1 %v114_v2, %s459_s14  ;;  %v396_v7 = vld [vmem:[%s904_s0 + $0x87] ss:$8 sm:$0xf0]   ;;  %94 = vrot.lane.b32.xlu0 %v93_v5, %s459_s14  ;;  %v390_v10 = vld [vmem:[%s904_s0 + $0x83] ss:$8 sm:$0xf0]  }
   0x5   :  { %v125_v8 = vsel %vm92_vm0, %v396_v7, %v395_v6  ;;  %v103_v11 = vsel %vm92_vm0, %v390_v10, %v389_v9  ;;  %v401_v12 = vld [vmem:[%s904_s0 + $0xc3] ss:$8 sm:$0xf]   ;;  %v407_v18 = vld [vmem:[%s904_s0 + $0xc7] ss:$8 sm:$0xf]  }
   0x6   :  { %v402_v13 = vld [vmem:[%s904_s0 + $0xc3] ss:$8 sm:$0xf0]   ;;  %v408_v19 = vld [vmem:[%s904_s0 + $0xc7] ss:$8 sm:$0xf0]  }
   0x7   :  { %v398_v14 = vld [vmem:[%s904_s0 + $0x43] ss:$8 sm:$0xf]   ;;  %v147_v16 = vsel %vm92_vm0, %v402_v13, %v401_v12  ;;  %v404_v20 = vld [vmem:[%s904_s0 + $0x47] ss:$8 sm:$0xf]   ;;  %v169_v22 = vsel %vm92_vm0, %v408_v19, %v407_v18 }
   0x8   :  { %v399_v15 = vld [vmem:[%s904_s0 + $0x43] ss:$8 sm:$0xf0]   ;;  %126 = vrot.lane.b32.xlu1 %v125_v8, %s459_s14  ;;  %104 = vrot.lane.b32.xlu0 %v103_v11, %s459_s14  ;;  %v405_v21 = vld [vmem:[%s904_s0 + $0x47] ss:$8 sm:$0xf0]  }
   0x9   :  { %v136_v17 = vsel %vm92_vm0, %v399_v15, %v398_v14  ;;  %v158_v23 = vsel %vm92_vm0, %v405_v21, %v404_v20  ;;  %v412_v24 = vld [vmem:[%s904_s0 + $0x82] ss:$8 sm:$0xf]   ;;  %v418_v30 = vld [vmem:[%s904_s0 + $0x86] ss:$8 sm:$0xf]  }
   0xa   :  { %v413_v25 = vld [vmem:[%s904_s0 + $0x82] ss:$8 sm:$0xf0]   ;;  %v419_v31 = vld [vmem:[%s904_s0 + $0x86] ss:$8 sm:$0xf0]  }
   0xb   :  { %v410_v26 = vld [vmem:[%s904_s0 + $0x2] ss:$8 sm:$0xf]   ;;  %v190_v28 = vsel %vm92_vm0, %v413_v25, %v412_v24  ;;  %v415_v32 = vld [vmem:[%s904_s0 + $0x6] ss:$8 sm:$0xf]   ;;  %v212_v34 = vsel %vm92_vm0, %v419_v31, %v418_v30 }
   0xc   :  { %148 = vrot.lane.b32.xlu1 %v147_v16, %s459_s14  ;;  %137 = vrot.lane.b32.xlu0 %v136_v17, %s459_s14  ;;  %v411_v27 = vld [vmem:[%s904_s0 + $0x2] ss:$8 sm:$0xf0]   ;;  %v416_v33 = vld [vmem:[%s904_s0 + $0x6] ss:$8 sm:$0xf0]  }
   0xd   :  { %v180_v29 = vsel %vm92_vm0, %v411_v27, %v410_v26  ;;  %v201_v35 = vsel %vm92_vm0, %v416_v33, %v415_v32  ;;  %v424_v36 = vld [vmem:[%s904_s0 + $0xc2] ss:$8 sm:$0xf]   ;;  %v430_v40 = vld [vmem:[%s904_s0 + $0xc6] ss:$8 sm:$0xf]  }
   0xe   :  { %v425_v37 = vld [vmem:[%s904_s0 + $0xc2] ss:$8 sm:$0xf0]   ;;  %v431_v42 = vld [vmem:[%s904_s0 + $0xc6] ss:$8 sm:$0xf0]  }
   0xf   :  { %v421_v38 = vld [vmem:[%s904_s0 + $0x42] ss:$8 sm:$0xf]   ;;  %v234_v41 = vsel %vm92_vm0, %v425_v37, %v424_v36  ;;  %v427_v43 = vld [vmem:[%s904_s0 + $0x46] ss:$8 sm:$0xf]   ;;  %v256_v53 = vsel %vm92_vm0, %v431_v42, %v430_v40 }
  0x10   :  { %170 = vrot.lane.b32.xlu1 %v169_v22, %s459_s14  ;;  %159 = vrot.lane.b32.xlu0 %v158_v23, %s459_s14  ;;  %v422_v39 = vld [vmem:[%s904_s0 + $0x42] ss:$8 sm:$0xf0]   ;;  %v428_v45 = vld [vmem:[%s904_s0 + $0x46] ss:$8 sm:$0xf0]  }
  0x11   :  { %v223_v44 = vsel %vm92_vm0, %v422_v39, %v421_v38  ;;  %v367_v46 = vld [vmem:[%s904_s0 + $0x80] ss:$4 sm:$0xff]   ;;  %v245_v55 = vsel %vm92_vm0, %v428_v45, %v427_v43  ;;  %v435_v56 = vld [vmem:[%s904_s0 + $0x81] ss:$8 sm:$0xf]   ;;  %s461_s25 = smov 32  }
  0x12   :  { %368 = vst.msk [vmem:[%s905_s1 + $0x20] ss:$8 sm:$0x3] %vm3_vm1, %v367_v46   ;;  %369 = vst.msk [vmem:[%s905_s1 + $0x11] ss:$8 sm:$0xc] %vm3_vm1, %v367_v46  }
  0x13   :  { %370 = vst.msk [vmem:[%s905_s1 + $0x2] ss:$8 sm:$0x30] %vm3_vm1, %v367_v46   ;;  %371 = vst.msk [vmem:[%s905_s1 - $0xd] ss:$8 sm:$0xc0] %vm3_vm1, %v367_v46  }
  0x14   :  { %191 = vrot.lane.b32.xlu1 %v190_v28, %s460_s26  ;;  %181 = vrot.lane.b32.xlu0 %v180_v29, %s460_s26  ;;  %v372_v47 = vld [vmem:[%s904_s0 + $0xa0] ss:$4 sm:$0xff]   ;;  %v436_v57 = vld [vmem:[%s904_s0 + $0x81] ss:$8 sm:$0xf0]   ;;  %vm270_vm4 = vcmask 523520  }
  0x15   :  { %v2_v48 = vld [vmem:[%s904_s0] ss:$4 sm:$0xff]   ;;  %373 = vst.msk [vmem:[%s905_s1 + $0x24] ss:$8 sm:$0x3] %vm3_vm1, %v372_v47   ;;  %v277_v60 = vsel %vm92_vm0, %v436_v57, %v435_v56 }
  0x16   :  { %v352_v49 = vld [vmem:[%s904_s0 + $0x20] ss:$4 sm:$0xff]   ;;  %374 = vst.msk [vmem:[%s905_s1 + $0x15] ss:$8 sm:$0xc] %vm3_vm1, %v372_v47  }
  0x17   :  { %375 = vst.msk [vmem:[%s905_s1 + $0x6] ss:$8 sm:$0x30] %vm3_vm1, %v372_v47   ;;  %376 = vst.msk [vmem:[%s905_s1 - $0x9] ss:$8 sm:$0xc0] %vm3_vm1, %v372_v47  }
  0x18   :  { %213 = vrot.lane.b32.xlu1 %v212_v34, %s460_s26  ;;  %202 = vrot.lane.b32.xlu0 %v201_v35, %s460_s26  ;;  %4 = vst.msk [vmem:[%s905_s1] ss:$8 sm:$0x3] %vm3_vm1, %v2_v48   ;;  %349 = vst.msk [vmem:[%s905_s1 - $0xf] ss:$8 sm:$0xc] %vm3_vm1, %v2_v48  }
  0x19   :  { %350 = vst.msk [vmem:[%s905_s1 - $0x1e] ss:$8 sm:$0x30] %vm3_vm1, %v2_v48   ;;  %351 = vst.msk [vmem:[%s905_s1 - $0x2d] ss:$8 sm:$0xc0] %vm3_vm1, %v2_v48  }
  0x1a   :  { %353 = vst.msk [vmem:[%s905_s1 + $0x4] ss:$8 sm:$0x3] %vm3_vm1, %v352_v49   ;;  %354 = vst.msk [vmem:[%s905_s1 - $0xb] ss:$8 sm:$0xc] %vm3_vm1, %v352_v49  }
  0x1b   :  { %355 = vst.msk [vmem:[%s905_s1 - $0x1a] ss:$8 sm:$0x30] %vm3_vm1, %v352_v49   ;;  %356 = vst.msk [vmem:[%s905_s1 - $0x29] ss:$8 sm:$0xc0] %vm3_vm1, %v352_v49  }
  0x1c   :  { %235 = vrot.lane.b32.xlu1 %v234_v41, %s460_s26  ;;  %v377_v50 = vld [vmem:[%s904_s0 + $0xc0] ss:$4 sm:$0xff]   ;;  %224 = vrot.lane.b32.xlu0 %v223_v44, %s460_s26  ;;  %v433_v58 = vld [vmem:[%s904_s0 + $0x1] ss:$8 sm:$0xf]  }
  0x1d   :  { %v382_v51 = vld [vmem:[%s904_s0 + $0xe0] ss:$4 sm:$0xff]   ;;  %378 = vst.msk [vmem:[%s905_s1 + $0x30] ss:$8 sm:$0x3] %vm3_vm1, %v377_v50  }
  0x1e   :  { %v357_v52 = vld [vmem:[%s904_s0 + $0x40] ss:$4 sm:$0xff]   ;;  %379 = vst.msk [vmem:[%s905_s1 + $0x21] ss:$8 sm:$0xc] %vm3_vm1, %v377_v50  }
  0x1f   :  { %380 = vst.msk [vmem:[%s905_s1 + $0x12] ss:$8 sm:$0x30] %vm3_vm1, %v377_v50   ;;  %381 = vst.msk [vmem:[%s905_s1 + $0x3] ss:$8 sm:$0xc0] %vm3_vm1, %v377_v50  }
  0x20   :  { %383 = vst.msk [vmem:[%s905_s1 + $0x34] ss:$8 sm:$0x3] %vm3_vm1, %v382_v51   ;;  %384 = vst.msk [vmem:[%s905_s1 + $0x25] ss:$8 sm:$0xc] %vm3_vm1, %v382_v51   ;;  %257 = vrot.lane.b32.xlu1 %v256_v53, %s460_s26  ;;  %246 = vrot.lane.b32.xlu0 %v245_v55, %s460_s26 }
  0x21   :  { %385 = vst.msk [vmem:[%s905_s1 + $0x16] ss:$8 sm:$0x30] %vm3_vm1, %v382_v51   ;;  %386 = vst.msk [vmem:[%s905_s1 + $0x7] ss:$8 sm:$0xc0] %vm3_vm1, %v382_v51  }
  0x22   :  { %358 = vst.msk [vmem:[%s905_s1 + $0x10] ss:$8 sm:$0x3] %vm3_vm1, %v357_v52   ;;  %359 = vst.msk [vmem:[%s905_s1 + $0x1] ss:$8 sm:$0xc] %vm3_vm1, %v357_v52  }
  0x23   :  { %360 = vst.msk [vmem:[%s905_s1 - $0xe] ss:$8 sm:$0x30] %vm3_vm1, %v357_v52   ;;  %361 = vst.msk [vmem:[%s905_s1 - $0x1d] ss:$8 sm:$0xc0] %vm3_vm1, %v357_v52  }
  0x24   :  { %v362_v54 = vld [vmem:[%s904_s0 + $0x60] ss:$4 sm:$0xff]   ;;  %v434_v59 = vld [vmem:[%s904_s0 + $0x1] ss:$8 sm:$0xf0]   ;;  %278 = vrot.lane.b32.xlu1 %v277_v60, %s461_s25 }
  0x25   :  { %363 = vst.msk [vmem:[%s905_s1 + $0x14] ss:$8 sm:$0x3] %vm3_vm1, %v362_v54   ;;  %364 = vst.msk [vmem:[%s905_s1 + $0x5] ss:$8 sm:$0xc] %vm3_vm1, %v362_v54   ;;  %v267_v61 = vsel %vm92_vm0, %v434_v59, %v433_v58 }
  0x26   :  { %365 = vst.msk [vmem:[%s905_s1 - $0xa] ss:$8 sm:$0x30] %vm3_vm1, %v362_v54   ;;  %366 = vst.msk [vmem:[%s905_s1 - $0x19] ss:$8 sm:$0xc0] %vm3_vm1, %v362_v54   ;;  %268 = vrot.lane.b32.xlu0 %v267_v61, %s461_s25 }
  0x27   :  { %v441_v62 = vld [vmem:[%s904_s0 + $0x85] ss:$8 sm:$0xf]   ;;  %v447_v4 = vld [vmem:[%s904_s0 + $0xc1] ss:$8 sm:$0xf]  }
  0x28   :  { %v442_v63 = vld [vmem:[%s904_s0 + $0x85] ss:$8 sm:$0xf0]   ;;  %v448_v5 = vld [vmem:[%s904_s0 + $0xc1] ss:$8 sm:$0xf0]  }
  0x29   :  { %v438_v0 = vld [vmem:[%s904_s0 + $0x5] ss:$8 sm:$0xf]   ;;  %v299_v2 = vsel %vm92_vm0, %v442_v63, %v441_v62  ;;  %v444_v6 = vld [vmem:[%s904_s0 + $0x41] ss:$8 sm:$0xf]   ;;  %v321_v8 = vsel %vm92_vm0, %v448_v5, %v447_v4 }
  0x2a   :  { %v439_v1 = vld [vmem:[%s904_s0 + $0x5] ss:$8 sm:$0xf0]   ;;  %v445_v7 = vld [vmem:[%s904_s0 + $0x41] ss:$8 sm:$0xf0]   ;;  %300 = vrot.lane.b32.xlu1 %v299_v2, %s461_s25 }
  0x2b   :  { %v288_v3 = vsel %vm92_vm0, %v439_v1, %v438_v0  ;;  %v310_v9 = vsel %vm92_vm0, %v445_v7, %v444_v6  ;;  %v453_v10 = vld [vmem:[%s904_s0 + $0xc5] ss:$8 sm:$0xf]  }
  0x2c   :  { %289 = vrot.lane.b32.xlu0 %v288_v3, %s461_s25  ;;  %v454_v11 = vld [vmem:[%s904_s0 + $0xc5] ss:$8 sm:$0xf0]  }
  0x2d   :  { %v450_v12 = vld [vmem:[%s904_s0 + $0x45] ss:$8 sm:$0xf]   ;;  %v343_v14 = vsel %vm92_vm0, %v454_v11, %v453_v10 }
  0x2e   :  { %v451_v13 = vld [vmem:[%s904_s0 + $0x45] ss:$8 sm:$0xf0]   ;;  %322 = vrot.lane.b32.xlu1 %v321_v8, %s461_s25 }
  0x2f   :  { %v332_v15 = vsel %vm92_vm0, %v451_v13, %v450_v12 }
  0x30   :  { %311 = vrot.lane.b32.xlu0 %v310_v9, %s461_s25 }
  0x32   :  { %344 = vrot.lane.b32.xlu1 %v343_v14, %s461_s25 }
  0x34   :  { %333 = vrot.lane.b32.xlu0 %v332_v15, %s461_s25 }
  0x76   :  { %v116_v16 = vpop.permute.xlu1 %115   ;;  %v95_v17 = vpop.permute.xlu0 %94  }
  0x77   :  { %394 = vst.msk [vmem:[%s905_s1 + $0x8] sm:$0xff] %vm96_vm2, %v116_v16   ;;  %97 = vst.msk [vmem:[%s905_s1] sm:$0xff] %vm96_vm2, %v95_v17  }
  0x7a   :  { %v127_v18 = vpop.permute.xlu1 %126   ;;  %v105_v19 = vpop.permute.xlu0 %104  }
  0x7b   :  { %397 = vst.msk [vmem:[%s905_s1 + $0x28] sm:$0xff] %vm96_vm2, %v127_v18   ;;  %391 = vst.msk [vmem:[%s905_s1 + $0x20] sm:$0xff] %vm96_vm2, %v105_v19  }
  0x7e   :  { %v149_v20 = vpop.permute.xlu1 %148   ;;  %v138_v21 = vpop.permute.xlu0 %137  }
  0x7f   :  { %403 = vst.msk [vmem:[%s905_s1 + $0x30] sm:$0xff] %vm96_vm2, %v149_v20   ;;  %400 = vst.msk [vmem:[%s905_s1 + $0x10] sm:$0xff] %vm96_vm2, %v138_v21  }
  0x82   :  { %v171_v22 = vpop.permute.xlu1 %170   ;;  %v160_v23 = vpop.permute.xlu0 %159  }
  0x83   :  { %409 = vst.msk [vmem:[%s905_s1 + $0x38] sm:$0xff] %vm96_vm2, %v171_v22   ;;  %406 = vst.msk [vmem:[%s905_s1 + $0x18] sm:$0xff] %vm96_vm2, %v160_v23  }
  0x86   :  { %v192_v24 = vpop.permute.xlu1 %191   ;;  %v182_v25 = vpop.permute.xlu0 %181  }
  0x87   :  { %414 = vst.msk [vmem:[%s905_s1 + $0x20] sm:$0xff] %vm183_vm3, %v192_v24   ;;  %184 = vst.msk [vmem:[%s905_s1] sm:$0xff] %vm183_vm3, %v182_v25  }
  0x8a   :  { %v214_v26 = vpop.permute.xlu1 %213   ;;  %v203_v27 = vpop.permute.xlu0 %202  }
  0x8b   :  { %420 = vst.msk [vmem:[%s905_s1 + $0x28] sm:$0xff] %vm183_vm3, %v214_v26   ;;  %417 = vst.msk [vmem:[%s905_s1 + $0x8] sm:$0xff] %vm183_vm3, %v203_v27  }
  0x8e   :  { %v236_v28 = vpop.permute.xlu1 %235   ;;  %v225_v29 = vpop.permute.xlu0 %224  }
  0x8f   :  { %426 = vst.msk [vmem:[%s905_s1 + $0x30] sm:$0xff] %vm183_vm3, %v236_v28   ;;  %423 = vst.msk [vmem:[%s905_s1 + $0x10] sm:$0xff] %vm183_vm3, %v225_v29  }
  0x92   :  { %v258_v30 = vpop.permute.xlu1 %257   ;;  %v247_v31 = vpop.permute.xlu0 %246  }
  0x93   :  { %432 = vst.msk [vmem:[%s905_s1 + $0x38] sm:$0xff] %vm183_vm3, %v258_v30   ;;  %429 = vst.msk [vmem:[%s905_s1 + $0x18] sm:$0xff] %vm183_vm3, %v247_v31  }
  0x96   :  { %v279_v32 = vpop.permute.xlu1 %278  }
  0x97   :  { %437 = vst.msk [vmem:[%s905_s1 + $0x20] sm:$0xff] %vm270_vm4, %v279_v32  }
  0x98   :  { %v269_v33 = vpop.permute.xlu0 %268  }
  0x99   :  { %271 = vst.msk [vmem:[%s905_s1] sm:$0xff] %vm270_vm4, %v269_v33  }
  0x9c   :  { %v301_v34 = vpop.permute.xlu1 %300  }
  0x9d   :  { %443 = vst.msk [vmem:[%s905_s1 + $0x28] sm:$0xff] %vm270_vm4, %v301_v34  }
  0x9e   :  { %v290_v35 = vpop.permute.xlu0 %289  }
  0x9f   :  { %440 = vst.msk [vmem:[%s905_s1 + $0x8] sm:$0xff] %vm270_vm4, %v290_v35  }
  0xa0   :  { %v323_v36 = vpop.permute.xlu1 %322  }
  0xa1   :  { %449 = vst.msk [vmem:[%s905_s1 + $0x30] sm:$0xff] %vm270_vm4, %v323_v36  }
  0xa2   :  { %v312_v37 = vpop.permute.xlu0 %311  }
  0xa3   :  { %446 = vst.msk [vmem:[%s905_s1 + $0x10] sm:$0xff] %vm270_vm4, %v312_v37  }
  0xa4   :  { %v345_v38 = vpop.permute.xlu1 %344  }
  0xa5   :  { %455 = vst.msk [vmem:[%s905_s1 + $0x38] sm:$0xff] %vm270_vm4, %v345_v38  }
  0xa6   :  { %v334_v39 = vpop.permute.xlu0 %333  }
  0xa7   :  { %452 = vst.msk [vmem:[%s905_s1 + $0x18] sm:$0xff] %vm270_vm4, %v334_v39  }

// kernel: tile.26
= control target key start
LH: loop header
LB: loop body
LE: loop exit
PB: predicated region body
PF: predicated region fallthrough
CT: control target
= control target key end

     0   :  { %s22_s0 = inlined_call_operand.vmem [shape: f32[32], index: 0, kind: input, shape index: {}]   ;;  %s23_s1 = inlined_call_operand.vmem [shape: f32[2,1,1,32], index: 1, kind: output, shape index: {}]  }
   0x1   :  { %v4_v0 = vld [vmem:[%s22_s0] ss:$0 sm:$0xff] }
   0x2   :  { %5 = vst [vmem:[%s23_s1] sm:$0x3] %v4_v0 }

// kernel: tile.0
= control target key start
LH: loop header
LB: loop body
LE: loop exit
PB: predicated region body
PF: predicated region fallthrough
CT: control target
= control target key end

     0   :  { %s354_s8 = smov 125   ;;  %s355_s9 = smov 126   ;;  %vm7_vm0 = vcmask 7168   ;;  %s653_s0 = inlined_call_operand.vmem [shape: f32[2,1,1,32], index: 0, kind: input, shape index: {}]   ;;  %s654_s1 = inlined_call_operand.vmem [shape: f32[64,1], index: 1, kind: output, shape index: {}]  }
   0x1   :  { %v4_v0 = vld [vmem:[%s653_s0] sm:$0x3]  ;;  %s353_s0 = smov 127   ;;  %s356_s10 = smov 124  }
   0x2   :  { %5 = vst [vmem:[#allocation0] sm:$0x3] %v4_v0  ;;  %s357_s11 = smov 123   ;;  %s358_s12 = smov 122  }
   0x3   :  { %s359_s13 = smov 121   ;;  %s360_s14 = smov 120  }
   0x4   :  { %s361_s15 = smov 119   ;;  %s362_s16 = smov 118  }
   0x5   :  { %s363_s17 = smov 117   ;;  %s364_s18 = smov 116  }
   0x6   :  { %s365_s19 = smov 115   ;;  %s366_s20 = smov 114  }
   0x7   :  { %s367_s21 = smov 113   ;;  %s368_s22 = smov 112  }
   0x8   :  { %s369_s23 = smov 111   ;;  %s370_s24 = smov 110  }
   0x9   :  { %v11_v1 = vld [vmem:[#allocation0] sm:$0x3]   ;;  %s371_s25 = smov 109   ;;  %s372_s26 = smov 108  }
   0xa   :  { %v27_v2 = vld [vmem:[#allocation0] sm:$0x3]   ;;  %12 = vrot.lane.b32.xlu0 %v11_v1, %s353_s0  ;;  %s373_s27 = smov 107   ;;  %s374_s28 = smov 106  }
   0xb   :  { %28 = vrot.lane.b32.xlu1 %v27_v2, %s354_s8  ;;  %v19_v3 = vld [vmem:[#allocation0] sm:$0x3]   ;;  %s375_s29 = smov 105   ;;  %s376_s30 = smov 104  }
   0xc   :  { %v35_v4 = vld [vmem:[#allocation0] sm:$0x3]   ;;  %s377_s6 = smov 103   ;;  %s378_s7 = smov 102  }
   0xd   :  { %v43_v5 = vld [vmem:[#allocation0] sm:$0x3]   ;;  %s379_s0 = smov 101   ;;  %s380_s8 = smov 100  }
   0xe   :  { %20 = vrot.lane.b32.xlu0 %v19_v3, %s355_s9  ;;  %v51_v6 = vld [vmem:[#allocation0] sm:$0x3]   ;;  %s381_s9 = smov 99  }
   0xf   :  { %36 = vrot.lane.b32.xlu1 %v35_v4, %s356_s10  ;;  %v59_v7 = vld [vmem:[#allocation0] sm:$0x3]   ;;  %s382_s10 = smov 98  }
  0x10   :  { %v67_v8 = vld [vmem:[#allocation0] sm:$0x3]  }
  0x11   :  { %v75_v9 = vld [vmem:[#allocation0] sm:$0x3]  }
  0x12   :  { %44 = vrot.lane.b32.xlu0 %v43_v5, %s357_s11  ;;  %v83_v10 = vld [vmem:[#allocation0] sm:$0x3]   ;;  %s383_s11 = smov 97  }
  0x13   :  { %52 = vrot.lane.b32.xlu1 %v51_v6, %s358_s12  ;;  %v91_v11 = vld [vmem:[#allocation0] sm:$0x3]  }
  0x14   :  { %v99_v12 = vld [vmem:[#allocation0] sm:$0x3]  }
  0x15   :  { %v107_v13 = vld [vmem:[#allocation0] sm:$0x3]  }
  0x16   :  { %60 = vrot.lane.b32.xlu0 %v59_v7, %s359_s13  ;;  %v115_v14 = vld [vmem:[#allocation0] sm:$0x3]  }
  0x17   :  { %68 = vrot.lane.b32.xlu1 %v67_v8, %s360_s14  ;;  %v123_v15 = vld [vmem:[#allocation0] sm:$0x3]  }
  0x18   :  { %v131_v16 = vld [vmem:[#allocation0] sm:$0x3]  }
  0x19   :  { %v139_v17 = vld [vmem:[#allocation0] sm:$0x3]  }
  0x1a   :  { %76 = vrot.lane.b32.xlu0 %v75_v9, %s361_s15  ;;  %v147_v18 = vld [vmem:[#allocation0] sm:$0x3]  }
  0x1b   :  { %84 = vrot.lane.b32.xlu1 %v83_v10, %s362_s16  ;;  %v155_v19 = vld [vmem:[#allocation0] sm:$0x3]  }
  0x1c   :  { %v163_v20 = vld [vmem:[#allocation0] sm:$0x3]  }
  0x1d   :  { %v171_v21 = vld [vmem:[#allocation0] sm:$0x3]  }
  0x1e   :  { %92 = vrot.lane.b32.xlu0 %v91_v11, %s363_s17  ;;  %v179_v22 = vld [vmem:[#allocation0] sm:$0x3]  }
  0x1f   :  { %100 = vrot.lane.b32.xlu1 %v99_v12, %s364_s18  ;;  %v187_v23 = vld [vmem:[#allocation0] sm:$0x3]  }
  0x20   :  { %v195_v24 = vld [vmem:[#allocation0] sm:$0x3]  }
  0x21   :  { %v203_v25 = vld [vmem:[#allocation0] sm:$0x3]  }
  0x22   :  { %108 = vrot.lane.b32.xlu0 %v107_v13, %s365_s19  ;;  %v211_v26 = vld [vmem:[#allocation0] sm:$0x3]  }
  0x23   :  { %116 = vrot.lane.b32.xlu1 %v115_v14, %s366_s20  ;;  %v6_v27 = vld [vmem:[#allocation0] sm:$0x3]  }
  0x24   :  { %8 = vst.msk [vmem:[%s654_s1] sm:$0x1] %vm7_vm0, %v6_v27   ;;  %259 = vst.msk [vmem:[%s654_s1 + $0x1f] sm:$0x2] %vm7_vm0, %v6_v27   ;;  %v219_v28 = vld [vmem:[#allocation0] sm:$0x3]  }
  0x25   :  { %v227_v29 = vld [vmem:[#allocation0] sm:$0x3]  }
  0x26   :  { %124 = vrot.lane.b32.xlu0 %v123_v15, %s367_s21  ;;  %v235_v30 = vld [vmem:[#allocation0] sm:$0x3]  }
  0x27   :  { %132 = vrot.lane.b32.xlu1 %v131_v16, %s368_s22  ;;  %v243_v31 = vld [vmem:[#allocation0] sm:$0x3]  }
  0x28   :  { %v251_v32 = vld [vmem:[#allocation0] sm:$0x3]  }
  0x2a   :  { %140 = vrot.lane.b32.xlu0 %v139_v17, %s369_s23 }
  0x2b   :  { %148 = vrot.lane.b32.xlu1 %v147_v18, %s370_s24 }
  0x2e   :  { %156 = vrot.lane.b32.xlu0 %v155_v19, %s371_s25 }
  0x2f   :  { %164 = vrot.lane.b32.xlu1 %v163_v20, %s372_s26 }
  0x32   :  { %172 = vrot.lane.b32.xlu0 %v171_v21, %s373_s27 }
  0x33   :  { %180 = vrot.lane.b32.xlu1 %v179_v22, %s374_s28 }
  0x36   :  { %188 = vrot.lane.b32.xlu0 %v187_v23, %s375_s29 }
  0x37   :  { %196 = vrot.lane.b32.xlu1 %v195_v24, %s376_s30 }
  0x3a   :  { %204 = vrot.lane.b32.xlu0 %v203_v25, %s377_s6 }
  0x3b   :  { %212 = vrot.lane.b32.xlu1 %v211_v26, %s378_s7 }
  0x3e   :  { %220 = vrot.lane.b32.xlu0 %v219_v28, %s379_s0 }
  0x3f   :  { %228 = vrot.lane.b32.xlu1 %v227_v29, %s380_s8 }
  0x42   :  { %236 = vrot.lane.b32.xlu0 %v235_v30, %s381_s9 }
  0x43   :  { %244 = vrot.lane.b32.xlu1 %v243_v31, %s382_s10 }
  0x46   :  { %252 = vrot.lane.b32.xlu0 %v251_v32, %s383_s11 }
  0x7c   :  { %v13_v33 = vpop.permute.xlu0 %12  }
  0x7d   :  { %v29_v34 = vpop.permute.xlu1 %28   ;;  %260 = vst.msk [vmem:[%s654_s1 + $0x1] sm:$0x1] %vm7_vm0, %v13_v33   ;;  %261 = vst.msk [vmem:[%s654_s1 + $0x20] sm:$0x2] %vm7_vm0, %v13_v33  }
  0x7e   :  { %264 = vst.msk [vmem:[%s654_s1 + $0x3] sm:$0x1] %vm7_vm0, %v29_v34   ;;  %265 = vst.msk [vmem:[%s654_s1 + $0x22] sm:$0x2] %vm7_vm0, %v29_v34  }
  0x80   :  { %v21_v35 = vpop.permute.xlu0 %20  }
  0x81   :  { %v37_v36 = vpop.permute.xlu1 %36   ;;  %262 = vst.msk [vmem:[%s654_s1 + $0x2] sm:$0x1] %vm7_vm0, %v21_v35   ;;  %263 = vst.msk [vmem:[%s654_s1 + $0x21] sm:$0x2] %vm7_vm0, %v21_v35  }
  0x82   :  { %266 = vst.msk [vmem:[%s654_s1 + $0x4] sm:$0x1] %vm7_vm0, %v37_v36   ;;  %267 = vst.msk [vmem:[%s654_s1 + $0x23] sm:$0x2] %vm7_vm0, %v37_v36  }
  0x84   :  { %v45_v37 = vpop.permute.xlu0 %44  }
  0x85   :  { %v53_v38 = vpop.permute.xlu1 %52   ;;  %268 = vst.msk [vmem:[%s654_s1 + $0x5] sm:$0x1] %vm7_vm0, %v45_v37   ;;  %269 = vst.msk [vmem:[%s654_s1 + $0x24] sm:$0x2] %vm7_vm0, %v45_v37  }
  0x86   :  { %270 = vst.msk [vmem:[%s654_s1 + $0x6] sm:$0x1] %vm7_vm0, %v53_v38   ;;  %271 = vst.msk [vmem:[%s654_s1 + $0x25] sm:$0x2] %vm7_vm0, %v53_v38  }
  0x88   :  { %v61_v39 = vpop.permute.xlu0 %60  }
  0x89   :  { %v69_v40 = vpop.permute.xlu1 %68   ;;  %272 = vst.msk [vmem:[%s654_s1 + $0x7] sm:$0x1] %vm7_vm0, %v61_v39   ;;  %273 = vst.msk [vmem:[%s654_s1 + $0x26] sm:$0x2] %vm7_vm0, %v61_v39  }
  0x8a   :  { %274 = vst.msk [vmem:[%s654_s1 + $0x8] sm:$0x1] %vm7_vm0, %v69_v40   ;;  %275 = vst.msk [vmem:[%s654_s1 + $0x27] sm:$0x2] %vm7_vm0, %v69_v40  }
  0x8c   :  { %v77_v41 = vpop.permute.xlu0 %76  }
  0x8d   :  { %v85_v42 = vpop.permute.xlu1 %84   ;;  %276 = vst.msk [vmem:[%s654_s1 + $0x9] sm:$0x1] %vm7_vm0, %v77_v41   ;;  %277 = vst.msk [vmem:[%s654_s1 + $0x28] sm:$0x2] %vm7_vm0, %v77_v41  }
  0x8e   :  { %278 = vst.msk [vmem:[%s654_s1 + $0xa] sm:$0x1] %vm7_vm0, %v85_v42   ;;  %279 = vst.msk [vmem:[%s654_s1 + $0x29] sm:$0x2] %vm7_vm0, %v85_v42  }
  0x90   :  { %v93_v43 = vpop.permute.xlu0 %92  }
  0x91   :  { %v101_v44 = vpop.permute.xlu1 %100   ;;  %280 = vst.msk [vmem:[%s654_s1 + $0xb] sm:$0x1] %vm7_vm0, %v93_v43   ;;  %281 = vst.msk [vmem:[%s654_s1 + $0x2a] sm:$0x2] %vm7_vm0, %v93_v43  }
  0x92   :  { %282 = vst.msk [vmem:[%s654_s1 + $0xc] sm:$0x1] %vm7_vm0, %v101_v44   ;;  %283 = vst.msk [vmem:[%s654_s1 + $0x2b] sm:$0x2] %vm7_vm0, %v101_v44  }
  0x94   :  { %v109_v45 = vpop.permute.xlu0 %108  }
  0x95   :  { %v117_v46 = vpop.permute.xlu1 %116   ;;  %284 = vst.msk [vmem:[%s654_s1 + $0xd] sm:$0x1] %vm7_vm0, %v109_v45   ;;  %285 = vst.msk [vmem:[%s654_s1 + $0x2c] sm:$0x2] %vm7_vm0, %v109_v45  }
  0x96   :  { %286 = vst.msk [vmem:[%s654_s1 + $0xe] sm:$0x1] %vm7_vm0, %v117_v46   ;;  %287 = vst.msk [vmem:[%s654_s1 + $0x2d] sm:$0x2] %vm7_vm0, %v117_v46  }
  0x98   :  { %v125_v47 = vpop.permute.xlu0 %124  }
  0x99   :  { %v133_v48 = vpop.permute.xlu1 %132   ;;  %288 = vst.msk [vmem:[%s654_s1 + $0xf] sm:$0x1] %vm7_vm0, %v125_v47   ;;  %289 = vst.msk [vmem:[%s654_s1 + $0x2e] sm:$0x2] %vm7_vm0, %v125_v47  }
  0x9a   :  { %290 = vst.msk [vmem:[%s654_s1 + $0x10] sm:$0x1] %vm7_vm0, %v133_v48   ;;  %291 = vst.msk [vmem:[%s654_s1 + $0x2f] sm:$0x2] %vm7_vm0, %v133_v48  }
  0x9c   :  { %v141_v49 = vpop.permute.xlu0 %140  }
  0x9d   :  { %v149_v50 = vpop.permute.xlu1 %148   ;;  %292 = vst.msk [vmem:[%s654_s1 + $0x11] sm:$0x1] %vm7_vm0, %v141_v49   ;;  %293 = vst.msk [vmem:[%s654_s1 + $0x30] sm:$0x2] %vm7_vm0, %v141_v49  }
  0x9e   :  { %294 = vst.msk [vmem:[%s654_s1 + $0x12] sm:$0x1] %vm7_vm0, %v149_v50   ;;  %295 = vst.msk [vmem:[%s654_s1 + $0x31] sm:$0x2] %vm7_vm0, %v149_v50  }
  0xa0   :  { %v157_v51 = vpop.permute.xlu0 %156  }
  0xa1   :  { %v165_v52 = vpop.permute.xlu1 %164   ;;  %296 = vst.msk [vmem:[%s654_s1 + $0x13] sm:$0x1] %vm7_vm0, %v157_v51   ;;  %297 = vst.msk [vmem:[%s654_s1 + $0x32] sm:$0x2] %vm7_vm0, %v157_v51  }
  0xa2   :  { %298 = vst.msk [vmem:[%s654_s1 + $0x14] sm:$0x1] %vm7_vm0, %v165_v52   ;;  %299 = vst.msk [vmem:[%s654_s1 + $0x33] sm:$0x2] %vm7_vm0, %v165_v52  }
  0xa4   :  { %v173_v53 = vpop.permute.xlu0 %172  }
  0xa5   :  { %v181_v54 = vpop.permute.xlu1 %180   ;;  %300 = vst.msk [vmem:[%s654_s1 + $0x15] sm:$0x1] %vm7_vm0, %v173_v53   ;;  %301 = vst.msk [vmem:[%s654_s1 + $0x34] sm:$0x2] %vm7_vm0, %v173_v53  }
  0xa6   :  { %302 = vst.msk [vmem:[%s654_s1 + $0x16] sm:$0x1] %vm7_vm0, %v181_v54   ;;  %303 = vst.msk [vmem:[%s654_s1 + $0x35] sm:$0x2] %vm7_vm0, %v181_v54  }
  0xa8   :  { %v189_v55 = vpop.permute.xlu0 %188  }
  0xa9   :  { %v197_v56 = vpop.permute.xlu1 %196   ;;  %304 = vst.msk [vmem:[%s654_s1 + $0x17] sm:$0x1] %vm7_vm0, %v189_v55   ;;  %305 = vst.msk [vmem:[%s654_s1 + $0x36] sm:$0x2] %vm7_vm0, %v189_v55  }
  0xaa   :  { %306 = vst.msk [vmem:[%s654_s1 + $0x18] sm:$0x1] %vm7_vm0, %v197_v56   ;;  %307 = vst.msk [vmem:[%s654_s1 + $0x37] sm:$0x2] %vm7_vm0, %v197_v56  }
  0xac   :  { %v205_v57 = vpop.permute.xlu0 %204  }
  0xad   :  { %v213_v58 = vpop.permute.xlu1 %212   ;;  %308 = vst.msk [vmem:[%s654_s1 + $0x19] sm:$0x1] %vm7_vm0, %v205_v57   ;;  %309 = vst.msk [vmem:[%s654_s1 + $0x38] sm:$0x2] %vm7_vm0, %v205_v57  }
  0xae   :  { %310 = vst.msk [vmem:[%s654_s1 + $0x1a] sm:$0x1] %vm7_vm0, %v213_v58   ;;  %311 = vst.msk [vmem:[%s654_s1 + $0x39] sm:$0x2] %vm7_vm0, %v213_v58  }
  0xb0   :  { %v221_v59 = vpop.permute.xlu0 %220  }
  0xb1   :  { %v229_v60 = vpop.permute.xlu1 %228   ;;  %312 = vst.msk [vmem:[%s654_s1 + $0x1b] sm:$0x1] %vm7_vm0, %v221_v59   ;;  %313 = vst.msk [vmem:[%s654_s1 + $0x3a] sm:$0x2] %vm7_vm0, %v221_v59  }
  0xb2   :  { %314 = vst.msk [vmem:[%s654_s1 + $0x1c] sm:$0x1] %vm7_vm0, %v229_v60   ;;  %315 = vst.msk [vmem:[%s654_s1 + $0x3b] sm:$0x2] %vm7_vm0, %v229_v60  }
  0xb4   :  { %v237_v61 = vpop.permute.xlu0 %236  }
  0xb5   :  { %v245_v62 = vpop.permute.xlu1 %244   ;;  %316 = vst.msk [vmem:[%s654_s1 + $0x1d] sm:$0x1] %vm7_vm0, %v237_v61   ;;  %317 = vst.msk [vmem:[%s654_s1 + $0x3c] sm:$0x2] %vm7_vm0, %v237_v61  }
  0xb6   :  { %318 = vst.msk [vmem:[%s654_s1 + $0x1e] sm:$0x1] %vm7_vm0, %v245_v62   ;;  %319 = vst.msk [vmem:[%s654_s1 + $0x3d] sm:$0x2] %vm7_vm0, %v245_v62  }
  0xb8   :  { %v253_v63 = vpop.permute.xlu0 %252  }
  0xb9   :  { %320 = vst.msk [vmem:[%s654_s1 + $0x1f] sm:$0x1] %vm7_vm0, %v253_v63   ;;  %321 = vst.msk [vmem:[%s654_s1 + $0x3e] sm:$0x2] %vm7_vm0, %v253_v63  }

// kernel: qwen_mlm_forward.5
= control target key start
LH: loop header
LB: loop body
LE: loop exit
PB: predicated region body
PF: predicated region fallthrough
CT: control target
= control target key end

     0   :  { %12 = vsyncpa [#allocation3], 0  ;;  %s1311_s0 = inlined_call_operand.vmem [shape: bf16[64,128], index: 0, kind: input, shape index: {}]   ;;  %s1312_s1 = inlined_call_operand.vmem [shape: bf16[1,128], index: 1, kind: input, shape index: {}]   ;;  %s1313_s2 = inlined_call_operand.vmem [shape: bf16[128,256], index: 2, kind: input, shape index: {}]   ;;  %s1314_s3 = inlined_call_operand.vmem [shape: s32[64,1], index: 3, kind: input, shape index: {}]   ;;  %s1315_s4 = inlined_call_operand.vmem [shape: f32[64,1], index: 4, kind: input, shape index: {}]   ;;  %s1316_s5 = inlined_call_operand.hbm [shape: bf16[64,256], index: 5, kind: output, shape index: {0}]   ;;  %s1317_s6 = inlined_call_operand.hbm [shape: f32[1,1], index: 6, kind: output, shape index: {1}]  }
   0x1   :  { %v734_v0 = vld [vmem:[%s1311_s0 + $0x8] sm:$0xff]   ;;  %v719_v1 = vld [vmem:[%s1311_s0] sm:$0xff]   ;;  %v735_v6 = vld [vmem:[%s1311_s0 + $0x10] sm:$0xff]  }
   0x2   :  { %v944_v2 = vunpack.c.l.bf16 %v734_v0  ;;  %v946_v3 = vunpack.c.l.bf16 %v719_v1  ;;  %v948_v4 = vunpack.c.h.bf16 %v734_v0  ;;  %v950_v5 = vunpack.c.h.bf16 %v719_v1  ;;  %v761_v7 = vld [vmem:[%s1313_s2 + $0x4] ss:$8 sps:$4 sm:$0xff]   ;;  %v763_v8 = vld [vmem:[%s1313_s2] ss:$8 sps:$4 sm:$0xff]   ;;  %v764_v11 = vld [vmem:[%s1313_s2 + $0x14] ss:$8 sps:$4 sm:$0xff]  }
   0x3   :  { %v736_v12 = vld [vmem:[%s1311_s0 + $0x18] sm:$0xff]   ;;  %218 = vmatprep.subr.bf16.mxu0 %v761_v7  ;;  %v978_v16 = vunpack.c.h.bf16 %v735_v6  ;;  %v980_v17 = vunpack.c.l.bf16 %v735_v6  ;;  %737 = vmatprep.subr.bf16.mxu1 %v761_v7 }
   0x4   :  { %v49_v9 = vmul.f32 %v944_v2, %v944_v2  ;;  %v47_v10 = vmul.f32 %v946_v3, %v946_v3  ;;  %v766_v13 = vld [vmem:[%s1313_s2 + $0x10] ss:$8 sps:$4 sm:$0xff]   ;;  %v50_v14 = vmul.f32 %v948_v4, %v948_v4  ;;  %v48_v15 = vmul.f32 %v950_v5, %v950_v5  ;;  %219 = vmatpush1.bf16.msra.mxu0 %v763_v8 }
   0x5   :  { %220 = vmatprep.subr.bf16.mxu0 %v764_v11  ;;  %745 = vmatpush1.bf16.msra.mxu1 %v763_v8 }
   0x6   :  { %59 = vadd.xlane.f32.xlu1 %v49_v9  ;;  %55 = vadd.xlane.f32.xlu0 %v47_v10 }
   0x7   :  { %738 = vmatprep.subr.bf16.mxu1 %v764_v11 }
   0x8   :  { %13 = vsyncpa [#allocation5], 0  ;;  %v52_v18 = vmul.f32 %v978_v16, %v978_v16  ;;  %v51_v19 = vmul.f32 %v980_v17, %v980_v17  ;;  %v986_v20 = vunpack.c.h.bf16 %v736_v12  ;;  %v988_v21 = vunpack.c.l.bf16 %v736_v12  ;;  %221 = vmatpush1.bf16.msra.mxu0 %v766_v13  ;;  %v767_v24 = vld [vmem:[%s1313_s2 + $0x24] ss:$8 sps:$4 sm:$0xff]   ;;  %v769_v25 = vld [vmem:[%s1313_s2 + $0x20] ss:$8 sps:$4 sm:$0xff]  }
   0x9   :  { %746 = vmatpush1.bf16.msra.mxu1 %v766_v13  ;;  %222 = vmatprep.subr.bf16.mxu0 %v767_v24  ;;  %v770_v26 = vld [vmem:[%s1313_s2 + $0x34] ss:$8 sps:$4 sm:$0xff]   ;;  %v772_v27 = vld [vmem:[%s1313_s2 + $0x30] ss:$8 sps:$4 sm:$0xff]   ;;  %v773_v28 = vld [vmem:[%s1313_s2 + $0x44] ss:$8 sps:$4 sm:$0xff]   ;;  %v106_v48 = vlaneseq }
   0xa   :  { %61 = vadd.xlane.f32.xlu1 %v50_v14  ;;  %57 = vadd.xlane.f32.xlu0 %v48_v15  ;;  %v54_v22 = vmul.f32 %v986_v20, %v986_v20  ;;  %v53_v23 = vmul.f32 %v988_v21, %v988_v21  ;;  %v775_v29 = vld [vmem:[%s1313_s2 + $0x40] ss:$8 sps:$4 sm:$0xff]   ;;  %v776_v30 = vld [vmem:[%s1313_s2 + $0x54] ss:$8 sps:$4 sm:$0xff]   ;;  %v778_v31 = vld [vmem:[%s1313_s2 + $0x50] ss:$8 sps:$4 sm:$0xff]  }
   0xb   :  { %739 = vmatprep.subr.bf16.mxu1 %v767_v24  ;;  %v779_v32 = vld [vmem:[%s1313_s2 + $0x64] ss:$8 sps:$4 sm:$0xff]   ;;  %v781_v33 = vld [vmem:[%s1313_s2 + $0x60] ss:$8 sps:$4 sm:$0xff]   ;;  %v782_v34 = vld [vmem:[%s1313_s2 + $0x74] ss:$8 sps:$4 sm:$0xff]  }
   0xc   :  { %223 = vmatpush1.bf16.msra.mxu0 %v769_v25  ;;  %v784_v35 = vld [vmem:[%s1313_s2 + $0x70] ss:$8 sps:$4 sm:$0xff]   ;;  %v897_v36 = vmov 0   ;;  %v107_v56 = vshrl.u32 %v106_v48, 7  ;;  %v104_v59 = vld [vmem:[%s1312_s1] sm:$0x1] }
   0xd   :  { %747 = vmatpush1.bf16.msra.mxu1 %v769_v25  ;;  %224 = vmatprep.subr.bf16.mxu0 %v770_v26  ;;  %v105_v0 = vunpack.c.l.bf16 %v104_v59 }
   0xe   :  { %65 = vadd.xlane.f32.xlu1 %v52_v18  ;;  %63 = vadd.xlane.f32.xlu0 %v51_v19  ;;  %v108_v1 = vsub.s32 0, %v107_v56 }
   0xf   :  { %740 = vmatprep.subr.bf16.mxu1 %v770_v26  ;;  %250 = vmatprep.mubr.bf16.mxu0 %v897_v36 }
  0x10   :  { %225 = vmatpush1.bf16.msra.mxu0 %v772_v27  ;;  %270 = vmatprep.mubr.bf16.mxu1 %v897_v36  ;;  %v109_v8 = vrot.slane %v105_v0, %v108_v1  ;;  %v471_v0 = vld [vmem:[%s1314_s3 + $0x8] sm:$0xff]  ;;  %v472_v1 = vld [vmem:[%s1314_s3 + $0x10] sm:$0xff] }
  0x11   :  { %748 = vmatpush1.bf16.msra.mxu1 %v772_v27  ;;  %226 = vmatprep.subr.bf16.mxu0 %v773_v28 }
  0x12   :  { %69 = vadd.xlane.f32.xlu1 %v54_v22  ;;  %67 = vadd.xlane.f32.xlu0 %v53_v23 }
  0x13   :  { %741 = vmatprep.subr.bf16.mxu1 %v773_v28  ;;  %760 = vset.pattern.permute.xlu1 %v897_v36 }
  0x14   :  { %227 = vmatpush1.bf16.msra.mxu0 %v775_v29  ;;  %759 = vset.pattern.permute.xlu0 %v897_v36 }
  0x15   :  { %749 = vmatpush1.bf16.msra.mxu1 %v775_v29  ;;  %228 = vmatprep.subr.bf16.mxu0 %v776_v30 }
  0x16   :  { %742 = vmatprep.subr.bf16.mxu1 %v776_v30 }
  0x18   :  { %229 = vmatpush1.bf16.msra.mxu0 %v778_v31 }
  0x19   :  { %750 = vmatpush1.bf16.msra.mxu1 %v778_v31  ;;  %230 = vmatprep.subr.bf16.mxu0 %v779_v32 }
  0x1a   :  { %743 = vmatprep.subr.bf16.mxu1 %v779_v32 }
  0x1c   :  { %231 = vmatpush1.bf16.msra.mxu0 %v781_v33 }
  0x1d   :  { %751 = vmatpush1.bf16.msra.mxu1 %v781_v33  ;;  %232 = vmatprep.subr.bf16.mxu0 %v782_v34 }
  0x1e   :  { %744 = vmatprep.subr.bf16.mxu1 %v782_v34 }
  0x20   :  { %233 = vmatpush1.bf16.msra.mxu0 %v784_v35 }
  0x21   :  { %752 = vmatpush1.bf16.msra.mxu1 %v784_v35 }
  0x93   :  { %v60_v37 = vpop.xlane.xlu1 %59  ;;  %v56_v38 = vpop.xlane.xlu0 %55 }
  0x94   :  { %v72_v39 = vmul.f32 0.0078125, %v56_v38  ;;  %v74_v40 = vmul.f32 0.0078125, %v60_v37 }
  0x96   :  { %v80_v41 = vadd.f32 1e-06, %v72_v39  ;;  %v82_v46 = vadd.f32 1e-06, %v74_v40 }
  0x97   :  { %v62_v42 = vpop.xlane.xlu1 %61  ;;  %v58_v43 = vpop.xlane.xlu0 %57 }
  0x98   :  { %v75_v44 = vmul.f32 0.0078125, %v62_v42  ;;  %v73_v45 = vmul.f32 0.0078125, %v58_v43  ;;  %785 = vrsqrt.f32 %v80_v41 }
  0x9a   :  { %v81_v47 = vadd.f32 1e-06, %v73_v45  ;;  %v83_v49 = vadd.f32 1e-06, %v75_v44 }
  0x9b   :  { %v66_v50 = vpop.xlane.xlu1 %65  ;;  %v64_v51 = vpop.xlane.xlu0 %63 }
  0x9c   :  { %v77_v52 = vmul.f32 0.0078125, %v66_v50  ;;  %v76_v53 = vmul.f32 0.0078125, %v64_v51  ;;  %787 = vrsqrt.f32 %v81_v47 }
  0x9d   :  { %789 = vrsqrt.f32 %v82_v46 }
  0x9e   :  { %v85_v54 = vadd.f32 1e-06, %v77_v52  ;;  %v84_v55 = vadd.f32 1e-06, %v76_v53  ;;  %791 = vrsqrt.f32 %v83_v49 }
  0x9f   :  { %v70_v57 = vpop.xlane.xlu1 %69  ;;  %v68_v58 = vpop.xlane.xlu0 %67 }
  0xa0   :  { %793 = vrsqrt.f32 %v85_v54  ;;  %v79_v60 = vmul.f32 0.0078125, %v70_v57  ;;  %v78_v61 = vmul.f32 0.0078125, %v68_v58 }
  0xa1   :  { %795 = vrsqrt.f32 %v84_v55 }
  0xa2   :  { %v87_v62 = vadd.f32 1e-06, %v79_v60  ;;  %v86_v63 = vadd.f32 1e-06, %v78_v61  ;;  %v786_v6 = vpop.eup %785 }
  0xa3   :  { %v96_v7 = vmul.f32 %v786_v6, %v946_v3  ;;  %v473_v6 = vld [vmem:[%s1314_s3 + $0x18] sm:$0xff] }
  0xa4   :  { %797 = vrsqrt.f32 %v87_v62 }
  0xa5   :  { %799 = vrsqrt.f32 %v86_v63  ;;  %v110_v14 = vmul.f32 %v109_v8, %v96_v7  ;;  %v470_v7 = vld [vmem:[%s1314_s3] sm:$0xff] }
  0xa6   :  { %v788_v9 = vpop.eup %787 }
  0xa7   :  { %v790_v10 = vpop.eup %789  ;;  %v97_v11 = vmul.f32 %v788_v9, %v950_v5  ;;  %v475_v9 = vld [vmem:[%s1314_s3 + $0x28] sm:$0xff] }
  0xa8   :  { %v792_v12 = vpop.eup %791  ;;  %v98_v27 = vmul.f32 %v790_v10, %v944_v2  ;;  %v476_v10 = vld [vmem:[%s1314_s3 + $0x30] sm:$0xff] }
  0xa9   :  { %v111_v15 = vmul.f32 %v109_v8, %v97_v11  ;;  %v99_v24 = vmul.f32 %v792_v12, %v948_v4 }
  0xaa   :  { %v794_v13 = vpop.eup %793  ;;  %v112_v31 = vmul.f32 %v109_v8, %v98_v27 }
  0xab   :  { %v796_v18 = vpop.eup %795  ;;  %v101_v19 = vmul.f32 %v794_v13, %v978_v16  ;;  %v118_v22 = vpack.c.bf16 %v111_v15, %v110_v14  ;;  %v113_v30 = vmul.f32 %v109_v8, %v99_v24  ;;  %v477_v14 = vld [vmem:[%s1314_s3 + $0x38] sm:$0xff] }
  0xac   :  { %v100_v23 = vmul.f32 %v796_v18, %v980_v17  ;;  %v1145_v18 = vand.u32 127, %v106_v48 }
  0xad   :  { %v115_v25 = vmul.f32 %v109_v8, %v101_v19  ;;  %251 = vmatmul.mubr.bf16.vlgmr.msra.gmra.mrb[0].mxu0 %v118_v22  ;;  %v119_v4 = vpack.c.bf16 %v113_v30, %v112_v31 }
  0xae   :  { %v798_v26 = vpop.eup %797  ;;  %v114_v3 = vmul.f32 %v109_v8, %v100_v23  ;;  %260 = vmatprep.mubr.bf16.mxu0 %v897_v36 }
  0xaf   :  { %v800_v28 = vpop.eup %799  ;;  %v103_v5 = vmul.f32 %v798_v26, %v986_v20 }
  0xb0   :  { %v120_v29 = vpack.c.bf16 %v115_v25, %v114_v3  ;;  %v102_v16 = vmul.f32 %v800_v28, %v988_v21 }
  0xb1   :  { %v117_v32 = vmul.f32 %v109_v8, %v103_v5  ;;  %v1160_v5 = vadd.s32 128, %v1145_v18 }
  0xb2   :  { %271 = vmatmul.mubr.bf16.vlgmr.msra.gmra.mrb[0].mxu1 %v120_v29  ;;  %v116_v17 = vmul.f32 %v109_v8, %v102_v16  ;;  %v474_v8 = vld [vmem:[%s1314_s3 + $0x20] sm:$0xff]  ;;  %s899_s3 = smov [#allocation2]  }
  0xb3   :  { %280 = vmatprep.mubr.bf16.mxu1 %v897_v36  ;;  %s645_s27 = sshll.u32 %s899_s3, 4  ;;  %s646_s27 = int_to_ptr.vmem [resolvable:$true] %s645_s27 }
  0xb4   :  { %v121_v33 = vpack.c.bf16 %v117_v32, %v116_v17  ;;  %s849_s28 = scalar_lea.vmem %s646_s27, 1024  ;;  %p854_p1 = scmp.lt.s32.totalorder %s646_s27, %s646_s27 }
  0xb5   :  { %261 = vmatmul.mubr.bf16.gmra.mrb[4].mxu0 %v119_v4  ;;  %p850_p0 = scmp.ne.s32.totalorder %s646_s27, %s849_s28  ;;  %p855_p2 = scmp.lt.s32.totalorder %s849_s28, %s849_s28 }
  0xb7   :  { %p856_p3 = por %p855_p2, %p854_p1 }
  0xb9   :  { %p857_p4 = pnand %p856_p3, %p850_p0 }
  0xba   :  { %281 = vmatmul.mubr.bf16.gmra.mrb[4].mxu1 %v121_v33 }
 0x180   :  { %v1048_v2 = vpop.f32.mrb[0].mxu0 }
 0x181   :  { %v1050_v34 = vpop.f32.mrb[1].mxu0 }
 0x182   :  { %v710_v20 = vpack.c.bf16 %v1050_v34, %v1048_v2  ;;  %v1054_v35 = vpop.f32.mrb[2].mxu0  ;;  %v347_v21 = vmax.f32 %v1048_v2, %v1050_v34 }
 0x183   :  { %v1058_v37 = vpop.f32.mrb[3].mxu0 }
 0x184   :  { %339 = vst [vmem:[#allocation2] sm:$0xff] %v710_v20  ;;  %v711_v36 = vpack.c.bf16 %v1058_v37, %v1054_v35  ;;  %348 = vmax.xlane.f32.xlu0 %v347_v21  ;;  %v350_v39 = vmax.f32 %v1054_v35, %v1058_v37 }
 0x185   :  { %v1062_v38 = vpop.f32.mrb[0].mxu1 }
 0x186   :  { %v1066_v40 = vpop.f32.mrb[1].mxu1  ;;  %340 = vst [vmem:[#allocation2 + $0x8] sm:$0xff] %v711_v36  ;;  %351 = vmax.xlane.f32.xlu1 %v350_v39 }
 0x187   :  { %v714_v41 = vpack.c.bf16 %v1066_v40, %v1062_v38  ;;  %v1070_v42 = vpop.f32.mrb[2].mxu1  ;;  %v359_v43 = vmax.f32 %v1062_v38, %v1066_v40 }
 0x188   :  { %v1074_v44 = vpop.f32.mrb[3].mxu1  ;;  %v1078_v46 = vpop.f32.mrb[4].mxu0 }
 0x189   :  { %343 = vst [vmem:[#allocation2 + $0x20] sm:$0xff] %v714_v41  ;;  %v715_v45 = vpack.c.bf16 %v1074_v44, %v1070_v42  ;;  %360 = vmax.xlane.f32.xlu0 %v359_v43  ;;  %v362_v47 = vmax.f32 %v1070_v42, %v1074_v44  ;;  %v1082_v49 = vpop.f32.mrb[5].mxu0  ;;  %v898_v41 = vmov 0.0  }
 0x18a   :  { %v712_v50 = vpack.c.bf16 %v1082_v49, %v1078_v46  ;;  %v1086_v51 = vpop.f32.mrb[6].mxu0  ;;  %v353_v52 = vmax.f32 %v1078_v46, %v1082_v49 }
 0x18b   :  { %344 = vst [vmem:[#allocation2 + $0x28] sm:$0xff] %v715_v45  ;;  %363 = vmax.xlane.f32.xlu1 %v362_v47  ;;  %v1090_v53 = vpop.f32.mrb[7].mxu0 }
 0x18c   :  { %341 = vst [vmem:[#allocation2 + $0x10] sm:$0xff] %v712_v50  ;;  %v713_v54 = vpack.c.bf16 %v1090_v53, %v1086_v51  ;;  %v356_v56 = vmax.f32 %v1086_v51, %v1090_v53 }
 0x18d   :  { %354 = vmax.xlane.f32.xlu0 %v353_v52  ;;  %v1094_v55 = vpop.f32.mrb[4].mxu1 }
 0x18e   :  { %v1098_v57 = vpop.f32.mrb[5].mxu1  ;;  %342 = vst [vmem:[#allocation2 + $0x18] sm:$0xff] %v713_v54 }
 0x18f   :  { %v716_v58 = vpack.c.bf16 %v1098_v57, %v1094_v55  ;;  %v365_v59 = vmax.f32 %v1094_v55, %v1098_v57  ;;  %v1104_v60 = vpop.f32.mrb[6].mxu1 }
 0x190   :  { %v1106_v61 = vpop.f32.mrb[7].mxu1 }
 0x191   :  { %345 = vst [vmem:[#allocation2 + $0x30] sm:$0xff] %v716_v58  ;;  %366 = vmax.xlane.f32.xlu0 %v365_v59  ;;  %v717_v62 = vpack.c.bf16 %v1106_v61, %v1104_v60  ;;  %v368_v63 = vmax.f32 %v1104_v60, %v1106_v61 }
 0x193   :  { %346 = vst [vmem:[#allocation2 + $0x38] sm:$0xff] %v717_v62 }
 0x19c   :  { %482 = vperm.xlu1 %760, %v471_v0  }
 0x1a0   :  { %485 = vperm.xlu1 %760, %v472_v1  }
 0x1a4   :  { %488 = vperm.xlu1 %760, %v473_v6  }
 0x1a7   :  { %479 = vperm.xlu0 %759, %v470_v7  }
 0x1a8   :  { %491 = vperm.xlu1 %760, %v474_v8  }
 0x1ac   :  { %494 = vperm.xlu1 %760, %v475_v9  }
 0x1d0   :  { %357 = vmax.xlane.f32.xlu1 %v356_v56 }
 0x1e1   :  { %497 = vperm.xlu1 %760, %v476_v10  }
 0x205   :  { %369 = vmax.xlane.f32.xlu1 %v368_v63 }
 0x211   :  { %v1133_v11 = vpop.xlane.xlu0 %348 }
 0x212   :  { %v371_v12 = vsub.f32 %v1048_v2, %v1133_v11  ;;  %v372_v13 = vsub.f32 %v1050_v34, %v1133_v11 }
 0x213   :  { %v1142_v15 = vpop.xlane.xlu1 %351 }
 0x214   :  { %v387_v19 = vmul.f32 1.442695, %v371_v12  ;;  %v389_v22 = vmul.f32 1.442695, %v372_v13  ;;  %v373_v23 = vsub.f32 %v1054_v35, %v1142_v15  ;;  %v374_v24 = vsub.f32 %v1058_v37, %v1142_v15 }
 0x216   :  { %500 = vperm.xlu1 %760, %v477_v14   ;;  %v1151_v25 = vpop.xlane.xlu0 %360  ;;  %801 = vpow2.f32 %v387_v19  ;;  %v391_v26 = vmul.f32 1.442695, %v373_v23  ;;  %v393_v3 = vmul.f32 1.442695, %v374_v24 }
 0x217   :  { %v379_v27 = vsub.f32 %v1062_v38, %v1151_v25  ;;  %803 = vpow2.f32 %v389_v22  ;;  %v380_v48 = vsub.f32 %v1066_v40, %v1151_v25 }
 0x218   :  { %v1157_v28 = vpop.xlane.xlu1 %363  ;;  %805 = vpow2.f32 %v391_v26 }
 0x219   :  { %v403_v29 = vmul.f32 1.442695, %v379_v27  ;;  %v381_v30 = vsub.f32 %v1070_v42, %v1157_v28  ;;  %v382_v16 = vsub.f32 %v1074_v44, %v1157_v28  ;;  %807 = vpow2.f32 %v393_v3 }
 0x21a   :  { %v405_v31 = vmul.f32 1.442695, %v380_v48  ;;  %v1166_v17 = vpop.xlane.xlu0 %354 }
 0x21b   :  { %809 = vpow2.f32 %v403_v29  ;;  %v407_v32 = vmul.f32 1.442695, %v381_v30  ;;  %v409_v4 = vmul.f32 1.442695, %v382_v16  ;;  %v375_v33 = vsub.f32 %v1078_v46, %v1166_v17 }
 0x21c   :  { %811 = vpow2.f32 %v405_v31  ;;  %v376_v20 = vsub.f32 %v1082_v49, %v1166_v17  ;;  %v483_v21 = vpop.permute.xlu1 %482 }
 0x21d   :  { %813 = vpow2.f32 %v407_v32  ;;  %v395_v36 = vmul.f32 1.442695, %v375_v33  ;;  %vm504_vm0 = vcmp.eq.s32.totalorder %v1145_v18, %v483_v21  ;;  %vm505_vm1 = vcmp.eq.s32.totalorder %v1160_v5, %v483_v21 }
 0x21e   :  { %815 = vpow2.f32 %v409_v4  ;;  %v397_v39 = vmul.f32 1.442695, %v376_v20  ;;  %v696_v43 = vsel %vm504_vm0, 1.0, %v898_v41  ;;  %v697_v45 = vsel %vm505_vm1, 1.0, %v898_v41  ;;  %v1176_v47 = vpop.xlane.xlu0 %366 }
 0x21f   :  { %817 = vpow2.f32 %v395_v36  ;;  %v383_v50 = vsub.f32 %v1094_v55, %v1176_v47  ;;  %v384_v52 = vsub.f32 %v1098_v57, %v1176_v47  ;;  %v552_v54 = vmul.f32 %v696_v43, %v1054_v35 }
 0x220   :  { %819 = vpow2.f32 %v397_v39  ;;  %v486_v56 = vpop.permute.xlu1 %485  ;;  %v553_v58 = vmul.f32 %v697_v45, %v1058_v37  ;;  %v802_v59 = vpop.eup %801  ;;  %vm29_vm0 = vcmask 0  }
 0x221   :  { %v411_v62 = vmul.f32 1.442695, %v383_v50  ;;  %v413_v63 = vmul.f32 1.442695, %v384_v52  ;;  %vm506_vm2 = vcmp.eq.s32.totalorder %v1145_v18, %v486_v56  ;;  %vm507_vm3 = vcmp.eq.s32.totalorder %v1160_v5, %v486_v56  ;;  %v804_v0 = vpop.eup %803  ;;  %30 = vst.msk [vmem:[#allocation4] sm:$0x1] %vm29_vm0, %v898_v41 }
 0x222   :  { %v698_v1 = vsel %vm506_vm2, 1.0, %v898_v41  ;;  %v699_v6 = vsel %vm507_vm3, 1.0, %v898_v41  ;;  %v1188_v7 = vadd.f32 %v553_v58, %v552_v54  ;;  %v806_v8 = vpop.eup %805  ;;  %v419_v35 = vadd.f32 %v804_v0, %v802_v59 }
 0x223   :  { %821 = vpow2.f32 %v411_v62  ;;  %v554_v9 = vmul.f32 %v698_v1, %v1078_v46  ;;  %v555_v37 = vmul.f32 %v699_v6, %v1082_v49  ;;  %v808_v10 = vpop.eup %807 }
 0x224   :  { %823 = vpow2.f32 %v413_v63  ;;  %v489_v12 = vpop.permute.xlu1 %488  ;;  %v422_v14 = vadd.f32 %v808_v10, %v806_v8 }
 0x225   :  { %v810_v13 = vpop.eup %809  ;;  %vm508_vm4 = vcmp.eq.s32.totalorder %v1145_v18, %v489_v12  ;;  %vm509_vm5 = vcmp.eq.s32.totalorder %v1160_v5, %v489_v12  ;;  %v572_v19 = vadd.f32 %v555_v37, %v554_v9 }
 0x226   :  { %v812_v22 = vpop.eup %811  ;;  %v700_v23 = vsel %vm508_vm4, 1.0, %v898_v41  ;;  %v701_v24 = vsel %vm509_vm5, 1.0, %v898_v41  ;;  %v480_v26 = vpop.permute.xlu0 %479  ;;  %423 = vadd.xlane.f32.xlu0 %v422_v14 }
 0x227   :  { %v814_v3 = vpop.eup %813  ;;  %vm502_vm6 = vcmp.eq.s32.totalorder %v1145_v18, %v480_v26  ;;  %vm503_vm7 = vcmp.eq.s32.totalorder %v1160_v5, %v480_v26  ;;  %v431_v46 = vadd.f32 %v812_v22, %v810_v13  ;;  %v556_v49 = vmul.f32 %v700_v23, %v1086_v51 }
 0x228   :  { %v816_v27 = vpop.eup %815  ;;  %v694_v48 = vsel %vm502_vm6, 1.0, %v898_v41  ;;  %v695_v29 = vsel %vm503_vm7, 1.0, %v898_v41  ;;  %v492_v30 = vpop.permute.xlu1 %491  ;;  %v557_v16 = vmul.f32 %v701_v24, %v1090_v53 }
 0x229   :  { %v818_v31 = vpop.eup %817  ;;  %vm510_vm8 = vcmp.eq.s32.totalorder %v1145_v18, %v492_v30  ;;  %vm511_vm9 = vcmp.eq.s32.totalorder %v1160_v5, %v492_v30  ;;  %v550_v32 = vmul.f32 %v694_v48, %v1048_v2  ;;  %v551_v4 = vmul.f32 %v695_v29, %v1050_v34 }
 0x22a   :  { %v820_v33 = vpop.eup %819  ;;  %v702_v20 = vsel %vm510_vm8, 1.0, %v898_v41  ;;  %v703_v21 = vsel %vm511_vm9, 1.0, %v898_v41  ;;  %v434_v36 = vadd.f32 %v816_v27, %v814_v3  ;;  %v1208_v39 = vadd.f32 %v557_v16, %v556_v49 }
 0x22b   :  { %v425_v43 = vadd.f32 %v820_v33, %v818_v31  ;;  %v566_v45 = vadd.f32 %v551_v4, %v550_v32  ;;  %v558_v50 = vmul.f32 %v702_v20, %v1062_v38  ;;  %v559_v52 = vmul.f32 %v703_v21, %v1066_v40 }
 0x22c   :  { %v495_v54 = vpop.permute.xlu1 %494 }
 0x22d   :  { %v822_v56 = vpop.eup %821  ;;  %vm512_vm10 = vcmp.eq.s32.totalorder %v1145_v18, %v495_v54  ;;  %vm513_vm11 = vcmp.eq.s32.totalorder %v1160_v5, %v495_v54  ;;  %426 = vadd.xlane.f32.xlu0 %v425_v43  ;;  %v578_v2 = vadd.f32 %v559_v52, %v558_v50 }
 0x22e   :  { %v824_v34 = vpop.eup %823  ;;  %v704_v58 = vsel %vm512_vm10, 1.0, %v898_v41  ;;  %v705_v59 = vsel %vm513_vm11, 1.0, %v898_v41 }
 0x22f   :  { %v437_v62 = vadd.f32 %v824_v34, %v822_v56  ;;  %v560_v63 = vmul.f32 %v704_v58, %v1070_v42  ;;  %v561_v38 = vmul.f32 %v705_v59, %v1074_v44 }
 0x231   :  { %432 = vadd.xlane.f32.xlu0 %v431_v46  ;;  %v581_v40 = vadd.f32 %v561_v38, %v560_v63 }
 0x235   :  { %438 = vadd.xlane.f32.xlu0 %v437_v62 }
 0x239   :  { %567 = vadd.xlane.f32.xlu0 %v566_v45 }
 0x23a   :  { %420 = vadd.xlane.f32.xlu1 %v419_v35 }
 0x23d   :  { %573 = vadd.xlane.f32.xlu0 %v572_v19 }
 0x241   :  { %579 = vadd.xlane.f32.xlu0 %v578_v2 }
 0x25d   :  { %v1218_v0 = vpop.xlane.xlu1 %357 }
 0x25e   :  { %v377_v1 = vsub.f32 %v1086_v51, %v1218_v0  ;;  %v378_v6 = vsub.f32 %v1090_v53, %v1218_v0 }
 0x260   :  { %v399_v8 = vmul.f32 1.442695, %v377_v1  ;;  %v401_v9 = vmul.f32 1.442695, %v378_v6 }
 0x261   :  { %v498_v42 = vpop.permute.xlu1 %497 }
 0x262   :  { %825 = vpow2.f32 %v399_v8  ;;  %vm514_vm12 = vcmp.eq.s32.totalorder %v1145_v18, %v498_v42  ;;  %vm515_vm13 = vcmp.eq.s32.totalorder %v1160_v5, %v498_v42 }
 0x263   :  { %827 = vpow2.f32 %v401_v9  ;;  %v706_v44 = vsel %vm514_vm12, 1.0, %v898_v41  ;;  %v707_v35 = vsel %vm515_vm13, 1.0, %v898_v41 }
 0x264   :  { %v562_v37 = vmul.f32 %v706_v44, %v1094_v55  ;;  %v563_v51 = vmul.f32 %v707_v35, %v1098_v57 }
 0x266   :  { %v584_v10 = vadd.f32 %v563_v51, %v562_v37 }
 0x268   :  { %585 = vadd.xlane.f32.xlu0 %v584_v10 }
 0x26c   :  { %v826_v53 = vpop.eup %825 }
 0x26d   :  { %v828_v12 = vpop.eup %827 }
 0x26e   :  { %v428_v13 = vadd.f32 %v828_v12, %v826_v53 }
 0x270   :  { %429 = vadd.xlane.f32.xlu1 %v428_v13 }
 0x274   :  { %435 = vadd.xlane.f32.xlu1 %v434_v36 }
 0x292   :  { %v1230_v14 = vpop.xlane.xlu1 %369 }
 0x293   :  { %v385_v19 = vsub.f32 %v1104_v60, %v1230_v14  ;;  %v386_v22 = vsub.f32 %v1106_v61, %v1230_v14 }
 0x295   :  { %v415_v23 = vmul.f32 1.442695, %v385_v19  ;;  %v417_v24 = vmul.f32 1.442695, %v386_v22 }
 0x296   :  { %v501_v55 = vpop.permute.xlu1 %500 }
 0x297   :  { %829 = vpow2.f32 %v415_v23  ;;  %vm516_vm14 = vcmp.eq.s32.totalorder %v1145_v18, %v501_v55  ;;  %vm517_vm15 = vcmp.eq.s32.totalorder %v1160_v5, %v501_v55 }
 0x298   :  { %831 = vpow2.f32 %v417_v24  ;;  %v708_v57 = vsel %vm516_vm14, 1.0, %v898_v41  ;;  %v709_v26 = vsel %vm517_vm15, 1.0, %v898_v41 }
 0x299   :  { %v564_v3 = vmul.f32 %v708_v57, %v1104_v60  ;;  %v565_v46 = vmul.f32 %v709_v26, %v1106_v61 }
 0x29b   :  { %v587_v49 = vadd.f32 %v565_v46, %v564_v3 }
 0x2a1   :  { %v830_v27 = vpop.eup %829 }
 0x2a2   :  { %v832_v48 = vpop.eup %831 }
 0x2a3   :  { %v440_v29 = vadd.f32 %v832_v48, %v830_v27 }
 0x2a5   :  { %441 = vadd.xlane.f32.xlu1 %v440_v29 }
 0x2a9   :  { %570 = vadd.xlane.f32.xlu1 %v1188_v7 }
 0x2ad   :  { %576 = vadd.xlane.f32.xlu1 %v1208_v39 }
 0x2b1   :  { %582 = vadd.xlane.f32.xlu1 %v581_v40 }
 0x2b5   :  { %588 = vadd.xlane.f32.xlu1 %v587_v49 }
 0x2b6   :  { %860 = shalt.err (!%p857_p4)
}
 0x2b7   :  { %s861_s7 = scalar_lea.hbm %s1316_s5, 1024 }
 0x2b8   :  { %p862_p5 = scmp.ne.s32.totalorder %s1316_s5, %s861_s7  ;;  %p865_p6 = scmp.lt.u32.totalorder %s861_s7, %s1316_s5 }
 0x2ba   :  { %p867_p7 = pnand %p865_p6, %p862_p5 }
 0x2bc   :  { %870 = shalt.err (!%p867_p7)
}
 0x2bd   :  { %s900_s2 = smov 128   ;;  %s901_s12 = smov 8   ;;  %v424_v60 = vpop.xlane.xlu0 %423  ;;  %v598_v58 = vld [vmem:[%s1315_s4] sm:$0xff]  ;;  %v600_v59 = vld [vmem:[%s1315_s4 + $0x10] sm:$0xff]  ;;  %v599_v40 = vld [vmem:[%s1315_s4 + $0x8] sm:$0xff]  ;;  %vm615_vm1 = vcmask 7168  }
 0x2be   :  { %651 = dma.vmem_to_hbm [thread:$0]  %s646_s27, 1024, %s1316_s5, [#allocation3], %s900_s2, %s900_s2, %s901_s12  }
 0x2bf   :  { %v601_v10 = vld [vmem:[%s1315_s4 + $0x18] sm:$0xff]  ;;  %v604_v46 = vld [vmem:[%s1315_s4 + $0x30] sm:$0xff]  ;;  %v603_v27 = vld [vmem:[%s1315_s4 + $0x28] sm:$0xff]  ;;  %s902_s27 = smov [#allocation4]  }
 0x2c1   :  { %v427_v61 = vpop.xlane.xlu0 %426 }
 0x2c5   :  { %v433_v5 = vpop.xlane.xlu0 %432 }
 0x2c7   :  { %v421_v18 = vpop.xlane.xlu1 %420 }
 0x2c8   :  { %833 = vlog2.f32 %v421_v18 }
 0x2c9   :  { %835 = vlog2.f32 %v427_v61  ;;  %v439_v7 = vpop.xlane.xlu0 %438 }
 0x2ca   :  { %837 = vlog2.f32 %v424_v60 }
 0x2cb   :  { %839 = vlog2.f32 %v433_v5 }
 0x2cd   :  { %v568_v32 = vpop.xlane.xlu0 %567 }
 0x2d1   :  { %v574_v43 = vpop.xlane.xlu0 %573 }
 0x2d2   :  { %v834_v30 = vpop.eup %833 }
 0x2d3   :  { %v836_v16 = vpop.eup %835  ;;  %v444_v4 = vmul.f32 0.6931472, %v834_v30  ;;  %v605_v30 = vld [vmem:[%s1315_s4 + $0x38] sm:$0xff] }
 0x2d4   :  { %v448_v33 = vmul.f32 0.6931472, %v836_v16  ;;  %v838_v20 = vpop.eup %837 }
 0x2d5   :  { %v840_v21 = vpop.eup %839  ;;  %v459_v36 = vadd.f32 %v444_v4, %v1133_v11  ;;  %v446_v45 = vmul.f32 0.6931472, %v838_v20  ;;  %v580_v38 = vpop.xlane.xlu0 %579 }
 0x2d6   :  { %v461_v39 = vadd.f32 %v448_v33, %v1166_v17  ;;  %v452_v50 = vmul.f32 0.6931472, %v840_v21 }
 0x2d7   :  { %v590_v56 = vsub.f32 %v459_v36, %v568_v32  ;;  %v460_v62 = vadd.f32 %v446_v45, %v1142_v15  ;;  %v602_v15 = vld [vmem:[%s1315_s4 + $0x20] sm:$0xff]  ;;  %s658_s4 = sshll.u32 %s902_s27, 4  ;;  %s659_s4 = int_to_ptr.vmem [resolvable:$true] %s658_s4 }
 0x2d8   :  { %v592_v34 = vsub.f32 %v461_v39, %v574_v43  ;;  %v463_v11 = vadd.f32 %v452_v50, %v1151_v25  ;;  %s871_s28 = scalar_lea.vmem %s659_s4, 16  ;;  %s875_s29 = scalar_lea.vmem %s659_s4, 32 }
 0x2d9   :  { %v606_v9 = vmul.f32 %v598_v58, %v590_v56  ;;  %p872_p8 = scmp.ne.s32.totalorder %s659_s4, %s871_s28  ;;  %p876_p9 = scmp.lt.s32.totalorder %s659_s4, %s659_s4 }
 0x2da   :  { %v608_v42 = vmul.f32 %v600_v59, %v592_v34  ;;  %v594_v44 = vsub.f32 %v463_v11, %v580_v38  ;;  %p877_p10 = scmp.lt.s32.totalorder %s875_s29, %s871_s28 }
 0x2db   :  { %v616_v13 = vsel %vm615_vm1, %v606_v9, 0.0 }
 0x2dc   :  { %v619_v23 = vsel %vm615_vm1, %v608_v42, 0.0  ;;  %v610_v55 = vmul.f32 %v602_v15, %v594_v44  ;;  %p878_p11 = por %p877_p10, %p876_p9 }
 0x2de   :  { %v623_v5 = vsel %vm615_vm1, %v610_v55, 0.0  ;;  %p879_p12 = pnand %p878_p11, %p872_p8 }
 0x2f5   :  { %v586_v51 = vpop.xlane.xlu0 %585 }
 0x2fd   :  { %v430_v41 = vpop.xlane.xlu1 %429 }
 0x2fe   :  { %841 = vlog2.f32 %v430_v41 }
 0x2ff   :  { %843 = vlog2.f32 %v439_v7 }
 0x301   :  { %v436_v31 = vpop.xlane.xlu1 %435 }
 0x302   :  { %845 = vlog2.f32 %v436_v31 }
 0x308   :  { %v842_v52 = vpop.eup %841 }
 0x309   :  { %v844_v2 = vpop.eup %843  ;;  %v450_v17 = vmul.f32 0.6931472, %v842_v52 }
 0x30a   :  { %v456_v6 = vmul.f32 0.6931472, %v844_v2 }
 0x30b   :  { %v462_v25 = vadd.f32 %v450_v17, %v1218_v0 }
 0x30c   :  { %v846_v63 = vpop.eup %845  ;;  %v465_v12 = vadd.f32 %v456_v6, %v1176_v47 }
 0x30d   :  { %v454_v35 = vmul.f32 0.6931472, %v846_v63 }
 0x30e   :  { %v596_v57 = vsub.f32 %v465_v12, %v586_v51 }
 0x30f   :  { %v464_v3 = vadd.f32 %v454_v35, %v1157_v28 }
 0x310   :  { %v612_v28 = vmul.f32 %v604_v46, %v596_v57 }
 0x312   :  { %v627_v33 = vsel %vm615_vm1, %v612_v28, 0.0 }
 0x332   :  { %v442_v54 = vpop.xlane.xlu1 %441 }
 0x333   :  { %847 = vlog2.f32 %v442_v54  ;;  %v614_v54 = vld [vmem:[#allocation4] sm:$0x1] }
 0x336   :  { %v571_v1 = vpop.xlane.xlu1 %570 }
 0x337   :  { %v591_v8 = vsub.f32 %v460_v62, %v571_v1 }
 0x339   :  { %v607_v37 = vmul.f32 %v599_v40, %v591_v8 }
 0x33a   :  { %v577_v53 = vpop.xlane.xlu1 %576 }
 0x33b   :  { %v617_v19 = vsel %vm615_vm1, %v607_v37, 0.0  ;;  %v593_v22 = vsub.f32 %v462_v25, %v577_v53 }
 0x33c   :  { %v618_v0 = vadd.f32 %v617_v19, %v616_v13 }
 0x33d   :  { %v848_v24 = vpop.eup %847  ;;  %v609_v26 = vmul.f32 %v601_v10, %v593_v22 }
 0x33e   :  { %v458_v49 = vmul.f32 0.6931472, %v848_v24  ;;  %v620_v47 = vadd.f32 %v619_v23, %v618_v0  ;;  %v583_v48 = vpop.xlane.xlu1 %582 }
 0x33f   :  { %v621_v29 = vsel %vm615_vm1, %v609_v26, 0.0  ;;  %v595_v60 = vsub.f32 %v464_v3, %v583_v48 }
 0x340   :  { %v622_v61 = vadd.f32 %v621_v29, %v620_v47  ;;  %v466_v18 = vadd.f32 %v458_v49, %v1230_v14 }
 0x341   :  { %v611_v41 = vmul.f32 %v603_v27, %v595_v60 }
 0x342   :  { %v624_v7 = vadd.f32 %v623_v5, %v622_v61  ;;  %v589_v16 = vpop.xlane.xlu1 %588 }
 0x343   :  { %v625_v31 = vsel %vm615_vm1, %v611_v41, 0.0  ;;  %v597_v32 = vsub.f32 %v466_v18, %v589_v16 }
 0x344   :  { %v626_v4 = vadd.f32 %v625_v31, %v624_v7 }
 0x345   :  { %v613_v20 = vmul.f32 %v605_v30, %v597_v32 }
 0x346   :  { %v628_v21 = vadd.f32 %v627_v33, %v626_v4 }
 0x347   :  { %v629_v14 = vsel %vm615_vm1, %v613_v20, 0.0 }
 0x348   :  { %v630_v36 = vadd.f32 %v629_v14, %v628_v21 }
 0x34a   :  { %v631_v39 = vrot.slane %v630_v36, 4 }
 0x34c   :  { %v632_v43 = vadd.f32 %v631_v39, %v630_v36 }
 0x34e   :  { %v633_v45 = vrot.slane %v632_v43, 2 }
 0x350   :  { %v634_v50 = vadd.f32 %v633_v45, %v632_v43 }
 0x352   :  { %v635_v52 = vrot.slane %v634_v50, 1 }
 0x354   :  { %v636_v56 = vadd.f32 %v635_v52, %v634_v50 }
 0x356   :  { %v637_v2 = vadd.f32 %v636_v56, %v614_v54 }
 0x358   :  { %639 = vst.msk [vmem:[#allocation4] sm:$0x1] %vm29_vm0, %v637_v2 }
 0x359   :  { %882 = shalt.err (!%p879_p12)
}
 0x35a   :  { %s883_s8 = scalar_lea.hbm %s1317_s6, 16 }
 0x35b   :  { %p884_p13 = scmp.ne.s32.totalorder %s1317_s6, %s883_s8  ;;  %p887_p0 = scmp.lt.u32.totalorder %s883_s8, %s1317_s6 }
 0x35d   :  { %p889_p1 = pnand %p887_p0, %p884_p13 }
 0x35f   :  { %892 = shalt.err (!%p889_p1)
}
 0x360   :  { %661 = dma.vmem_to_hbm [thread:$0]  %s659_s4, 16, %s1317_s6, [#allocation5]  }
 0x361   :  { %893 = dma.done.wait [#allocation3], 1024  }
 0x362   :  { %894 = vsyncadd [#allocation3], 4294966272 }
 0x363   :  { %895 = dma.done.wait [#allocation5], 16  }
 0x364   :  { %896 = vsyncadd [#allocation5], 4294967280 }
 0x365   :  { %668 = vsyncpa [#allocation3], 1 }
 0x366   :  { %669 = vsyncpa [#allocation5], 1 }

// kernel: qwen_mlm_forward.3
= control target key start
LH: loop header
LB: loop body
LE: loop exit
PB: predicated region body
PF: predicated region fallthrough
CT: control target
= control target key end

     0   :  { %s3319_s29 = smov 0   ;;  %s4422_s0 = inlined_call_operand.vmem [shape: bf16[2,32,128], index: 0, kind: input, shape index: {}]   ;;  %s4423_s1 = inlined_call_operand.vmem [shape: s32[2,1,32], index: 1, kind: input, shape index: {}]   ;;  %s4424_s2 = inlined_call_operand.vmem [shape: bf16[1,128], index: 2, kind: input, shape index: {}]   ;;  %s4425_s3 = inlined_call_operand.vmem [shape: bf16[128,256], index: 3, kind: input, shape index: {}]   ;;  %s4426_s4 = inlined_call_operand.vmem [shape: f32[1,256], index: 4, kind: input, shape index: {}]   ;;  %s4427_s5 = inlined_call_operand.vmem [shape: f32[256,256], index: 5, kind: input, shape index: {}]   ;;  %s4428_s6 = inlined_call_operand.vmem [shape: f32[256,256], index: 6, kind: input, shape index: {}]   ;;  %s4429_s7 = inlined_call_operand.vmem [shape: f32[32,256], index: 7, kind: input, shape index: {}]   ;;  %s4430_s8 = inlined_call_operand.vmem [shape: f32[32,256], index: 8, kind: input, shape index: {}]   ;;  %s4431_s9 = inlined_call_operand.vmem [shape: bf16[128,128], index: 9, kind: input, shape index: {}]   ;;  %s4432_s10 = inlined_call_operand.vmem [shape: bf16[1,128], index: 10, kind: input, shape index: {}]   ;;  %s4433_s11 = inlined_call_operand.vmem [shape: bf16[128,256], index: 11, kind: input, shape index: {}]   ;;  %s4434_s12 = inlined_call_operand.vmem [shape: bf16[128,256], index: 12, kind: input, shape index: {}]   ;;  %s4435_s13 = inlined_call_operand.vmem [shape: bf16[256,128], index: 13, kind: input, shape index: {}]   ;;  %s4436_s14 = inlined_call_operand.vmem [shape: bf16[2,32,128], index: 14, kind: output, shape index: {}]  }
   0x1 LB: > { %s2550_s30 = sadd.s32 4294967295, %s3238_s29   ;;  %p2554_p0 = scmp.ge.s32.totalorder %s3238_s29, 1  ;;  %s3238_s29 = sphi %s3319_s29, %s24_s29  }
   0x2   : > { %p420_p1 = scmp.lt.s32.totalorder %s3238_s29, 3 }
   0x4   : > { %p421_p2 = pnand %p2554_p0, %p420_p1 }
   0x5   : > { %p469_p3 = scmp.lt.s32.totalorder (!%p421_p2), %s2550_s30, 1  ;;  %v3008_v0 = vld [vmem:[%s4425_s3 + $0x4] ss:$8 sps:$4 sm:$0xff] (!%p421_p2)   ;;  %v3010_v1 = vld [vmem:[%s4425_s3] ss:$8 sps:$4 sm:$0xff] (!%p421_p2)   ;;  %v3240_v23 = vmov (!%p421_p2), 0  }
   0x6   : > { %424 = sbr.rel (%p421_p2) target bundleno = 2855 (0xb27), region = 76  ;;  %628 = vmatprep.subr.bf16.mxu0 (!%p421_p2), %v3008_v0  ;;  %v3011_v2 = vld [vmem:[%s4425_s3 + $0x14] ss:$8 sps:$4 sm:$0xff] (!%p421_p2)   ;;  %v3013_v3 = vld [vmem:[%s4425_s3 + $0x10] ss:$8 sps:$4 sm:$0xff] (!%p421_p2)   ;;  %660 = vmatprep.mubr.bf16.mxu0 (!%p421_p2), %v3240_v23  ;;  %v690_v27 = vld [vmem:[%s4427_s5 + $0x8] sm:$0xff] (!%p421_p2) }
   0x7   : > { %629 = vmatpush1.bf16.msra.mxu0 (!%p421_p2), %v3010_v1  ;;  %v3014_v14 = vld [vmem:[%s4425_s3 + $0x24] ss:$8 sps:$4 sm:$0xff] (!%p421_p2)   ;;  %v3016_v15 = vld [vmem:[%s4425_s3 + $0x20] ss:$8 sps:$4 sm:$0xff] (!%p421_p2)   ;;  %v3017_v16 = vld [vmem:[%s4425_s3 + $0x34] ss:$8 sps:$4 sm:$0xff] (!%p421_p2)  }
   0x8   : > { %630 = vmatprep.subr.bf16.mxu0 (!%p421_p2), %v3011_v2  ;;  %v3019_v17 = vld [vmem:[%s4425_s3 + $0x30] ss:$8 sps:$4 sm:$0xff] (!%p421_p2)   ;;  %v3020_v18 = vld [vmem:[%s4425_s3 + $0x44] ss:$8 sps:$4 sm:$0xff] (!%p421_p2)   ;;  %v3022_v19 = vld [vmem:[%s4425_s3 + $0x40] ss:$8 sps:$4 sm:$0xff] (!%p421_p2)  }
   0x9   : > { %v3023_v20 = vld [vmem:[%s4425_s3 + $0x54] ss:$8 sps:$4 sm:$0xff] (!%p421_p2)   ;;  %v3025_v21 = vld [vmem:[%s4425_s3 + $0x50] ss:$8 sps:$4 sm:$0xff] (!%p421_p2)   ;;  %v3026_v22 = vld [vmem:[%s4425_s3 + $0x64] ss:$8 sps:$4 sm:$0xff] (!%p421_p2)  }
   0xa   : > { %v3028_v24 = vld [vmem:[%s4425_s3 + $0x60] ss:$8 sps:$4 sm:$0xff] (!%p421_p2)   ;;  %v3029_v25 = vld [vmem:[%s4425_s3 + $0x74] ss:$8 sps:$4 sm:$0xff] (!%p421_p2)   ;;  %v3031_v26 = vld [vmem:[%s4425_s3 + $0x70] ss:$8 sps:$4 sm:$0xff] (!%p421_p2)  }
   0xb   : > { %631 = vmatpush1.bf16.msra.mxu0 (!%p421_p2), %v3013_v3  ;;  %v692_v28 = vld [vmem:[%s4427_s5 + $0x18] sm:$0xff] (!%p421_p2)  ;;  %v689_v29 = vld [vmem:[%s4427_s5] sm:$0xff] (!%p421_p2)  ;;  %v691_v31 = vld [vmem:[%s4427_s5 + $0x10] sm:$0xff] (!%p421_p2)  ;;  %vm1153_vm0 = vcmask (!%p421_p2), 261120   ;;  %s3241_s27 = smov (!%p421_p2), 96   ;;  %s3242_s18 = smov (!%p421_p2), 64  }
   0xc   : > { %632 = vmatprep.subr.bf16.mxu0 (!%p421_p2), %v3014_v14  ;;  %v2824_v30 = vpack.c.bf16 (!%p421_p2), %v692_v28, %v690_v27  ;;  %v694_v32 = vld [vmem:[%s4427_s5 + $0x28] sm:$0xff] (!%p421_p2)  ;;  %v696_v33 = vld [vmem:[%s4427_s5 + $0x38] sm:$0xff] (!%p421_p2)  ;;  %v2826_v34 = vpack.c.bf16 (!%p421_p2), %v691_v31, %v689_v29  ;;  %v693_v36 = vld [vmem:[%s4427_s5 + $0x20] sm:$0xff] (!%p421_p2)  ;;  %s3243_s22 = smov (!%p421_p2), 32  }
   0xd   : > { %s4454_s30 = smov (!%p469_p3, %s2550_s30), 1  ;;  %v2828_v35 = vpack.c.bf16 %v696_v33, %v694_v32  ;;  %v695_v37 = vld [vmem:[%s4427_s5 + $0x30] sm:$0xff]  ;;  %v698_v38 = vld [vmem:[%s4427_s5 + $0x48] sm:$0xff]  ;;  %v700_v39 = vld [vmem:[%s4427_s5 + $0x58] sm:$0xff] }
   0xe   : > { %s2668_s23 = sshll.u32 %s4454_s30, 4  ;;  %2825 = vmatprep.subr.bf16.mxu1 %v2824_v30  ;;  %v2830_v40 = vpack.c.bf16 %v695_v37, %v693_v36  ;;  %v2832_v41 = vpack.c.bf16 %v700_v39, %v698_v38  ;;  %v697_v42 = vld [vmem:[%s4427_s5 + $0x40] sm:$0xff]  ;;  %v699_v43 = vld [vmem:[%s4427_s5 + $0x50] sm:$0xff]  ;;  %v702_v44 = vld [vmem:[%s4427_s5 + $0x68] sm:$0xff]  ;;  %s476_s21 = scalar_lea.vmem %s4423_s1, %s4454_s30 }
   0xf   : > { %s473_s26 = scalar_lea.vmem %s4422_s0, %s2668_s23  ;;  %633 = vmatpush1.bf16.msra.mxu0 %v3016_v15  ;;  %2827 = vmatpush1.bf16.msra.mxu1 %v2826_v34  ;;  %v704_v45 = vld [vmem:[%s4427_s5 + $0x78] sm:$0xff]  ;;  %v2834_v46 = vpack.c.bf16 %v699_v43, %v697_v42  ;;  %v701_v48 = vld [vmem:[%s4427_s5 + $0x60] sm:$0xff]  ;;  %v703_v49 = vld [vmem:[%s4427_s5 + $0x70] sm:$0xff] }
  0x10   : > { %v2675_v4 = vld [vmem:[%s473_s26] sm:$0xff]   ;;  %v2692_v5 = vld [vmem:[%s473_s26 + $0x8] sm:$0xff]   ;;  %634 = vmatprep.subr.bf16.mxu0 %v3017_v16  ;;  %2829 = vmatprep.subr.bf16.mxu1 %v2828_v35  ;;  %v2836_v47 = vpack.c.bf16 %v704_v45, %v702_v44  ;;  %v708_v51 = vld [vmem:[%s4427_s5 + $0x98] sm:$0xff]  ;;  %v2838_v52 = vpack.c.bf16 %v703_v49, %v701_v48  ;;  %s481_s26 = scalar_lea.vmem %s4436_s14, %s2668_s23 }
  0x11   : > { %v3347_v6 = vunpack.c.l.bf16 %v2675_v4  ;;  %v3349_v7 = vunpack.c.l.bf16 %v2692_v5  ;;  %v3351_v8 = vunpack.c.h.bf16 %v2675_v4  ;;  %v3353_v9 = vunpack.c.h.bf16 %v2692_v5  ;;  %v706_v50 = vld [vmem:[%s4427_s5 + $0x88] sm:$0xff]  ;;  %v705_v54 = vld [vmem:[%s4427_s5 + $0x80] sm:$0xff]  ;;  %v707_v55 = vld [vmem:[%s4427_s5 + $0x90] sm:$0xff] }
  0x12   : > { %v2840_v53 = vpack.c.bf16 %v708_v51, %v706_v50  ;;  %v710_v56 = vld [vmem:[%s4427_s5 + $0xa8] sm:$0xff]  ;;  %v712_v57 = vld [vmem:[%s4427_s5 + $0xb8] sm:$0xff]  ;;  %v2842_v58 = vpack.c.bf16 %v707_v55, %v705_v54  ;;  %v709_v60 = vld [vmem:[%s4427_s5 + $0xa0] sm:$0xff] }
  0x13   : > { %v491_v10 = vmul.f32 %v3347_v6, %v3347_v6  ;;  %v493_v11 = vmul.f32 %v3349_v7, %v3349_v7  ;;  %v492_v12 = vmul.f32 %v3351_v8, %v3351_v8  ;;  %v494_v13 = vmul.f32 %v3353_v9, %v3353_v9  ;;  %635 = vmatpush1.bf16.msra.mxu0 %v3019_v17  ;;  %v711_v61 = vld [vmem:[%s4427_s5 + $0xb0] sm:$0xff]  ;;  %v714_v62 = vld [vmem:[%s4427_s5 + $0xc8] sm:$0xff]  ;;  %v716_v63 = vld [vmem:[%s4427_s5 + $0xd8] sm:$0xff] }
  0x14   : > { %636 = vmatprep.subr.bf16.mxu0 %v3020_v18  ;;  %2831 = vmatpush1.bf16.msra.mxu1 %v2830_v40  ;;  %v2844_v59 = vpack.c.bf16 %v712_v57, %v710_v56  ;;  %v2846_v0 = vpack.c.bf16 %v711_v61, %v709_v60  ;;  %v2848_v1 = vpack.c.bf16 %v716_v63, %v714_v62  ;;  %v713_v2 = vld [vmem:[%s4427_s5 + $0xc0] sm:$0xff]  ;;  %v715_v3 = vld [vmem:[%s4427_s5 + $0xd0] sm:$0xff]  ;;  %v718_v4 = vld [vmem:[%s4427_s5 + $0xe8] sm:$0xff] }
  0x15   : > { %495 = vadd.xlane.f32.xlu0 %v491_v10  ;;  %499 = vadd.xlane.f32.xlu1 %v493_v11  ;;  %v720_v5 = vld [vmem:[%s4427_s5 + $0xf8] sm:$0xff]  ;;  %v2850_v10 = vpack.c.bf16 %v715_v3, %v713_v2  ;;  %v722_v14 = vld [vmem:[%s4427_s5 + $0x108] sm:$0xff]  ;;  %v721_v18 = vld [vmem:[%s4427_s5 + $0x100] sm:$0xff] }
  0x16   : > { %2833 = vmatprep.subr.bf16.mxu1 %v2832_v41  ;;  %v2852_v11 = vpack.c.bf16 %v720_v5, %v718_v4  ;;  %v724_v15 = vld [vmem:[%s4427_s5 + $0x118] sm:$0xff]  ;;  %v730_v27 = vld [vmem:[%s4427_s5 + $0x148] sm:$0xff]  ;;  %v729_v31 = vld [vmem:[%s4427_s5 + $0x140] sm:$0xff]  ;;  %v522_v4 = vlaneseq }
  0x17   : > { %637 = vmatpush1.bf16.msra.mxu0 %v3022_v19  ;;  %v2856_v17 = vpack.c.bf16 %v724_v15, %v722_v14  ;;  %v723_v19 = vld [vmem:[%s4427_s5 + $0x110] sm:$0xff]  ;;  %v732_v28 = vld [vmem:[%s4427_s5 + $0x158] sm:$0xff]  ;;  %v734_v33 = vld [vmem:[%s4427_s5 + $0x168] sm:$0xff] }
  0x18   : > { %638 = vmatprep.subr.bf16.mxu0 %v3023_v20  ;;  %2835 = vmatpush1.bf16.msra.mxu1 %v2834_v46  ;;  %v726_v20 = vld [vmem:[%s4427_s5 + $0x128] sm:$0xff]  ;;  %v2864_v30 = vpack.c.bf16 %v732_v28, %v730_v27  ;;  %v731_v32 = vld [vmem:[%s4427_s5 + $0x150] sm:$0xff]  ;;  %v736_v34 = vld [vmem:[%s4427_s5 + $0x178] sm:$0xff] }
  0x19   : > { %497 = vadd.xlane.f32.xlu0 %v492_v12  ;;  %501 = vadd.xlane.f32.xlu1 %v494_v13  ;;  %v717_v12 = vld [vmem:[%s4427_s5 + $0xe0] sm:$0xff]  ;;  %v719_v13 = vld [vmem:[%s4427_s5 + $0xf0] sm:$0xff]  ;;  %v2866_v35 = vpack.c.bf16 %v731_v32, %v729_v31  ;;  %v2868_v36 = vpack.c.bf16 %v736_v34, %v734_v33  ;;  %v738_v39 = vld [vmem:[%s4427_s5 + $0x188] sm:$0xff] }
  0x1a   : > { %2837 = vmatprep.subr.bf16.mxu1 %v2836_v47  ;;  %v2854_v16 = vpack.c.bf16 %v719_v13, %v717_v12  ;;  %v733_v37 = vld [vmem:[%s4427_s5 + $0x160] sm:$0xff]  ;;  %v735_v38 = vld [vmem:[%s4427_s5 + $0x170] sm:$0xff]  ;;  %v740_v40 = vld [vmem:[%s4427_s5 + $0x198] sm:$0xff] }
  0x1b   : > { %639 = vmatpush1.bf16.msra.mxu0 %v3025_v21  ;;  %v728_v21 = vld [vmem:[%s4427_s5 + $0x138] sm:$0xff]  ;;  %v2870_v41 = vpack.c.bf16 %v735_v38, %v733_v37  ;;  %v2872_v42 = vpack.c.bf16 %v740_v40, %v738_v39  ;;  %v737_v43 = vld [vmem:[%s4427_s5 + $0x180] sm:$0xff]  ;;  %v739_v44 = vld [vmem:[%s4427_s5 + $0x190] sm:$0xff] }
  0x1c   : > { %640 = vmatprep.subr.bf16.mxu0 %v3026_v22  ;;  %2839 = vmatpush1.bf16.msra.mxu1 %v2838_v52  ;;  %v2858_v22 = vpack.c.bf16 %v723_v19, %v721_v18  ;;  %v742_v45 = vld [vmem:[%s4427_s5 + $0x1a8] sm:$0xff]  ;;  %v744_v46 = vld [vmem:[%s4427_s5 + $0x1b8] sm:$0xff]  ;;  %v2874_v47 = vpack.c.bf16 %v739_v44, %v737_v43  ;;  %v741_v49 = vld [vmem:[%s4427_s5 + $0x1a0] sm:$0xff] }
  0x1d   : > { %2841 = vmatprep.subr.bf16.mxu1 %v2840_v53  ;;  %v2876_v48 = vpack.c.bf16 %v744_v46, %v742_v45  ;;  %v743_v50 = vld [vmem:[%s4427_s5 + $0x1b0] sm:$0xff]  ;;  %v746_v51 = vld [vmem:[%s4427_s5 + $0x1c8] sm:$0xff]  ;;  %v748_v52 = vld [vmem:[%s4427_s5 + $0x1d8] sm:$0xff] }
  0x1e   : > { %v2878_v53 = vpack.c.bf16 %v743_v50, %v741_v49  ;;  %v2880_v54 = vpack.c.bf16 %v748_v52, %v746_v51  ;;  %v745_v55 = vld [vmem:[%s4427_s5 + $0x1c0] sm:$0xff]  ;;  %v747_v56 = vld [vmem:[%s4427_s5 + $0x1d0] sm:$0xff]  ;;  %v750_v31 = vld [vmem:[%s4427_s5 + $0x1e8] sm:$0xff] }
  0x1f   : > { %641 = vmatpush1.bf16.msra.mxu0 %v3028_v24  ;;  %v2860_v24 = vpack.c.bf16 %v728_v21, %v726_v20  ;;  %v2882_v57 = vpack.c.bf16 %v747_v56, %v745_v55  ;;  %v520_v12 = vld [vmem:[%s4424_s2] sm:$0x1]  ;;  %v752_v32 = vld [vmem:[%s4427_s5 + $0x1f8] sm:$0xff]  ;;  %v879_v37 = vld [vmem:[%s4428_s6 + $0x8] sm:$0xff] }
  0x20   : > { %642 = vmatprep.subr.bf16.mxu0 %v3029_v25  ;;  %2843 = vmatpush1.bf16.msra.mxu1 %v2842_v58  ;;  %v725_v25 = vld [vmem:[%s4427_s5 + $0x120] sm:$0xff]  ;;  %v521_v13 = vunpack.c.l.bf16 %v520_v12  ;;  %v2884_v33 = vpack.c.bf16 %v752_v32, %v750_v31  ;;  %v881_v38 = vld [vmem:[%s4428_s6 + $0x18] sm:$0xff] }
  0x21   : > { %2845 = vmatprep.subr.bf16.mxu1 %v2844_v59  ;;  %v749_v34 = vld [vmem:[%s4427_s5 + $0x1e0] sm:$0xff]  ;;  %v2888_v40 = vpack.c.bf16 %v881_v38, %v879_v37  ;;  %v885_v43 = vld [vmem:[%s4428_s6 + $0x38] sm:$0xff] }
  0x22   : > { %v878_v39 = vld [vmem:[%s4428_s6] sm:$0xff]  ;;  %v889_v49 = vld [vmem:[%s4428_s6 + $0x58] sm:$0xff] }
  0x23   : > { %643 = vmatpush1.bf16.msra.mxu0 %v3031_v26  ;;  %v727_v26 = vld [vmem:[%s4427_s5 + $0x130] sm:$0xff]  ;;  %v882_v46 = vld [vmem:[%s4428_s6 + $0x20] sm:$0xff]  ;;  %v893_v55 = vld [vmem:[%s4428_s6 + $0x78] sm:$0xff] }
  0x24   : > { %2847 = vmatpush1.bf16.msra.mxu1 %v2846_v0  ;;  %v2862_v29 = vpack.c.bf16 %v727_v26, %v725_v25  ;;  %2889 = vmatprep.subr.bf16.mxu0 %v2888_v40  ;;  %v886_v52 = vld [vmem:[%s4428_s6 + $0x40] sm:$0xff]  ;;  %v919_v40 = vld [vmem:[%s4428_s6 + $0x148] sm:$0xff] }
  0x25   : > { %2849 = vmatprep.subr.bf16.mxu1 %v2848_v1  ;;  %v898_v12 = vld [vmem:[%s4428_s6 + $0xa0] sm:$0xff] }
  0x26   : > { %v910_v32 = vld [vmem:[%s4428_s6 + $0x100] sm:$0xff] }
  0x27   : > { %v914_v38 = vld [vmem:[%s4428_s6 + $0x120] sm:$0xff] }
  0x28   : > { %2851 = vmatpush1.bf16.msra.mxu1 %v2850_v10 }
  0x29   : > { %2853 = vmatprep.subr.bf16.mxu1 %v2852_v11  ;;  %v3581_v11 = vshrl.u32 %v522_v4, 7 }
  0x2b   : > { %v3587_v14 = vsub.s32 0, %v3581_v11 }
  0x2c   : > { %2855 = vmatpush1.bf16.msra.mxu1 %v2854_v16 }
  0x2d   : > { %2857 = vmatprep.subr.bf16.mxu1 %v2856_v17  ;;  %v525_v17 = vrot.slane %v521_v13, %v3587_v14  ;;  %v900_v13 = vld [vmem:[%s4428_s6 + $0xb0] sm:$0xff] }
  0x30   : > { %2859 = vmatpush1.bf16.msra.mxu1 %v2858_v22 }
  0x31   : > { %2861 = vmatprep.subr.bf16.mxu1 %v2860_v24 }
  0x34   : > { %2863 = vmatpush1.bf16.msra.mxu1 %v2862_v29 }
  0x35   : > { %2865 = vmatprep.subr.bf16.mxu1 %v2864_v30 }
  0x38   : > { %2867 = vmatpush1.bf16.msra.mxu1 %v2866_v35  ;;  %v751_v35 = vld [vmem:[%s4427_s5 + $0x1f0] sm:$0xff] }
  0x39   : > { %2869 = vmatprep.subr.bf16.mxu1 %v2868_v36  ;;  %v2886_v36 = vpack.c.bf16 %v751_v35, %v749_v34  ;;  %v915_v34 = vld [vmem:[%s4428_s6 + $0x128] sm:$0xff]  ;;  %v917_v35 = vld [vmem:[%s4428_s6 + $0x138] sm:$0xff] }
  0x3a   : > { %v2924_v37 = vpack.c.bf16 %v917_v35, %v915_v34  ;;  %v941_v34 = vld [vmem:[%s4428_s6 + $0x1f8] sm:$0xff] }
  0x3c   : > { %2871 = vmatpush1.bf16.msra.mxu1 %v2870_v41  ;;  %v880_v41 = vld [vmem:[%s4428_s6 + $0x10] sm:$0xff] }
  0x3d   : > { %2873 = vmatprep.subr.bf16.mxu1 %v2872_v42  ;;  %v883_v42 = vld [vmem:[%s4428_s6 + $0x28] sm:$0xff]  ;;  %v2890_v44 = vpack.c.bf16 %v880_v41, %v878_v39  ;;  %v916_v39 = vld [vmem:[%s4428_s6 + $0x130] sm:$0xff]  ;;  %v921_v41 = vld [vmem:[%s4428_s6 + $0x158] sm:$0xff] }
  0x3e   : > { %v2892_v45 = vpack.c.bf16 %v885_v43, %v883_v42  ;;  %v2926_v42 = vpack.c.bf16 %v916_v39, %v914_v38  ;;  %v2928_v43 = vpack.c.bf16 %v921_v41, %v919_v40 }
  0x40   : > { %2875 = vmatpush1.bf16.msra.mxu1 %v2874_v47  ;;  %v884_v47 = vld [vmem:[%s4428_s6 + $0x30] sm:$0xff] }
  0x41   : > { %2877 = vmatprep.subr.bf16.mxu1 %v2876_v48  ;;  %v887_v48 = vld [vmem:[%s4428_s6 + $0x48] sm:$0xff]  ;;  %v2894_v50 = vpack.c.bf16 %v884_v47, %v882_v46 }
  0x42   : > { %v2896_v51 = vpack.c.bf16 %v889_v49, %v887_v48 }
  0x44   : > { %2879 = vmatpush1.bf16.msra.mxu1 %v2878_v53  ;;  %v888_v53 = vld [vmem:[%s4428_s6 + $0x50] sm:$0xff] }
  0x45   : > { %2881 = vmatprep.subr.bf16.mxu1 %v2880_v54  ;;  %v891_v54 = vld [vmem:[%s4428_s6 + $0x68] sm:$0xff]  ;;  %v2898_v56 = vpack.c.bf16 %v888_v53, %v886_v52 }
  0x48   : > { %2883 = vmatpush1.bf16.msra.mxu1 %v2882_v57  ;;  %v2900_v57 = vpack.c.bf16 %v893_v55, %v891_v54 }
  0x49   : > { %2885 = vmatprep.subr.bf16.mxu1 %v2884_v33  ;;  %v912_v33 = vld [vmem:[%s4428_s6 + $0x110] sm:$0xff] }
  0x4c   : > { %2887 = vmatpush1.bf16.msra.mxu1 %v2886_v36  ;;  %v2922_v36 = vpack.c.bf16 %v912_v33, %v910_v32  ;;  %v939_v33 = vld [vmem:[%s4428_s6 + $0x1e8] sm:$0xff] }
  0x4d   : > { %v2948_v35 = vpack.c.bf16 %v941_v34, %v939_v33 }
  0xa2   : > { %v496_v58 = vpop.xlane.xlu0 %495  ;;  %v500_v59 = vpop.xlane.xlu1 %499 }
  0xa3   : > { %v504_v60 = vmul.f32 0.0078125, %v496_v58  ;;  %v506_v61 = vmul.f32 0.0078125, %v500_v59  ;;  %v890_v58 = vld [vmem:[%s4428_s6 + $0x60] sm:$0xff]  ;;  %v892_v59 = vld [vmem:[%s4428_s6 + $0x70] sm:$0xff] }
  0xa5   : > { %v508_v62 = vadd.f32 1e-06, %v504_v60  ;;  %v510_v3 = vadd.f32 1e-06, %v506_v61  ;;  %v895_v60 = vld [vmem:[%s4428_s6 + $0x88] sm:$0xff]  ;;  %v897_v61 = vld [vmem:[%s4428_s6 + $0x98] sm:$0xff] }
  0xa6   : > { %v498_v63 = vpop.xlane.xlu0 %497  ;;  %v502_v0 = vpop.xlane.xlu1 %501 }
  0xa7   : > { %3104 = vrsqrt.f32 %v508_v62  ;;  %v505_v1 = vmul.f32 0.0078125, %v498_v63  ;;  %v507_v2 = vmul.f32 0.0078125, %v502_v0  ;;  %v2902_v62 = vpack.c.bf16 %v892_v59, %v890_v58  ;;  %v894_v0 = vld [vmem:[%s4428_s6 + $0x80] sm:$0xff] }
  0xa8   : > { %v2904_v63 = vpack.c.bf16 %v897_v61, %v895_v60 }
  0xa9   : > { %v509_v5 = vadd.f32 1e-06, %v505_v1  ;;  %v511_v10 = vadd.f32 1e-06, %v507_v2  ;;  %v896_v1 = vld [vmem:[%s4428_s6 + $0x90] sm:$0xff]  ;;  %v899_v2 = vld [vmem:[%s4428_s6 + $0xa8] sm:$0xff] }
  0xab   : > { %3106 = vrsqrt.f32 %v509_v5  ;;  %v2906_v5 = vpack.c.bf16 %v896_v1, %v894_v0  ;;  %v923_v1 = vld [vmem:[%s4428_s6 + $0x168] sm:$0xff] }
  0xac   : > { %3108 = vrsqrt.f32 %v510_v3  ;;  %v901_v3 = vld [vmem:[%s4428_s6 + $0xb8] sm:$0xff] }
  0xad   : > { %3110 = vrsqrt.f32 %v511_v10  ;;  %v2908_v10 = vpack.c.bf16 %v901_v3, %v899_v2  ;;  %v925_v2 = vld [vmem:[%s4428_s6 + $0x178] sm:$0xff] }
  0xae   : > { %v2932_v3 = vpack.c.bf16 %v925_v2, %v923_v1 }
  0xb1   : > { %v3105_v15 = vpop.eup %3104 }
  0xb2   : > { %v516_v16 = vmul.f32 %v3105_v15, %v3347_v6  ;;  %v903_v15 = vld [vmem:[%s4428_s6 + $0xc8] sm:$0xff] }
  0xb4   : > { %v526_v22 = vmul.f32 %v525_v17, %v516_v16  ;;  %v905_v16 = vld [vmem:[%s4428_s6 + $0xd8] sm:$0xff] }
  0xb5   : > { %v3107_v18 = vpop.eup %3106 }
  0xb6   : > { %v3109_v19 = vpop.eup %3108  ;;  %v517_v20 = vmul.f32 %v3107_v18, %v3351_v8  ;;  %v2912_v18 = vpack.c.bf16 %v905_v16, %v903_v15  ;;  %v929_v15 = vld [vmem:[%s4428_s6 + $0x198] sm:$0xff] }
  0xb7   : > { %v3111_v21 = vpop.eup %3110  ;;  %v518_v26 = vmul.f32 %v3109_v19, %v3349_v7  ;;  %v902_v19 = vld [vmem:[%s4428_s6 + $0xc0] sm:$0xff] }
  0xb8   : > { %v527_v24 = vmul.f32 %v525_v17, %v517_v20  ;;  %v519_v27 = vmul.f32 %v3111_v21, %v3353_v9  ;;  %v904_v20 = vld [vmem:[%s4428_s6 + $0xd0] sm:$0xff]  ;;  %v907_v21 = vld [vmem:[%s4428_s6 + $0xe8] sm:$0xff] }
  0xb9   : > { %v528_v28 = vmul.f32 %v525_v17, %v518_v26  ;;  %v906_v26 = vld [vmem:[%s4428_s6 + $0xe0] sm:$0xff] }
  0xba   : > { %v530_v25 = vpack.c.bf16 %v527_v24, %v526_v22  ;;  %v529_v29 = vmul.f32 %v525_v17, %v519_v27  ;;  %v2910_v17 = vpack.c.bf16 %v900_v13, %v898_v12  ;;  %v909_v22 = vld [vmem:[%s4428_s6 + $0xf8] sm:$0xff]  ;;  %v2914_v24 = vpack.c.bf16 %v904_v20, %v902_v19  ;;  %v908_v27 = vld [vmem:[%s4428_s6 + $0xf0] sm:$0xff]  ;;  %v927_v13 = vld [vmem:[%s4428_s6 + $0x188] sm:$0xff] }
  0xbb   : > { %v2936_v16 = vpack.c.bf16 %v929_v15, %v927_v13  ;;  %v931_v20 = vld [vmem:[%s4428_s6 + $0x1a8] sm:$0xff] }
  0xbc   : > { %661 = vmatmul.mubr.bf16.vlgmr.msra.gmra.mrb[0].mxu0 %v530_v25  ;;  %v531_v30 = vpack.c.bf16 %v529_v29, %v528_v28  ;;  %v2916_v25 = vpack.c.bf16 %v909_v22, %v907_v21  ;;  %v911_v28 = vld [vmem:[%s4428_s6 + $0x108] sm:$0xff]  ;;  %v913_v29 = vld [vmem:[%s4428_s6 + $0x118] sm:$0xff] }
  0xbd   : > { %670 = vmatprep.mubr.bf16.mxu0 %v3240_v23  ;;  %2891 = vmatpush1.bf16.msra.mxu0 %v2890_v44  ;;  %v2920_v31 = vpack.c.bf16 %v913_v29, %v911_v28  ;;  %v918_v44 = vld [vmem:[%s4428_s6 + $0x140] sm:$0xff]  ;;  %v933_v21 = vld [vmem:[%s4428_s6 + $0x1b8] sm:$0xff] }
  0xbe   : > { %2893 = vmatprep.subr.bf16.mxu0 %v2892_v45  ;;  %v920_v45 = vld [vmem:[%s4428_s6 + $0x150] sm:$0xff]  ;;  %v2940_v22 = vpack.c.bf16 %v933_v21, %v931_v20  ;;  %v937_v28 = vld [vmem:[%s4428_s6 + $0x1d8] sm:$0xff] }
  0xbf   : > { %v2930_v46 = vpack.c.bf16 %v920_v45, %v918_v44 }
  0xc1   : > { %2895 = vmatpush1.bf16.msra.mxu0 %v2894_v50 }
  0xc2   : > { %2897 = vmatprep.subr.bf16.mxu0 %v2896_v51 }
  0xc4   : > { %671 = vmatmul.mubr.bf16.gmra.mrb[4].mxu0 %v531_v30  ;;  %v2918_v30 = vpack.c.bf16 %v908_v27, %v906_v26  ;;  %v935_v27 = vld [vmem:[%s4428_s6 + $0x1c8] sm:$0xff] }
  0xc5   : > { %2899 = vmatpush1.bf16.msra.mxu0 %v2898_v56  ;;  %v2944_v29 = vpack.c.bf16 %v937_v28, %v935_v27 }
  0xc6   : > { %2901 = vmatprep.subr.bf16.mxu0 %v2900_v57 }
  0xc9   : > { %2903 = vmatpush1.bf16.msra.mxu0 %v2902_v62 }
  0xca   : > { %2905 = vmatprep.subr.bf16.mxu0 %v2904_v63 }
  0xcd   : > { %2907 = vmatpush1.bf16.msra.mxu0 %v2906_v5  ;;  %v922_v5 = vld [vmem:[%s4428_s6 + $0x160] sm:$0xff] }
  0xce   : > { %2909 = vmatprep.subr.bf16.mxu0 %v2908_v10  ;;  %v924_v10 = vld [vmem:[%s4428_s6 + $0x170] sm:$0xff] }
  0xcf   : > { %v2934_v12 = vpack.c.bf16 %v924_v10, %v922_v5 }
  0xd1   : > { %2911 = vmatpush1.bf16.msra.mxu0 %v2910_v17  ;;  %v926_v17 = vld [vmem:[%s4428_s6 + $0x180] sm:$0xff] }
  0xd2   : > { %2913 = vmatprep.subr.bf16.mxu0 %v2912_v18  ;;  %v928_v18 = vld [vmem:[%s4428_s6 + $0x190] sm:$0xff] }
  0xd3   : > { %v2938_v19 = vpack.c.bf16 %v928_v18, %v926_v17 }
  0xd5   : > { %2915 = vmatpush1.bf16.msra.mxu0 %v2914_v24  ;;  %v930_v24 = vld [vmem:[%s4428_s6 + $0x1a0] sm:$0xff] }
  0xd6   : > { %2917 = vmatprep.subr.bf16.mxu0 %v2916_v25  ;;  %v932_v25 = vld [vmem:[%s4428_s6 + $0x1b0] sm:$0xff] }
  0xd7   : > { %v2942_v26 = vpack.c.bf16 %v932_v25, %v930_v24 }
  0xd9   : > { %2919 = vmatpush1.bf16.msra.mxu0 %v2918_v30  ;;  %v934_v30 = vld [vmem:[%s4428_s6 + $0x1c0] sm:$0xff] }
  0xda   : > { %2921 = vmatprep.subr.bf16.mxu0 %v2920_v31  ;;  %v936_v31 = vld [vmem:[%s4428_s6 + $0x1d0] sm:$0xff] }
  0xdb   : > { %v2946_v32 = vpack.c.bf16 %v936_v31, %v934_v30 }
  0xdd   : > { %2923 = vmatpush1.bf16.msra.mxu0 %v2922_v36  ;;  %v938_v36 = vld [vmem:[%s4428_s6 + $0x1e0] sm:$0xff] }
  0xde   : > { %2925 = vmatprep.subr.bf16.mxu0 %v2924_v37  ;;  %v940_v37 = vld [vmem:[%s4428_s6 + $0x1f0] sm:$0xff] }
  0xdf   : > { %v2950_v38 = vpack.c.bf16 %v940_v37, %v938_v36 }
  0xe1   : > { %2927 = vmatpush1.bf16.msra.mxu0 %v2926_v42 }
  0xe2   : > { %2929 = vmatprep.subr.bf16.mxu0 %v2928_v43 }
  0xe5   : > { %2931 = vmatpush1.bf16.msra.mxu0 %v2930_v46 }
  0xe6   : > { %2933 = vmatprep.subr.bf16.mxu0 %v2932_v3 }
  0xe9   : > { %2935 = vmatpush1.bf16.msra.mxu0 %v2934_v12 }
  0xea   : > { %2937 = vmatprep.subr.bf16.mxu0 %v2936_v16 }
  0xed   : > { %2939 = vmatpush1.bf16.msra.mxu0 %v2938_v19 }
  0xee   : > { %2941 = vmatprep.subr.bf16.mxu0 %v2940_v22 }
  0xf1   : > { %2943 = vmatpush1.bf16.msra.mxu0 %v2942_v26 }
  0xf2   : > { %2945 = vmatprep.subr.bf16.mxu0 %v2944_v29 }
  0xf5   : > { %2947 = vmatpush1.bf16.msra.mxu0 %v2946_v32 }
  0xf6   : > { %2949 = vmatprep.subr.bf16.mxu0 %v2948_v35 }
  0xf9   : > { %2951 = vmatpush1.bf16.msra.mxu0 %v2950_v38 }
 0x18f   : > { %v3739_v47 = vpop.f32.mrb[0].mxu0 }
 0x190   : > { %v3741_v48 = vpop.f32.mrb[1].mxu0  ;;  %v681_v51 = vmul.f32 %v3739_v47, %v3739_v47 }
 0x191   : > { %v3743_v49 = vpop.f32.mrb[2].mxu0  ;;  %v682_v50 = vmul.f32 %v3741_v48, %v3741_v48 }
 0x192   : > { %v3749_v52 = vpop.f32.mrb[3].mxu0  ;;  %v683_v55 = vmul.f32 %v3743_v49, %v3743_v49 }
 0x193   : > { %v684_v53 = vmul.f32 %v3749_v52, %v3749_v52  ;;  %v3755_v54 = vpack.c.bf16 %v3749_v52, %v3741_v48  ;;  %817 = vmatprep.mubr.f32.mxu1 %v682_v50 }
 0x194   : > { %818 = vmatmul.mubr.f32.vlgmr.msra.gmra.mrb[0].mxu1 %v681_v51 }
 0x195   : > { %823 = vmatprep.mubr.f32.mxu1 %v684_v53 }
 0x197   : > { %v3759_v56 = vpop.f32.mrb[4].mxu0 }
 0x198   : > { %v3761_v57 = vpop.f32.mrb[5].mxu0  ;;  %824 = vmatmul.mubr.f32.gmra.mrb[2].mxu1 %v683_v55  ;;  %v685_v60 = vmul.f32 %v3759_v56, %v3759_v56  ;;  %v866_v55 = vsub.s32 1, %v3581_v11 }
 0x199   : > { %v686_v58 = vmul.f32 %v3761_v57, %v3761_v57  ;;  %v3765_v59 = vpop.f32.mrb[6].mxu0 }
 0x19a   : > { %v3769_v61 = vpop.f32.mrb[7].mxu0  ;;  %v687_v0 = vmul.f32 %v3765_v59, %v3765_v59 }
 0x19b   : > { %v688_v62 = vmul.f32 %v3769_v61, %v3769_v61  ;;  %v3775_v63 = vpack.c.bf16 %v3769_v61, %v3761_v57  ;;  %829 = vmatprep.mubr.f32.mxu1 %v686_v58 }
 0x19c   : > { %830 = vmatmul.mubr.f32.gmra.mrb[4].mxu1 %v685_v60  ;;  %v858_v60 = vld [vmem:[%s4426_s4] sm:$0x3] }
 0x19d   : > { %835 = vmatprep.mubr.f32.mxu1 %v688_v62  ;;  %v867_v3 = vrot.slane %v858_v60, %v866_v55  ;;  %v863_v13 = vrot.slane %v858_v60, %v3587_v14  ;;  %v1051_v60 = vld [vmem:[%s4430_s8 + $0x20] sm:$0xff] }
 0x1a0   : > { %836 = vmatmul.mubr.f32.gmra.mrb[6].mxu1 %v687_v0 }
 0x267   : > { %v819_v39 = vpop.f32.mrb[0].mxu1 }
 0x268   : > { %v820_v40 = vadd.f32 1e-06, %v819_v39  ;;  %v821_v41 = vpop.f32.mrb[1].mxu1  ;;  %v1033_v39 = vld [vmem:[%s4429_s7 + $0x10] sm:$0xff] }
 0x269   : > { %v822_v42 = vadd.f32 1e-06, %v821_v41 }
 0x26a   : > { %3112 = vrsqrt.f32 %v820_v40  ;;  %v1049_v40 = vld [vmem:[%s4430_s8 + $0x10] sm:$0xff] }
 0x26b   : > { %3114 = vrsqrt.f32 %v822_v42  ;;  %v825_v43 = vpop.f32.mrb[2].mxu1  ;;  %v1034_v42 = vld [vmem:[%s4429_s7 + $0x18] sm:$0xff] }
 0x26c   : > { %v826_v44 = vadd.f32 1e-06, %v825_v43  ;;  %v827_v45 = vpop.f32.mrb[3].mxu1  ;;  %v1050_v43 = vld [vmem:[%s4430_s8 + $0x18] sm:$0xff] }
 0x26d   : > { %v828_v46 = vadd.f32 1e-06, %v827_v45 }
 0x26e   : > { %3116 = vrsqrt.f32 %v826_v44 }
 0x26f   : > { %3118 = vrsqrt.f32 %v828_v46  ;;  %v831_v50 = vpop.f32.mrb[4].mxu1 }
 0x270   : > { %v832_v51 = vadd.f32 1e-06, %v831_v50  ;;  %v833_v53 = vpop.f32.mrb[5].mxu1 }
 0x271   : > { %v834_v58 = vadd.f32 1e-06, %v833_v53 }
 0x272   : > { %3120 = vrsqrt.f32 %v832_v51 }
 0x273   : > { %3122 = vrsqrt.f32 %v834_v58  ;;  %v837_v62 = vpop.f32.mrb[6].mxu1  ;;  %v1035_v58 = vld [vmem:[%s4429_s7 + $0x20] sm:$0xff] }
 0x274   : > { %v3113_v0 = vpop.eup %3112  ;;  %v838_v1 = vadd.f32 1e-06, %v837_v62  ;;  %v839_v2 = vpop.f32.mrb[7].mxu1 }
 0x275   : > { %v3115_v5 = vpop.eup %3114  ;;  %v850_v10 = vmul.f32 %v3113_v0, %v3739_v47  ;;  %v840_v12 = vadd.f32 1e-06, %v839_v2  ;;  %v1036_v0 = vld [vmem:[%s4429_s7 + $0x28] sm:$0xff] }
 0x276   : > { %3124 = vrsqrt.f32 %v838_v1  ;;  %v851_v15 = vmul.f32 %v3115_v5, %v3741_v48  ;;  %v1052_v1 = vld [vmem:[%s4430_s8 + $0x28] sm:$0xff] }
 0x277   : > { %3126 = vrsqrt.f32 %v840_v12  ;;  %v870_v19 = vmul.f32 %v863_v13, %v850_v10 }
 0x278   : > { %v3117_v16 = vpop.eup %3116  ;;  %v871_v17 = vmul.f32 %v867_v3, %v851_v15 }
 0x279   : > { %v3119_v18 = vpop.eup %3118  ;;  %v852_v20 = vmul.f32 %v3117_v16, %v3743_v49 }
 0x27a   : > { %1006 = vmatprep.mubr.f32.mxu0 %v871_v17  ;;  %v853_v21 = vmul.f32 %v3119_v18, %v3749_v52 }
 0x27b   : > { %1007 = vmatmul.mubr.f32.vlgmr.msra.gmra.mrb[8].mxu0 %v870_v19  ;;  %v872_v25 = vmul.f32 %v863_v13, %v852_v20  ;;  %v1053_v20 = vld [vmem:[%s4430_s8 + $0x30] sm:$0xff] }
 0x27c   : > { %v3121_v22 = vpop.eup %3120  ;;  %v873_v24 = vmul.f32 %v867_v3, %v853_v21 }
 0x27d   : > { %v3123_v47 = vpop.eup %3122  ;;  %v854_v26 = vmul.f32 %v3121_v22, %v3759_v56  ;;  %v1031_v56 = vld [vmem:[%s4429_s7] sm:$0xff]  ;;  %v1041_v46 = vmul.f32 %v1033_v39, %v872_v25  ;;  %v1038_v22 = vld [vmem:[%s4429_s7 + $0x38] sm:$0xff] }
 0x27e   : > { %1012 = vmatprep.mubr.f32.mxu0 %v873_v24  ;;  %v855_v48 = vmul.f32 %v3123_v47, %v3761_v57  ;;  %v1047_v57 = vld [vmem:[%s4430_s8] sm:$0xff]  ;;  %v1039_v34 = vmul.f32 %v1031_v56, %v870_v19  ;;  %v1042_v53 = vmul.f32 %v1034_v42, %v873_v24  ;;  %v1037_v19 = vld [vmem:[%s4429_s7 + $0x30] sm:$0xff]  ;;  %v1054_v24 = vld [vmem:[%s4430_s8 + $0x38] sm:$0xff] }
 0x27f   : > { %1013 = vmatmul.mubr.f32.gmra.mrb[10].mxu0 %v872_v25  ;;  %v874_v30 = vmul.f32 %v863_v13, %v854_v26 }
 0x280   : > { %v3125_v27 = vpop.eup %3124  ;;  %v875_v28 = vmul.f32 %v867_v3, %v855_v48 }
 0x281   : > { %v3127_v29 = vpop.eup %3126  ;;  %v856_v49 = vmul.f32 %v3125_v27, %v3765_v59  ;;  %v1032_v59 = vld [vmem:[%s4429_s7 + $0x8] sm:$0xff]  ;;  %v1043_v10 = vmul.f32 %v1035_v58, %v874_v30 }
 0x282   : > { %1018 = vmatprep.mubr.f32.mxu0 %v875_v28  ;;  %v857_v52 = vmul.f32 %v3127_v29, %v3769_v61  ;;  %v1048_v61 = vld [vmem:[%s4430_s8 + $0x8] sm:$0xff]  ;;  %v1040_v37 = vmul.f32 %v1032_v59, %v871_v17  ;;  %v1044_v17 = vmul.f32 %v1036_v0, %v875_v28 }
 0x283   : > { %1019 = vmatmul.mubr.f32.gmra.mrb[12].mxu0 %v874_v30  ;;  %v876_v32 = vmul.f32 %v863_v13, %v856_v49 }
 0x284   : > { %v877_v31 = vmul.f32 %v867_v3, %v857_v52 }
 0x285   : > { %v1045_v48 = vmul.f32 %v1037_v19, %v876_v32 }
 0x286   : > { %1024 = vmatprep.mubr.f32.mxu0 %v877_v31  ;;  %v1046_v29 = vmul.f32 %v1038_v22, %v877_v31 }
 0x287   : > { %1025 = vmatmul.mubr.f32.gmra.mrb[14].mxu0 %v876_v32 }
 0x34e   : > { %v1008_v33 = vpop.f32.mrb[8].mxu0 }
 0x34f   : > { %v1055_v35 = vmul.f32 %v1047_v57, %v1008_v33  ;;  %v1010_v36 = vpop.f32.mrb[9].mxu0 }
 0x350   : > { %v1056_v38 = vmul.f32 %v1048_v61, %v1010_v36 }
 0x351   : > { %v1063_v41 = vadd.f32 %v1055_v35, %v1039_v34 }
 0x352   : > { %v1064_v44 = vadd.f32 %v1056_v38, %v1040_v37  ;;  %v1014_v45 = vpop.f32.mrb[10].mxu0 }
 0x353   : > { %v1057_v50 = vmul.f32 %v1049_v40, %v1014_v45  ;;  %v1016_v51 = vpop.f32.mrb[11].mxu0  ;;  %v1105_v45 = vld [vmem:[%s476_s21] sm:$0x1] }
 0x354   : > { %v1058_v55 = vmul.f32 %v1050_v43, %v1016_v51  ;;  %vm1106_vm1 = vcmp.gt.s32.totalorder %v1105_v45, 0 }
 0x355   : > { %v1065_v62 = vadd.f32 %v1057_v50, %v1041_v46  ;;  %v1115_v46 = vsel %vm1106_vm1, 1, %v3240_v23  ;;  %v1081_v50 = vand.u32 127, %v522_v4 }
 0x356   : > { %v1066_v2 = vadd.f32 %v1058_v55, %v1042_v53  ;;  %v1020_v3 = vpop.f32.mrb[12].mxu0  ;;  %v1119_v51 = vrot.slane %v1115_v46, %v3587_v14  ;;  %v1074_v53 = vadd.s32 16, %v3581_v11  ;;  %v1073_v55 = vadd.s32 8, %v3581_v11 }
 0x357   : > { %v1145_v5 = vpack.c.bf16 %v1065_v62, %v1063_v41  ;;  %v1059_v12 = vmul.f32 %v1051_v60, %v1020_v3  ;;  %v1022_v13 = vpop.f32.mrb[13].mxu0  ;;  %v2968_v15 = vpack.i.bf16 %v1065_v62, %v1063_v41  ;;  %vm1107_vm3 = vcmp.le.s32.totalorder %v1081_v50, %v3581_v11 }
 0x358   : > { %v1149_v16 = vpack.c.bf16 %v1066_v2, %v1064_v44  ;;  %v1060_v18 = vmul.f32 %v1052_v1, %v1022_v13  ;;  %vm3931_vm2 = vcmp.eq.s32.totalorder %v1119_v51, 1  ;;  %vm1109_vm4 = vcmp.le.s32.totalorder %v1081_v50, %v1074_v53 }
 0x359   : > { %v1067_v21 = vadd.f32 %v1059_v12, %v1043_v10  ;;  %2969 = vrot.lane.b32.xlu0 %v2968_v15, %s3241_s27  ;;  %2760 = vmatprep.mubr.msk.bf16.mxu1 %vm1153_vm0, %v1145_v5  ;;  %v1075_v60 = vadd.s32 24, %v3581_v11  ;;  %vm1108_vm5 = vcmp.le.s32.totalorder %v1081_v50, %v1073_v55  ;;  %vm3939_vm6 = vmand %vm1107_vm3, %vm3931_vm2  ;;  %vm1763_vm3 = vcmask 785408  }
 0x35a   : > { %v1068_v47 = vadd.f32 %v1060_v18, %v1044_v17  ;;  %v1026_v25 = vpop.f32.mrb[14].mxu0  ;;  %2952 = vmatprep.subr.msk.bf16.mxu1 %vm1153_vm0, %v1149_v16  ;;  %v1167_v26 = vsel %vm1153_vm0, %v1149_v16, 0  ;;  %vm3945_vm7 = vmand %vm1109_vm4, %vm3931_vm2 }
 0x35b   : > { %v1061_v27 = vmul.f32 %v1053_v20, %v1026_v25  ;;  %v1028_v28 = vpop.f32.mrb[15].mxu0  ;;  %2757 = vmatpush3.bf16.xpose.msra.mxu1 %v1167_v26  ;;  %vm3951_vm8 = vmand %vm1108_vm5, %vm3931_vm2  ;;  %vm1110_vm9 = vcmp.le.s32.totalorder %v1081_v50, %v1075_v60  ;;  %v1079_v26 = vadd.s32 56, %v3581_v11 }
 0x35c   : > { %v1062_v30 = vmul.f32 %v1054_v24, %v1028_v28  ;;  %vm3971_vm10 = vmand %vm1110_vm9, %vm3931_vm2  ;;  %v1078_v24 = vadd.s32 48, %v3581_v11 }
 0x35d   : > { %v1069_v49 = vadd.f32 %v1061_v27, %v1045_v48  ;;  %1426 = vrot.lane.b32.xlu0 %v1145_v5, %s3242_s18  ;;  %v2581_v27 = vadd.s32 4294967264, %v1079_v26 }
 0x35e   : > { %v1070_v52 = vadd.f32 %v1062_v30, %v1046_v29  ;;  %v2580_v25 = vadd.s32 4294967264, %v1078_v24 }
 0x35f   : > { %v1146_v56 = vpack.c.bf16 %v1069_v49, %v1067_v21  ;;  %v2973_v57 = vpack.i.bf16 %v1069_v49, %v1067_v21  ;;  %vm1114_vm14 = vcmp.le.s32.totalorder %v1081_v50, %v2581_v27 }
 0x360   : > { %v1150_v59 = vpack.c.bf16 %v1070_v52, %v1068_v47  ;;  %v1077_v47 = vadd.s32 40, %v3581_v11  ;;  %vm1113_vm11 = vcmp.le.s32.totalorder %v1081_v50, %v2580_v25  ;;  %vm4014_vm1 = vmand %vm1114_vm14, %vm3931_vm2 }
 0x361   : > { %2974 = vrot.lane.b32.xlu1 %v2973_v57, %s3241_s27  ;;  %vm3992_vm12 = vmand %vm1113_vm11, %vm3931_vm2 }
 0x362   : > { %2953 = vmatprep.subr.msk.bf16.mxu1 %vm1153_vm0, %v1150_v59  ;;  %v1170_v61 = vsel %vm1153_vm0, %v1150_v59, 0  ;;  %v2579_v48 = vadd.s32 4294967264, %v1077_v47 }
 0x363   : > { %2759 = vmatpush3.bf16.xpose.msra.mxu1 %v1170_v61 }
 0x364   : > { %vm1112_vm13 = vcmp.le.s32.totalorder %v1081_v50, %v2579_v48 }
 0x365   : > { %1436 = vrot.lane.b32.xlu1 %v1149_v16, %s3241_s27  ;;  %vm4002_vm15 = vmand %vm1112_vm13, %vm3931_vm2  ;;  %vm1758_vm2 = vcmask 523264  }
 0x369   : > { %1438 = vrot.lane.b32.xlu1 %v1150_v59, %s3241_s27 }
 0x36a   : > { %2761 = vmatmul.mubr.msk.bf16.vlgmr.msra.gmra.mrb[8].mxu1 %vm1153_vm0, %v1146_v56 }
 0x36d   : > { %1428 = vrot.lane.b32.xlu1 %v1146_v56, %s3242_s18 }
 0x3cb   : > { %v2970_v31 = vpop.permute.xlu0 %2969 }
 0x3cc   : > { %v2972_v32 = vunpack.i.h.bf16 %v2970_v31  ;;  %v2971_v33 = vunpack.i.l.bf16 %v2970_v31 }
 0x3ce   : > { %v1147_v34 = vpack.c.bf16 %v2972_v32, %v2971_v33 }
 0x3cf   : > { %v1427_v35 = vpop.permute.xlu0 %1426 }
 0x3d0   : > { %1430 = vrot.lane.b32.xlu0 %v1147_v34, %s3242_s18  ;;  %2764 = vmatprep.mubr.msk.bf16.mxu1 %vm1153_vm0, %v1147_v34 }
 0x3d1   : > { %2784 = vmatprep.mubr.msk.bf16.mxu0 %vm1153_vm0, %v1427_v35 }
 0x3d3   : > { %v2975_v36 = vpop.permute.xlu1 %2974 }
 0x3d4   : > { %v2977_v37 = vunpack.i.h.bf16 %v2975_v36  ;;  %v2976_v38 = vunpack.i.l.bf16 %v2975_v36 }
 0x3d6   : > { %v1148_v39 = vpack.c.bf16 %v2977_v37, %v2976_v38 }
 0x3d7   : > { %v1437_v40 = vpop.permute.xlu1 %1436 }
 0x3d8   : > { %v1453_v41 = vsel %vm1153_vm0, %v1437_v40, 0  ;;  %2954 = vmatprep.subr.msk.bf16.mxu0 %vm1153_vm0, %v1437_v40  ;;  %1432 = vrot.lane.b32.xlu1 %v1148_v39, %s3242_s18 }
 0x3d9   : > { %2765 = vmatmul.mubr.msk.bf16.gmra.mrb[12].mxu1 %vm1153_vm0, %v1148_v39  ;;  %2781 = vmatpush3.bf16.xpose.msra.mxu0 %v1453_v41 }
 0x3db   : > { %v1439_v42 = vpop.permute.xlu1 %1438 }
 0x3dc   : > { %2955 = vmatprep.subr.msk.bf16.mxu0 %vm1153_vm0, %v1439_v42  ;;  %v1456_v43 = vsel %vm1153_vm0, %v1439_v42, 0 }
 0x3df   : > { %v1429_v44 = vpop.permute.xlu1 %1428 }
 0x3e1   : > { %2783 = vmatpush3.bf16.xpose.msra.mxu0 %v1456_v43 }
 0x3e8   : > { %2785 = vmatmul.mubr.msk.bf16.vlgmr.msra.gmra.mrb[16].mxu0 %vm1153_vm0, %v1429_v44 }
 0x43d   : > { %v2762_v0 = vpop.f32.mrb[8].mxu1 }
 0x43e   : > { %v1206_v1 = vpop.f32.mrb[9].mxu1  ;;  %v3963_v13 = vsel %vm3945_vm7, %v2762_v0, -1.7014117e+38 }
 0x43f   : > { %v3957_v3 = vsel %vm3939_vm6, %v1206_v1, -1.7014117e+38  ;;  %v2763_v5 = vpop.f32.mrb[10].mxu1  ;;  %v1251_v19 = vsel %vm1153_vm0, %v3963_v13, -inf }
 0x440   : > { %v1209_v10 = vpop.f32.mrb[11].mxu1  ;;  %v1245_v12 = vsel %vm1153_vm0, %v3957_v3, -inf  ;;  %v3982_v20 = vsel %vm3971_vm10, %v2763_v5, -1.7014117e+38 }
 0x441   : > { %v3967_v15 = vsel %vm3951_vm8, %v1209_v10, -1.7014117e+38  ;;  %1246 = vmax.xlane.f32.xlu0 %v1245_v12  ;;  %v1254_v21 = vsel %vm1153_vm0, %v3982_v20, -inf }
 0x442   : > { %v1431_v17 = vpop.permute.xlu0 %1430  ;;  %v1248_v18 = vsel %vm1153_vm0, %v3967_v15, -inf }
 0x443   : > { %2788 = vmatprep.mubr.msk.bf16.mxu0 %vm1153_vm0, %v1431_v17  ;;  %1249 = vmax.xlane.f32.xlu1 %v1248_v18 }
 0x445   : > { %1252 = vmax.xlane.f32.xlu0 %v1251_v19 }
 0x449   : > { %1255 = vmax.xlane.f32.xlu0 %v1254_v21 }
 0x44a   : > { %v1433_v22 = vpop.permute.xlu1 %1432 }
 0x44b   : > { %2789 = vmatmul.mubr.msk.bf16.gmra.mrb[20].mxu0 %vm1153_vm0, %v1433_v22 }
 0x4ac   : > { %v2766_v29 = vpop.f32.mrb[12].mxu1 }
 0x4ad   : > { %v3998_v30 = vsel %vm3992_vm12, %v2766_v29, -1.7014117e+38  ;;  %v1222_v49 = vpop.f32.mrb[13].mxu1 }
 0x4ae   : > { %v2767_v52 = vpop.f32.mrb[14].mxu1  ;;  %v1263_v56 = vsel %vm1153_vm0, %v3998_v30, -inf  ;;  %v4010_v57 = vsel %vm3939_vm6, %v1222_v49, -1.7014117e+38 }
 0x4af   : > { %1264 = vmax.xlane.f32.xlu0 %v1263_v56  ;;  %v1225_v61 = vpop.f32.mrb[15].mxu1  ;;  %v4026_v33 = vsel %vm4014_vm1, %v2767_v52, -1.7014117e+38  ;;  %v1257_v34 = vsel %vm1153_vm0, %v4010_v57, -inf }
 0x4b0   : > { %v4020_v31 = vsel %vm4002_vm15, %v1225_v61, -1.7014117e+38  ;;  %v1266_v35 = vsel %vm1153_vm0, %v4026_v33, -inf }
 0x4b1   : > { %v1260_v32 = vsel %vm1153_vm0, %v4020_v31, -inf }
 0x4b2   : > { %1261 = vmax.xlane.f32.xlu1 %v1260_v32 }
 0x4b3   : > { %1258 = vmax.xlane.f32.xlu0 %v1257_v34 }
 0x4b6   : > { %1267 = vmax.xlane.f32.xlu1 %v1266_v35 }
 0x4bb   : > { %v2786_v36 = vpop.f32.mrb[16].mxu0 }
 0x4bc   : > { %v4034_v37 = vsel %vm3945_vm7, %v2786_v36, -1.7014117e+38  ;;  %v1492_v38 = vpop.f32.mrb[17].mxu0 }
 0x4bd   : > { %v2787_v39 = vpop.f32.mrb[18].mxu0  ;;  %v1537_v40 = vsel %vm1153_vm0, %v4034_v37, -inf  ;;  %v4040_v41 = vsel %vm3939_vm6, %v1492_v38, -1.7014117e+38 }
 0x4be   : > { %v1495_v42 = vpop.f32.mrb[19].mxu0  ;;  %1538 = vmax.xlane.f32.xlu0 %v1537_v40  ;;  %v4050_v45 = vsel %vm3971_vm10, %v2787_v39, -1.7014117e+38  ;;  %v1531_v46 = vsel %vm1153_vm0, %v4040_v41, -inf }
 0x4bf   : > { %v4044_v43 = vsel %vm3951_vm8, %v1495_v42, -1.7014117e+38  ;;  %v1540_v50 = vsel %vm1153_vm0, %v4050_v45, -inf }
 0x4c0   : > { %v1534_v44 = vsel %vm1153_vm0, %v4044_v43, -inf }
 0x4c1   : > { %1535 = vmax.xlane.f32.xlu1 %v1534_v44 }
 0x4c2   : > { %1532 = vmax.xlane.f32.xlu0 %v1531_v46 }
 0x4c5   : > { %1541 = vmax.xlane.f32.xlu1 %v1540_v50 }
 0x4ce   : > { %v1247_v51 = vpop.xlane.xlu0 %1246 }
 0x4cf   : > { %v1269_v55 = vsub.f32 %v3957_v3, %v1247_v51 }
 0x4d0   : > { %v1250_v58 = vpop.xlane.xlu1 %1249 }
 0x4d1   : > { %v1270_v60 = vsub.f32 %v3967_v15, %v1250_v58  ;;  %v1277_v62 = vmul.f32 1.442695, %v1269_v55 }
 0x4d2   : > { %v1253_v53 = vpop.xlane.xlu0 %1252 }
 0x4d3   : > { %v1271_v0 = vsub.f32 %v3963_v13, %v1253_v53  ;;  %v1279_v2 = vmul.f32 1.442695, %v1270_v60  ;;  %3128 = vpow2.f32 %v1277_v62 }
 0x4d5   : > { %v1281_v10 = vmul.f32 1.442695, %v1271_v0  ;;  %3130 = vpow2.f32 %v1279_v2 }
 0x4d6   : > { %v1256_v1 = vpop.xlane.xlu0 %1255 }
 0x4d7   : > { %v1272_v5 = vsub.f32 %v3982_v20, %v1256_v1  ;;  %3132 = vpow2.f32 %v1281_v10 }
 0x4d9   : > { %v1283_v12 = vmul.f32 1.442695, %v1272_v5 }
 0x4db   : > { %3134 = vpow2.f32 %v1283_v12 }
 0x4dd   : > { %v4082_v24 = vpop.eup %3128 }
 0x4de   : > { %v1293_v26 = vsel %vm1153_vm0, %v4082_v24, 0.0 }
 0x4df   : > { %v4086_v25 = vpop.eup %3130 }
 0x4e0   : > { %v1296_v27 = vsel %vm1153_vm0, %v4086_v25, 0.0 }
 0x4e1   : > { %v4090_v48 = vpop.eup %3132 }
 0x4e2   : > { %v1299_v29 = vsel %vm1153_vm0, %v4090_v48, 0.0 }
 0x4e5   : > { %v4094_v28 = vpop.eup %3134 }
 0x4e6   : > { %v1302_v49 = vsel %vm1153_vm0, %v4094_v28, 0.0 }
 0x51e   : > { %v2790_v16 = vpop.f32.mrb[20].mxu0 }
 0x51f   : > { %v4062_v17 = vsel %vm3992_vm12, %v2790_v16, -1.7014117e+38  ;;  %v1508_v3 = vpop.f32.mrb[21].mxu0 }
 0x520   : > { %v2791_v18 = vpop.f32.mrb[22].mxu0  ;;  %v1549_v15 = vsel %vm1153_vm0, %v4062_v17, -inf  ;;  %v4068_v13 = vsel %vm3939_vm6, %v1508_v3, -1.7014117e+38 }
 0x521   : > { %v1511_v19 = vpop.f32.mrb[23].mxu0  ;;  %1550 = vmax.xlane.f32.xlu0 %v1549_v15  ;;  %v4078_v22 = vsel %vm4014_vm1, %v2791_v18, -1.7014117e+38  ;;  %v1543_v4 = vsel %vm1153_vm0, %v4068_v13, -inf }
 0x522   : > { %v4072_v20 = vsel %vm4002_vm15, %v1511_v19, -1.7014117e+38  ;;  %v1552_v47 = vsel %vm1153_vm0, %v4078_v22, -inf }
 0x523   : > { %v1546_v21 = vsel %vm1153_vm0, %v4072_v20, -inf }
 0x524   : > { %1547 = vmax.xlane.f32.xlu1 %v1546_v21 }
 0x525   : > { %1544 = vmax.xlane.f32.xlu0 %v1543_v4 }
 0x528   : > { %1553 = vmax.xlane.f32.xlu1 %v1552_v47 }
 0x529   : > { %1294 = vadd.xlane.f32.xlu0 %v1293_v26 }
 0x52c   : > { %1297 = vadd.xlane.f32.xlu1 %v1296_v27 }
 0x52d   : > { %1300 = vadd.xlane.f32.xlu0 %v1299_v29 }
 0x530   : > { %1303 = vadd.xlane.f32.xlu1 %v1302_v49 }
 0x53c   : > { %v1265_v61 = vpop.xlane.xlu0 %1264 }
 0x53d   : > { %v1275_v36 = vsub.f32 %v3998_v30, %v1265_v61 }
 0x53f   : > { %v1262_v11 = vpop.xlane.xlu1 %1261  ;;  %v1289_v40 = vmul.f32 1.442695, %v1275_v36 }
 0x540   : > { %v1274_v52 = vsub.f32 %v4020_v31, %v1262_v11  ;;  %v1259_v35 = vpop.xlane.xlu0 %1258 }
 0x541   : > { %v1273_v42 = vsub.f32 %v4010_v57, %v1259_v35 }
 0x542   : > { %v1287_v32 = vmul.f32 1.442695, %v1274_v52 }
 0x543   : > { %v1268_v56 = vpop.xlane.xlu1 %1267  ;;  %1339 = vrot.lane.b32.xlu0 %v3755_v54, %s3242_s18  ;;  %v1285_v53 = vmul.f32 1.442695, %v1273_v42 }
 0x544   : > { %v1276_v59 = vsub.f32 %v4026_v33, %v1268_v56 }
 0x546   : > { %v1291_v34 = vmul.f32 1.442695, %v1276_v59 }
 0x548   : > { %3136 = vpow2.f32 %v1291_v34 }
 0x549   : > { %3138 = vpow2.f32 %v1287_v32 }
 0x54a   : > { %3140 = vpow2.f32 %v1289_v40 }
 0x54b   : > { %v1539_v39 = vpop.xlane.xlu0 %1538 }
 0x54c   : > { %v1557_v30 = vsub.f32 %v4034_v37, %v1539_v39 }
 0x54e   : > { %v1536_v38 = vpop.xlane.xlu1 %1535  ;;  %v1567_v60 = vmul.f32 1.442695, %v1557_v30 }
 0x54f   : > { %v1556_v31 = vsub.f32 %v4044_v43, %v1536_v38  ;;  %v1533_v58 = vpop.xlane.xlu0 %1532 }
 0x551   : > { %v1565_v55 = vmul.f32 1.442695, %v1556_v31 }
 0x552   : > { %v4107_v44 = vpop.eup %3136  ;;  %v1542_v46 = vpop.xlane.xlu1 %1541 }
 0x553   : > { %v1558_v33 = vsub.f32 %v4050_v45, %v1542_v46  ;;  %v1314_v50 = vsel %vm1153_vm0, %v4107_v44, 0.0  ;;  %v4112_v51 = vpop.eup %3138  ;;  %v1555_v45 = vsub.f32 %v4040_v41, %v1533_v58 }
 0x554   : > { %1315 = vadd.xlane.f32.xlu1 %v1314_v50  ;;  %v1308_v43 = vsel %vm1153_vm0, %v4112_v51, 0.0  ;;  %v4118_v0 = vpop.eup %3140 }
 0x555   : > { %v1569_v57 = vmul.f32 1.442695, %v1558_v33  ;;  %v1563_v62 = vmul.f32 1.442695, %v1555_v45  ;;  %v1311_v1 = vsel %vm1153_vm0, %v4118_v0, 0.0 }
 0x557   : > { %3142 = vpow2.f32 %v1569_v57 }
 0x558   : > { %3144 = vpow2.f32 %v1285_v53  ;;  %1309 = vadd.xlane.f32.xlu1 %v1308_v43 }
 0x559   : > { %3146 = vpow2.f32 %v1565_v55 }
 0x55a   : > { %3148 = vpow2.f32 %v1567_v60 }
 0x55b   : > { %3150 = vpow2.f32 %v1563_v62 }
 0x561   : > { %v4120_v37 = vpop.eup %3142 }
 0x562   : > { %v4124_v2 = vpop.eup %3144  ;;  %1312 = vadd.xlane.f32.xlu0 %v1311_v1  ;;  %v1588_v5 = vsel %vm1153_vm0, %v4120_v37, 0.0 }
 0x563   : > { %v4128_v10 = vpop.eup %3146  ;;  %1589 = vadd.xlane.f32.xlu1 %v1588_v5  ;;  %v1305_v41 = vsel %vm1153_vm0, %v4124_v2, 0.0 }
 0x564   : > { %v4132_v12 = vpop.eup %3148  ;;  %v1582_v16 = vsel %vm1153_vm0, %v4128_v10, 0.0 }
 0x565   : > { %v1585_v3 = vsel %vm1153_vm0, %v4132_v12, 0.0  ;;  %v4138_v18 = vpop.eup %3150 }
 0x566   : > { %1306 = vadd.xlane.f32.xlu0 %v1305_v41  ;;  %v1579_v15 = vsel %vm1153_vm0, %v4138_v18, 0.0 }
 0x567   : > { %1583 = vadd.xlane.f32.xlu1 %v1582_v16 }
 0x56a   : > { %1586 = vadd.xlane.f32.xlu0 %v1585_v3 }
 0x56e   : > { %1580 = vadd.xlane.f32.xlu0 %v1579_v15 }
 0x584   : > { %1623 = vrot.lane.b32.xlu0 %v3755_v54, %s3243_s22 }
 0x588   : > { %1625 = vrot.lane.b32.xlu0 %v3775_v63, %s3243_s22 }
 0x5ae   : > { %v1551_v19 = vpop.xlane.xlu0 %1550 }
 0x5af   : > { %v1561_v21 = vsub.f32 %v4062_v17, %v1551_v19 }
 0x5b1   : > { %v1575_v4 = vmul.f32 1.442695, %v1561_v21  ;;  %v1548_v47 = vpop.xlane.xlu1 %1547 }
 0x5b2   : > { %v1545_v26 = vpop.xlane.xlu0 %1544  ;;  %v1560_v29 = vsub.f32 %v4072_v20, %v1548_v47 }
 0x5b3   : > { %3152 = vpow2.f32 %v1575_v4  ;;  %v1559_v27 = vsub.f32 %v4068_v13, %v1545_v26 }
 0x5b4   : > { %v1573_v59 = vmul.f32 1.442695, %v1560_v29 }
 0x5b5   : > { %v1571_v49 = vmul.f32 1.442695, %v1559_v27  ;;  %v1554_v11 = vpop.xlane.xlu1 %1553 }
 0x5b6   : > { %v1562_v52 = vsub.f32 %v4078_v22, %v1554_v11  ;;  %v1295_v56 = vpop.xlane.xlu0 %1294 }
 0x5b7   : > { %3154 = vpow2.f32 %v1571_v49 }
 0x5b8   : > { %v1577_v54 = vmul.f32 1.442695, %v1562_v52  ;;  %3156 = vrcp.f32 %v1295_v56 }
 0x5b9   : > { %v1298_v61 = vpop.xlane.xlu1 %1297 }
 0x5ba   : > { %3158 = vpow2.f32 %v1577_v54  ;;  %v1301_v17 = vpop.xlane.xlu0 %1300 }
 0x5bb   : > { %3160 = vrcp.f32 %v1298_v61 }
 0x5bc   : > { %3162 = vpow2.f32 %v1573_v59 }
 0x5bd   : > { %v4150_v32 = vpop.eup %3152  ;;  %v1304_v50 = vpop.xlane.xlu1 %1303 }
 0x5be   : > { %v1340_v34 = vpop.permute.xlu0 %1339  ;;  %v1597_v13 = vsel %vm1153_vm0, %v4150_v32, 0.0  ;;  %3164 = vrcp.f32 %v1304_v50 }
 0x5bf   : > { %2768 = vmatprep.subr.bf16.mxu1 %v1340_v34  ;;  %1598 = vadd.xlane.f32.xlu1 %v1597_v13 }
 0x5c0   : > { %2769 = vmatpush3.bf16.msra.mxu1 %v1340_v34 }
 0x5c1   : > { %v4154_v20 = vpop.eup %3154 }
 0x5c2   : > { %v1591_v22 = vsel %vm1153_vm0, %v4154_v20, 0.0  ;;  %v3157_v35 = vpop.eup %3156 }
 0x5c3   : > { %1592 = vadd.xlane.f32.xlu1 %v1591_v22  ;;  %v1325_v40 = vmul.f32 %v3157_v35, %v4082_v24 }
 0x5c4   : > { %v4158_v36 = vpop.eup %3158 }
 0x5c5   : > { %v3161_v38 = vpop.eup %3160  ;;  %v1600_v39 = vsel %vm1153_vm0, %v4158_v36, 0.0 }
 0x5c6   : > { %v1326_v42 = vmul.f32 %v3161_v38, %v4086_v25  ;;  %v4164_v31 = vpop.eup %3162 }
 0x5c7   : > { %1601 = vadd.xlane.f32.xlu1 %v1600_v39  ;;  %v1594_v33 = vsel %vm1153_vm0, %v4164_v31, 0.0 }
 0x5c8   : > { %v1333_v46 = vpack.c.bf16 %v1326_v42, %v1325_v40  ;;  %v3165_v1 = vpop.eup %3164 }
 0x5c9   : > { %v1328_v3 = vmul.f32 %v3165_v1, %v4094_v28 }
 0x5ca   : > { %2772 = vmatprep.mubr.msk.bf16.mxu1 %vm1153_vm0, %v1333_v46 }
 0x5cb   : > { %1595 = vadd.xlane.f32.xlu1 %v1594_v33  ;;  %v3035_v33 = vld [vmem:[%s4431_s9 + $0x18] sm:$0xff]  }
 0x5dc   : > { %1341 = vrot.lane.b32.xlu1 %v3775_v63, %s3242_s18 }
 0x5e1   : > { %v1316_v53 = vpop.xlane.xlu1 %1315 }
 0x5e5   : > { %v1310_v30 = vpop.xlane.xlu1 %1309 }
 0x5ef   : > { %v1313_v55 = vpop.xlane.xlu0 %1312 }
 0x5f0   : > { %v1590_v24 = vpop.xlane.xlu1 %1589 }
 0x5f3   : > { %v1307_v58 = vpop.xlane.xlu0 %1306 }
 0x5f4   : > { %v1584_v25 = vpop.xlane.xlu1 %1583  ;;  %3166 = vrcp.f32 %v1307_v58  ;;  %v3037_v58 = vld [vmem:[%s4431_s9 + $0x28] sm:$0xff]  }
 0x5f5   : > { %3168 = vrcp.f32 %v1301_v17 }
 0x5f6   : > { %3170 = vrcp.f32 %v1310_v30 }
 0x5f7   : > { %v1587_v43 = vpop.xlane.xlu0 %1586  ;;  %3172 = vrcp.f32 %v1313_v55 }
 0x5fb   : > { %v1581_v45 = vpop.xlane.xlu0 %1580 }
 0x5fc   : > { %3174 = vrcp.f32 %v1581_v45 }
 0x5fd   : > { %3176 = vrcp.f32 %v1316_v53  ;;  %v3036_v53 = vld [vmem:[%s4431_s9 + $0x20] sm:$0xff]  }
 0x5fe   : > { %v3167_v5 = vpop.eup %3166  ;;  %3178 = vrcp.f32 %v1584_v25 }
 0x5ff   : > { %v3169_v41 = vpop.eup %3168  ;;  %v1624_v15 = vpop.permute.xlu0 %1623  ;;  %v1329_v21 = vmul.f32 %v3167_v5, %v4124_v2  ;;  %3180 = vrcp.f32 %v1587_v43  ;;  %v3038_v43 = vld [vmem:[%s4431_s9 + $0x30] sm:$0xff]  }
 0x600   : > { %v3171_v16 = vpop.eup %3170  ;;  %v1327_v4 = vmul.f32 %v3169_v41, %v4090_v48 }
 0x601   : > { %v1330_v47 = vmul.f32 %v3171_v16, %v4112_v51  ;;  %v3173_v27 = vpop.eup %3172 }
 0x602   : > { %v1334_v26 = vpack.c.bf16 %v1328_v3, %v1327_v4  ;;  %v1331_v2 = vmul.f32 %v3173_v27, %v4118_v0 }
 0x603   : > { %v1335_v29 = vpack.c.bf16 %v1330_v47, %v1329_v21  ;;  %v1626_v11 = vpop.permute.xlu0 %1625 }
 0x606   : > { %v3175_v49 = vpop.eup %3174 }
 0x607   : > { %v3177_v28 = vpop.eup %3176  ;;  %v1611_v51 = vmul.f32 %v3175_v49, %v4138_v18 }
 0x608   : > { %v3179_v48 = vpop.eup %3178  ;;  %v1332_v52 = vmul.f32 %v3177_v28, %v4107_v44 }
 0x609   : > { %v1612_v56 = vmul.f32 %v3179_v48, %v4128_v10  ;;  %v3181_v59 = vpop.eup %3180 }
 0x60a   : > { %v1336_v54 = vpack.c.bf16 %v1332_v52, %v1331_v2  ;;  %v1613_v0 = vmul.f32 %v3181_v59, %v4132_v12  ;;  %v3033_v12 = vld [vmem:[%s4431_s9 + $0x8] sm:$0xff]  }
 0x60b   : > { %v1619_v61 = vpack.c.bf16 %v1612_v56, %v1611_v51 }
 0x64c   : > { %v1599_v57 = vpop.xlane.xlu1 %1598 }
 0x650   : > { %v1593_v60 = vpop.xlane.xlu1 %1592 }
 0x654   : > { %v1602_v62 = vpop.xlane.xlu1 %1601 }
 0x658   : > { %v1596_v63 = vpop.xlane.xlu1 %1595 }
 0x659   : > { %3182 = vrcp.f32 %v1596_v63  ;;  %v3039_v63 = vld [vmem:[%s4431_s9 + $0x38] sm:$0xff]  }
 0x65a   : > { %3184 = vrcp.f32 %v1590_v24 }
 0x65b   : > { %3186 = vrcp.f32 %v1593_v60 }
 0x65c   : > { %v1342_v19 = vpop.permute.xlu1 %1341  ;;  %3188 = vrcp.f32 %v1602_v62 }
 0x65d   : > { %2770 = vmatprep.subr.bf16.mxu1 %v1342_v19  ;;  %3190 = vrcp.f32 %v1599_v57 }
 0x65e   : > { %2771 = vmatpush3.bf16.msra.mxu1 %v1342_v19 }
 0x65f   : > { %2792 = vmatprep.subr.bf16.mxu1 %v1624_v15 }
 0x661   : > { %2773 = vmatmul.mubr.msk.bf16.vlgmr.msra.gmra.mrb[16].mxu1 %vm1153_vm0, %v1334_v26 }
 0x662   : > { %2776 = vmatprep.mubr.msk.bf16.mxu1 %vm1153_vm0, %v1335_v29  ;;  %2793 = vmatpush3.bf16.msra.mxu1 %v1624_v15 }
 0x663   : > { %2794 = vmatprep.subr.bf16.mxu1 %v1626_v11  ;;  %v3183_v17 = vpop.eup %3182 }
 0x664   : > { %v3185_v34 = vpop.eup %3184  ;;  %v1616_v18 = vmul.f32 %v3183_v17, %v4164_v31 }
 0x665   : > { %v3187_v13 = vpop.eup %3186  ;;  %v1614_v44 = vmul.f32 %v3185_v34, %v4120_v37  ;;  %v3032_v37 = vld [vmem:[%s4431_s9] sm:$0xff]  }
 0x666   : > { %2795 = vmatpush3.bf16.msra.mxu1 %v1626_v11  ;;  %v1615_v22 = vmul.f32 %v3187_v13, %v4154_v20  ;;  %v3189_v35 = vpop.eup %3188  ;;  %2804 = vmatprep.subr.bf16.mxu0 %v3032_v37 }
 0x667   : > { %v1620_v10 = vpack.c.bf16 %v1614_v44, %v1613_v0  ;;  %v3191_v39 = vpop.eup %3190  ;;  %v1618_v40 = vmul.f32 %v3189_v35, %v4158_v36  ;;  %2805 = vmatpush3.bf16.msra.mxu0 %v3032_v37 }
 0x668   : > { %v1621_v38 = vpack.c.bf16 %v1616_v18, %v1615_v22  ;;  %v1617_v42 = vmul.f32 %v3191_v39, %v4150_v32  ;;  %2806 = vmatprep.subr.bf16.mxu0 %v3033_v12  ;;  %v3034_v32 = vld [vmem:[%s4431_s9 + $0x10] sm:$0xff]  }
 0x669   : > { %2777 = vmatmul.mubr.msk.bf16.gmra.mrb[20].mxu1 %vm1153_vm0, %v1336_v54 }
 0x66a   : > { %2796 = vmatprep.mubr.msk.bf16.mxu1 %vm1153_vm0, %v1619_v61  ;;  %v1622_v46 = vpack.c.bf16 %v1618_v40, %v1617_v42 }
 0x66b   : > { %2807 = vmatpush3.bf16.msra.mxu0 %v3033_v12 }
 0x66c   : > { %2808 = vmatprep.subr.bf16.mxu0 %v3034_v32 }
 0x66f   : > { %2809 = vmatpush3.bf16.msra.mxu0 %v3034_v32 }
 0x670   : > { %2810 = vmatprep.subr.bf16.mxu0 %v3035_v33 }
 0x671   : > { %2797 = vmatmul.mubr.msk.bf16.vlgmr.msra.gmra.mrb[24].mxu1 %vm1153_vm0, %v1620_v10 }
 0x672   : > { %2800 = vmatprep.mubr.msk.bf16.mxu1 %vm1153_vm0, %v1621_v38 }
 0x673   : > { %2811 = vmatpush3.bf16.msra.mxu0 %v3035_v33  ;;  %v3043_v33 = vld [vmem:[%s4434_s12] ss:$8 sps:$4 sm:$0xff]  }
 0x674   : > { %2812 = vmatprep.subr.bf16.mxu0 %v3036_v53 }
 0x677   : > { %2813 = vmatpush3.bf16.msra.mxu0 %v3036_v53  ;;  %v3048_v53 = vld [vmem:[%s4433_s11 + $0x14] ss:$8 sps:$4 sm:$0xff]  }
 0x678   : > { %2814 = vmatprep.subr.bf16.mxu0 %v3037_v58 }
 0x679   : > { %2801 = vmatmul.mubr.msk.bf16.gmra.mrb[28].mxu1 %vm1153_vm0, %v1622_v46 }
 0x67a   : > { %2051 = vmatprep.mubr.bf16.mxu1 %v3240_v23 }
 0x67b   : > { %2815 = vmatpush3.bf16.msra.mxu0 %v3037_v58  ;;  %v3054_v58 = vld [vmem:[%s4433_s11 + $0x24] ss:$8 sps:$4 sm:$0xff]  }
 0x67c   : > { %2816 = vmatprep.subr.bf16.mxu0 %v3038_v43 }
 0x67f   : > { %2817 = vmatpush3.bf16.msra.mxu0 %v3038_v43  ;;  %v3055_v43 = vld [vmem:[%s4434_s12 + $0x20] ss:$8 sps:$4 sm:$0xff]  }
 0x680   : > { %2818 = vmatprep.subr.bf16.mxu0 %v3039_v63 }
 0x683   : > { %2819 = vmatpush3.bf16.msra.mxu0 %v3039_v63 }
 0x734   : > { %v2774_v20 = vpop.f32.mrb[16].mxu1 }
 0x735   : > { %v1391_v36 = vpop.f32.mrb[17].mxu1 }
 0x736   : > { %v2775_v31 = vpop.f32.mrb[18].mxu1 }
 0x737   : > { %v1394_v50 = vpop.f32.mrb[19].mxu1 }
 0x73c   : > { %v2778_v30 = vpop.f32.mrb[20].mxu1 }
 0x73d   : > { %v1407_v55 = vpop.f32.mrb[21].mxu1 }
 0x73e   : > { %v2779_v24 = vpop.f32.mrb[22].mxu1 }
 0x73f   : > { %v2978_v25 = vpack.i.bf16 %v2779_v24, %v2778_v30  ;;  %v1410_v57 = vpop.f32.mrb[23].mxu1  ;;  %v3051_v30 = vld [vmem:[%s4434_s12 + $0x14] ss:$8 sps:$4 sm:$0xff]   ;;  %v3049_v24 = vld [vmem:[%s4434_s12 + $0x10] ss:$8 sps:$4 sm:$0xff]  }
 0x740   : > { %v2983_v60 = vpack.i.bf16 %v1410_v57, %v1407_v55  ;;  %v3046_v55 = vld [vmem:[%s4433_s11 + $0x10] ss:$8 sps:$4 sm:$0xff]   ;;  %v3052_v57 = vld [vmem:[%s4433_s11 + $0x20] ss:$8 sps:$4 sm:$0xff]  }
 0x741   : > { %2979 = vrot.lane.b32.xlu1 %v2978_v25, %s3243_s22  ;;  %v3057_v25 = vld [vmem:[%s4434_s12 + $0x24] ss:$8 sps:$4 sm:$0xff]  }
 0x742   : > { %2984 = vrot.lane.b32.xlu0 %v2983_v60, %s3243_s22 }
 0x744   : > { %v2798_v45 = vpop.f32.mrb[24].mxu1 }
 0x745   : > { %v1675_v62 = vpop.f32.mrb[25].mxu1 }
 0x746   : > { %v2799_v1 = vpop.f32.mrb[26].mxu1 }
 0x747   : > { %v2988_v5 = vpack.i.bf16 %v2799_v1, %v2798_v45  ;;  %v1678_v41 = vpop.f32.mrb[27].mxu1 }
 0x748   : > { %v2993_v16 = vpack.i.bf16 %v1678_v41, %v1675_v62 }
 0x749   : > { %2989 = vrot.lane.b32.xlu1 %v2988_v5, %s3242_s18 }
 0x74a   : > { %2994 = vrot.lane.b32.xlu0 %v2993_v16, %s3242_s18 }
 0x74c   : > { %v2802_v3 = vpop.f32.mrb[28].mxu1 }
 0x74d   : > { %v1691_v15 = vpop.f32.mrb[29].mxu1 }
 0x74e   : > { %v2803_v19 = vpop.f32.mrb[30].mxu1 }
 0x74f   : > { %v3003_v21 = vpack.i.bf16 %v2803_v19, %v2802_v3  ;;  %v1694_v4 = vpop.f32.mrb[31].mxu1  ;;  %v3063_v19 = vld [vmem:[%s4434_s12 + $0x34] ss:$8 sps:$4 sm:$0xff]  }
 0x750   : > { %v2998_v47 = vpack.i.bf16 %v1694_v4, %v1691_v15  ;;  %v3066_v4 = vld [vmem:[%s4433_s11 + $0x44] ss:$8 sps:$4 sm:$0xff]  }
 0x751   : > { %3004 = vrot.lane.b32.xlu1 %v3003_v21, %s3241_s27  ;;  %v3061_v21 = vld [vmem:[%s4434_s12 + $0x30] ss:$8 sps:$4 sm:$0xff]  }
 0x752   : > { %2999 = vrot.lane.b32.xlu0 %v2998_v47, %s3241_s27  ;;  %v3069_v47 = vld [vmem:[%s4434_s12 + $0x44] ss:$8 sps:$4 sm:$0xff]  }
 0x7b3   : > { %v2980_v26 = vpop.permute.xlu1 %2979 }
 0x7b4   : > { %v2985_v27 = vpop.permute.xlu0 %2984  ;;  %v2982_v49 = vunpack.i.h.bf16 %v2980_v26  ;;  %v2981_v28 = vunpack.i.l.bf16 %v2980_v26  ;;  %v3064_v26 = vld [vmem:[%s4433_s11 + $0x40] ss:$8 sps:$4 sm:$0xff]  }
 0x7b5   : > { %v2987_v48 = vunpack.i.h.bf16 %v2985_v27  ;;  %v2986_v2 = vunpack.i.l.bf16 %v2985_v27  ;;  %v3067_v27 = vld [vmem:[%s4434_s12 + $0x40] ss:$8 sps:$4 sm:$0xff]  }
 0x7b6   : > { %v1757_v59 = vsel %vm1153_vm0, %v2775_v31, %v2982_v49  ;;  %v1756_v61 = vsel %vm1153_vm0, %v2774_v20, %v2981_v28  ;;  %v3042_v31 = vld [vmem:[%s4433_s11 + $0x4] ss:$8 sps:$4 sm:$0xff]   ;;  %v3075_v49 = vld [vmem:[%s4434_s12 + $0x54] ss:$8 sps:$4 sm:$0xff]   ;;  %v3070_v28 = vld [vmem:[%s4433_s11 + $0x50] ss:$8 sps:$4 sm:$0xff]  }
 0x7b7   : > { %v1755_v34 = vsel %vm1153_vm0, %v1394_v50, %v2987_v48  ;;  %v1754_v13 = vsel %vm1153_vm0, %v1391_v36, %v2986_v2  ;;  %v3040_v36 = vld [vmem:[%s4433_s11] ss:$8 sps:$4 sm:$0xff]   ;;  %v3045_v50 = vld [vmem:[%s4434_s12 + $0x4] ss:$8 sps:$4 sm:$0xff]   ;;  %2019 = vmatprep.subr.bf16.mxu1 %v3042_v31 }
 0x7b8   : > { %2168 = vmatprep.subr.bf16.mxu0 %v3045_v50  ;;  %2020 = vmatpush1.bf16.msra.mxu1 %v3040_v36  ;;  %v3078_v48 = vld [vmem:[%s4433_s11 + $0x64] ss:$8 sps:$4 sm:$0xff]  }
 0x7b9   : > { %2021 = vmatprep.subr.bf16.mxu1 %v3048_v53  ;;  %v3081_v2 = vld [vmem:[%s4434_s12 + $0x64] ss:$8 sps:$4 sm:$0xff]  }
 0x7bb   : > { %v2990_v29 = vpop.permute.xlu1 %2989 }
 0x7bc   : > { %v2995_v11 = vpop.permute.xlu0 %2994  ;;  %v2992_v51 = vunpack.i.h.bf16 %v2990_v29  ;;  %v2991_v52 = vunpack.i.l.bf16 %v2990_v29  ;;  %2022 = vmatpush1.bf16.msra.mxu1 %v3046_v55  ;;  %v3072_v29 = vld [vmem:[%s4433_s11 + $0x54] ss:$8 sps:$4 sm:$0xff]  }
 0x7bd   : > { %v2997_v56 = vunpack.i.h.bf16 %v2995_v11  ;;  %v2996_v54 = vunpack.i.l.bf16 %v2995_v11  ;;  %2023 = vmatprep.subr.bf16.mxu1 %v3054_v58  ;;  %v3073_v11 = vld [vmem:[%s4434_s12 + $0x50] ss:$8 sps:$4 sm:$0xff]  }
 0x7be   : > { %v1762_v22 = vsel %vm1758_vm2, %v1757_v59, %v2992_v51  ;;  %v1761_v10 = vsel %vm1758_vm2, %v1756_v61, %v2991_v52  ;;  %v3076_v51 = vld [vmem:[%s4433_s11 + $0x60] ss:$8 sps:$4 sm:$0xff]   ;;  %v3082_v59 = vld [vmem:[%s4433_s11 + $0x70] ss:$8 sps:$4 sm:$0xff]  }
 0x7bf   : > { %v1760_v39 = vsel %vm1758_vm2, %v1755_v34, %v2997_v56  ;;  %v1759_v40 = vsel %vm1758_vm2, %v1754_v13, %v2996_v54  ;;  %v3079_v52 = vld [vmem:[%s4434_s12 + $0x60] ss:$8 sps:$4 sm:$0xff]   ;;  %v3084_v56 = vld [vmem:[%s4433_s11 + $0x74] ss:$8 sps:$4 sm:$0xff]   ;;  %v3085_v61 = vld [vmem:[%s4434_s12 + $0x70] ss:$8 sps:$4 sm:$0xff]  }
 0x7c0   : > { %2024 = vmatpush1.bf16.msra.mxu1 %v3052_v57  ;;  %v3087_v54 = vld [vmem:[%s4434_s12 + $0x74] ss:$8 sps:$4 sm:$0xff]   ;;  %v3088_v57 = vld [vmem:[%s4435_s13 + $0x40] sm:$0xff]  }
 0x7c3   : > { %v3005_v17 = vpop.permute.xlu1 %3004 }
 0x7c4   : > { %v3007_v0 = vunpack.i.h.bf16 %v3005_v17  ;;  %v3006_v18 = vunpack.i.l.bf16 %v3005_v17  ;;  %v3000_v44 = vpop.permute.xlu0 %2999 }
 0x7c5   : > { %v3002_v35 = vunpack.i.h.bf16 %v3000_v44  ;;  %v3001_v38 = vunpack.i.l.bf16 %v3000_v44 }
 0x7c6   : > { %v1767_v42 = vsel %vm1763_vm3, %v1762_v22, %v3007_v0  ;;  %v1766_v46 = vsel %vm1763_vm3, %v1761_v10, %v3006_v18 }
 0x7c7   : > { %v1769_v37 = vpack.c.bf16 %v1767_v42, %v1766_v46  ;;  %v1764_v12 = vsel %vm1763_vm3, %v1759_v40, %v3001_v38  ;;  %v1765_v32 = vsel %vm1763_vm3, %v1760_v39, %v3002_v35  ;;  %v1911_v39 = vld [vmem:[%s4432_s10] sm:$0x1] }
 0x7c8   : > { %v1768_v20 = vpack.c.bf16 %v1765_v32, %v1764_v12  ;;  %v1912_v46 = vunpack.c.l.bf16 %v1911_v39 }
 0x7ca   : > { %2820 = vmatprep.mubr.bf16.mxu0 %v1768_v20  ;;  %v1916_v32 = vrot.slane %v1912_v46, %v3587_v14 }
 0x7cb   : > { %2821 = vmatmul.mubr.bf16.vlgmr.msra.gmra.mrb[24].mxu0 %v1769_v37 }
 0x7cc   : > { %2200 = vmatprep.mubr.bf16.mxu0 %v3240_v23  ;;  %2169 = vmatpush1.bf16.msra.mxu0 %v3043_v33 }
 0x7cd   : > { %2170 = vmatprep.subr.bf16.mxu0 %v3051_v30 }
 0x7d0   : > { %2171 = vmatpush1.bf16.msra.mxu0 %v3049_v24 }
 0x7d1   : > { %2172 = vmatprep.subr.bf16.mxu0 %v3057_v25 }
 0x7d4   : > { %2173 = vmatpush1.bf16.msra.mxu0 %v3055_v43  ;;  %v3089_v43 = vld [vmem:[%s4435_s13] sm:$0xff]  }
 0x7d5   : > { %2174 = vmatprep.subr.bf16.mxu0 %v3063_v19  ;;  %v3100_v19 = vld [vmem:[%s4435_s13 + $0x70] sm:$0xff]  }
 0x7d8   : > { %2175 = vmatpush1.bf16.msra.mxu0 %v3061_v21  ;;  %v3102_v21 = vld [vmem:[%s4435_s13 + $0x78] sm:$0xff]  }
 0x7d9   : > { %2176 = vmatprep.subr.bf16.mxu0 %v3069_v47 }
 0x7dc   : > { %2177 = vmatpush1.bf16.msra.mxu0 %v3067_v27 }
 0x7dd   : > { %2178 = vmatprep.subr.bf16.mxu0 %v3075_v49 }
 0x7e0   : > { %2179 = vmatpush1.bf16.msra.mxu0 %v3073_v11 }
 0x7e1   : > { %2180 = vmatprep.subr.bf16.mxu0 %v3081_v2 }
 0x7e4   : > { %2181 = vmatpush1.bf16.msra.mxu0 %v3079_v52 }
 0x7e5   : > { %2182 = vmatprep.subr.bf16.mxu0 %v3087_v54 }
 0x7e8   : > { %2183 = vmatpush1.bf16.msra.mxu0 %v3085_v61 }
 0x89e   : > { %v2822_v60 = vpop.f32.mrb[24].mxu0 }
 0x89f   : > { %v1868_v45 = vpop.f32.mrb[25].mxu0  ;;  %v4276_v5 = vadd.f32 %v2822_v60, %v3349_v7  ;;  %v3090_v60 = vld [vmem:[%s4435_s13 + $0x48] sm:$0xff]  }
 0x8a0   : > { %v4273_v62 = vadd.f32 %v3347_v6, %v1868_v45  ;;  %v2823_v1 = vpop.f32.mrb[26].mxu0  ;;  %v3092_v45 = vld [vmem:[%s4435_s13 + $0x50] sm:$0xff]  }
 0x8a1   : > { %v1871_v63 = vpop.f32.mrb[27].mxu0  ;;  %v4286_v15 = vadd.f32 %v2823_v1, %v3353_v9  ;;  %v1885_v6 = vmul.f32 %v4276_v5, %v4276_v5  ;;  %v3058_v9 = vld [vmem:[%s4433_s11 + $0x30] ss:$8 sps:$4 sm:$0xff]  }
 0x8a2   : > { %v4279_v41 = vadd.f32 %v3351_v8, %v1871_v63  ;;  %v1883_v16 = vmul.f32 %v4273_v62, %v4273_v62  ;;  %v3060_v8 = vld [vmem:[%s4433_s11 + $0x34] ss:$8 sps:$4 sm:$0xff]  }
 0x8a3   : > { %v1886_v7 = vmul.f32 %v4286_v15, %v4286_v15  ;;  %2025 = vmatprep.subr.bf16.mxu1 %v3060_v8  ;;  %v3093_v1 = vld [vmem:[%s4435_s13 + $0x10] sm:$0xff]   ;;  %v3094_v63 = vld [vmem:[%s4435_s13 + $0x58] sm:$0xff]   ;;  %v3099_v8 = vld [vmem:[%s4435_s13 + $0x28] sm:$0xff]  }
 0x8a4   : > { %1887 = vadd.xlane.f32.xlu0 %v1883_v16  ;;  %v1884_v3 = vmul.f32 %v4279_v41, %v4279_v41  ;;  %2026 = vmatpush1.bf16.msra.mxu1 %v3058_v9  ;;  %v3095_v16 = vld [vmem:[%s4435_s13 + $0x18] sm:$0xff]   ;;  %v3101_v9 = vld [vmem:[%s4435_s13 + $0x30] sm:$0xff]  }
 0x8a5   : > { %2027 = vmatprep.subr.bf16.mxu1 %v3066_v4  ;;  %v3103_v4 = vld [vmem:[%s4435_s13 + $0x38] sm:$0xff]  }
 0x8a6   : > { %1889 = vadd.xlane.f32.xlu1 %v1884_v3  ;;  %v3096_v3 = vld [vmem:[%s4435_s13 + $0x60] sm:$0xff]  }
 0x8a8   : > { %1891 = vadd.xlane.f32.xlu0 %v1885_v6  ;;  %2028 = vmatpush1.bf16.msra.mxu1 %v3064_v26  ;;  %v3097_v6 = vld [vmem:[%s4435_s13 + $0x20] sm:$0xff]  }
 0x8a9   : > { %2029 = vmatprep.subr.bf16.mxu1 %v3072_v29 }
 0x8ac   : > { %1893 = vadd.xlane.f32.xlu0 %v1886_v7  ;;  %2030 = vmatpush1.bf16.msra.mxu1 %v3070_v28  ;;  %v3098_v7 = vld [vmem:[%s4435_s13 + $0x68] sm:$0xff]  }
 0x8ad   : > { %2031 = vmatprep.subr.bf16.mxu1 %v3078_v48 }
 0x8b0   : > { %2032 = vmatpush1.bf16.msra.mxu1 %v3076_v51 }
 0x8b1   : > { %2033 = vmatprep.subr.bf16.mxu1 %v3084_v56 }
 0x8b4   : > { %2034 = vmatpush1.bf16.msra.mxu1 %v3082_v59 }
 0x8b5   : > { %2728 = vmatprep.subr.bf16.mxu1 %v3088_v57 }
 0x931   : > { %v1888_v17 = vpop.xlane.xlu0 %1887 }
 0x932   : > { %v1895_v34 = vmul.f32 0.0078125, %v1888_v17 }
 0x933   : > { %v1890_v13 = vpop.xlane.xlu1 %1889 }
 0x934   : > { %v1899_v0 = vadd.f32 1e-06, %v1895_v34  ;;  %v1896_v18 = vmul.f32 0.0078125, %v1890_v13 }
 0x935   : > { %v1892_v44 = vpop.xlane.xlu0 %1891 }
 0x936   : > { %3192 = vrsqrt.f32 %v1899_v0  ;;  %v1900_v22 = vadd.f32 1e-06, %v1896_v18  ;;  %v1897_v10 = vmul.f32 0.0078125, %v1892_v44 }
 0x938   : > { %3194 = vrsqrt.f32 %v1900_v22  ;;  %v1901_v35 = vadd.f32 1e-06, %v1897_v10 }
 0x939   : > { %v1894_v38 = vpop.xlane.xlu0 %1893 }
 0x93a   : > { %v1898_v40 = vmul.f32 0.0078125, %v1894_v38  ;;  %3196 = vrsqrt.f32 %v1901_v35 }
 0x93c   : > { %v1902_v42 = vadd.f32 1e-06, %v1898_v40 }
 0x93e   : > { %3198 = vrsqrt.f32 %v1902_v42 }
 0x940   : > { %v3193_v37 = vpop.eup %3192 }
 0x941   : > { %v1907_v12 = vmul.f32 %v3193_v37, %v4273_v62 }
 0x942   : > { %v3195_v20 = vpop.eup %3194 }
 0x943   : > { %v1908_v36 = vmul.f32 %v3195_v20, %v4279_v41  ;;  %v1917_v33 = vmul.f32 %v1916_v32, %v1907_v12 }
 0x944   : > { %v3197_v50 = vpop.eup %3196 }
 0x945   : > { %v1918_v31 = vmul.f32 %v1916_v32, %v1908_v36  ;;  %v1909_v55 = vmul.f32 %v3197_v50, %v4276_v5 }
 0x947   : > { %v1921_v53 = vpack.c.bf16 %v1918_v31, %v1917_v33  ;;  %v1919_v14 = vmul.f32 %v1916_v32, %v1909_v55 }
 0x948   : > { %v3199_v30 = vpop.eup %3198 }
 0x949   : > { %2052 = vmatmul.mubr.bf16.vlgmr.msra.gmra.mrb[32].mxu1 %v1921_v53  ;;  %2201 = vmatmul.mubr.bf16.vlgmr.msra.gmra.mrb[28].mxu0 %v1921_v53  ;;  %v1910_v24 = vmul.f32 %v3199_v30, %v4286_v15 }
 0x94a   : > { %2061 = vmatprep.mubr.bf16.mxu1 %v3240_v23  ;;  %2210 = vmatprep.mubr.bf16.mxu0 %v3240_v23  ;;  %v3091_v23 = vld [vmem:[%s4435_s13 + $0x8] sm:$0xff]  }
 0x94b   : > { %v1920_v58 = vmul.f32 %v1916_v32, %v1910_v24  ;;  %2729 = vmatpush3.bf16.msra.mxu1 %v3089_v43 }
 0x94c   : > { %2730 = vmatprep.subr.bf16.mxu1 %v3090_v60 }
 0x94d   : > { %v1922_v25 = vpack.c.bf16 %v1920_v58, %v1919_v14 }
 0x94f   : > { %2731 = vmatpush3.bf16.msra.mxu1 %v3091_v23 }
 0x950   : > { %2732 = vmatprep.subr.bf16.mxu1 %v3092_v45 }
 0x951   : > { %2062 = vmatmul.mubr.bf16.gmra.mrb[36].mxu1 %v1922_v25  ;;  %2211 = vmatmul.mubr.bf16.gmra.mrb[32].mxu0 %v1922_v25 }
 0x953   : > { %2733 = vmatpush3.bf16.msra.mxu1 %v3093_v1 }
 0x954   : > { %2734 = vmatprep.subr.bf16.mxu1 %v3094_v63 }
 0x957   : > { %2735 = vmatpush3.bf16.msra.mxu1 %v3095_v16 }
 0x958   : > { %2736 = vmatprep.subr.bf16.mxu1 %v3096_v3 }
 0x95b   : > { %2737 = vmatpush3.bf16.msra.mxu1 %v3097_v6 }
 0x95c   : > { %2738 = vmatprep.subr.bf16.mxu1 %v3098_v7 }
 0x95f   : > { %2739 = vmatpush3.bf16.msra.mxu1 %v3099_v8 }
 0x960   : > { %2740 = vmatprep.subr.bf16.mxu1 %v3100_v19 }
 0x963   : > { %2741 = vmatpush3.bf16.msra.mxu1 %v3101_v9 }
 0x964   : > { %2742 = vmatprep.subr.bf16.mxu1 %v3102_v21 }
 0x967   : > { %2743 = vmatpush3.bf16.msra.mxu1 %v3103_v4 }
 0xa1c   : > { %v2053_v47 = vpop.f32.mrb[32].mxu1  ;;  %v2202_v26 = vpop.f32.mrb[28].mxu0 }
 0xa1d   : > { %v2638_v27 = vmul.f32 -1.442695, %v2053_v47  ;;  %v2055_v29 = vpop.f32.mrb[33].mxu1  ;;  %v2204_v49 = vpop.f32.mrb[29].mxu0 }
 0xa1e   : > { %v2639_v28 = vmul.f32 -1.442695, %v2055_v29  ;;  %v2057_v11 = vpop.f32.mrb[34].mxu1  ;;  %v2206_v48 = vpop.f32.mrb[30].mxu0 }
 0xa1f   : > { %3200 = vpow2.f32 %v2638_v27  ;;  %v2640_v2 = vmul.f32 -1.442695, %v2057_v11  ;;  %v2059_v51 = vpop.f32.mrb[35].mxu1  ;;  %v2208_v52 = vpop.f32.mrb[31].mxu0 }
 0xa20   : > { %3202 = vpow2.f32 %v2639_v28  ;;  %v2641_v56 = vmul.f32 -1.442695, %v2059_v51 }
 0xa21   : > { %3204 = vpow2.f32 %v2640_v2 }
 0xa22   : > { %3206 = vpow2.f32 %v2641_v56 }
 0xa24   : > { %v2063_v54 = vpop.f32.mrb[36].mxu1  ;;  %v2212_v59 = vpop.f32.mrb[32].mxu0 }
 0xa25   : > { %v2642_v61 = vmul.f32 -1.442695, %v2063_v54  ;;  %v2065_v17 = vpop.f32.mrb[37].mxu1  ;;  %v2214_v34 = vpop.f32.mrb[33].mxu0 }
 0xa26   : > { %v2643_v13 = vmul.f32 -1.442695, %v2065_v17  ;;  %v2067_v0 = vpop.f32.mrb[38].mxu1  ;;  %v2216_v18 = vpop.f32.mrb[34].mxu0 }
 0xa27   : > { %3208 = vpow2.f32 %v2642_v61  ;;  %v2644_v44 = vmul.f32 -1.442695, %v2067_v0  ;;  %v2069_v22 = vpop.f32.mrb[39].mxu1  ;;  %v2218_v10 = vpop.f32.mrb[35].mxu0 }
 0xa28   : > { %3210 = vpow2.f32 %v2643_v13  ;;  %v2645_v35 = vmul.f32 -1.442695, %v2069_v22 }
 0xa29   : > { %v3201_v38 = vpop.eup %3200  ;;  %3212 = vpow2.f32 %v2644_v44 }
 0xa2a   : > { %v3203_v39 = vpop.eup %3202  ;;  %v2245_v40 = vadd.f32 1.0, %v3201_v38  ;;  %3214 = vpow2.f32 %v2645_v35 }
 0xa2b   : > { %v3205_v42 = vpop.eup %3204  ;;  %v2246_v46 = vadd.f32 1.0, %v3203_v39 }
 0xa2c   : > { %v3207_v37 = vpop.eup %3206  ;;  %3216 = vrcp.f32 %v2245_v40  ;;  %v2247_v12 = vadd.f32 1.0, %v3205_v42 }
 0xa2d   : > { %3218 = vrcp.f32 %v2246_v46  ;;  %v2248_v32 = vadd.f32 1.0, %v3207_v37 }
 0xa2e   : > { %3220 = vrcp.f32 %v2247_v12 }
 0xa2f   : > { %3222 = vrcp.f32 %v2248_v32 }
 0xa31   : > { %v3209_v20 = vpop.eup %3208 }
 0xa32   : > { %v3211_v36 = vpop.eup %3210  ;;  %v2249_v31 = vadd.f32 1.0, %v3209_v20 }
 0xa33   : > { %v3213_v33 = vpop.eup %3212  ;;  %v2250_v50 = vadd.f32 1.0, %v3211_v36 }
 0xa34   : > { %v3215_v53 = vpop.eup %3214  ;;  %3224 = vrcp.f32 %v2249_v31  ;;  %v2251_v30 = vadd.f32 1.0, %v3213_v33 }
 0xa35   : > { %3226 = vrcp.f32 %v2250_v50  ;;  %v2252_v55 = vadd.f32 1.0, %v3215_v53 }
 0xa36   : > { %v3217_v24 = vpop.eup %3216  ;;  %3228 = vrcp.f32 %v2251_v30 }
 0xa37   : > { %v3219_v58 = vpop.eup %3218  ;;  %v2269_v14 = vmul.f32 %v3217_v24, %v2053_v47  ;;  %3230 = vrcp.f32 %v2252_v55 }
 0xa38   : > { %v3221_v25 = vpop.eup %3220  ;;  %v2270_v57 = vmul.f32 %v3219_v58, %v2055_v29 }
 0xa39   : > { %v3223_v43 = vpop.eup %3222  ;;  %v2277_v60 = vmul.f32 %v2269_v14, %v2202_v26  ;;  %v2271_v23 = vmul.f32 %v3221_v25, %v2057_v11 }
 0xa3a   : > { %v2278_v45 = vmul.f32 %v2270_v57, %v2204_v49  ;;  %v2272_v1 = vmul.f32 %v3223_v43, %v2059_v51 }
 0xa3b   : > { %v2279_v63 = vmul.f32 %v2271_v23, %v2206_v48 }
 0xa3c   : > { %v2280_v16 = vmul.f32 %v2272_v1, %v2208_v52 }
 0xa3d   : > { %v2285_v3 = vpack.c.bf16 %v2279_v63, %v2277_v60 }
 0xa3e   : > { %v3225_v6 = vpop.eup %3224  ;;  %v2286_v7 = vpack.c.bf16 %v2280_v16, %v2278_v45 }
 0xa3f   : > { %v3227_v8 = vpop.eup %3226  ;;  %v2273_v19 = vmul.f32 %v3225_v6, %v2063_v54 }
 0xa40   : > { %v3229_v9 = vpop.eup %3228  ;;  %v2274_v21 = vmul.f32 %v3227_v8, %v2065_v17  ;;  %2449 = vmatprep.mubr.bf16.mxu1 %v2286_v7 }
 0xa41   : > { %v3231_v4 = vpop.eup %3230  ;;  %v2281_v47 = vmul.f32 %v2273_v19, %v2212_v59  ;;  %v2275_v27 = vmul.f32 %v3229_v9, %v2067_v0  ;;  %2450 = vmatmul.mubr.bf16.vlgmr.msra.gmra.mrb[40].mxu1 %v2285_v3 }
 0xa42   : > { %v2282_v29 = vmul.f32 %v2274_v21, %v2214_v34  ;;  %v2276_v26 = vmul.f32 %v3231_v4, %v2069_v22 }
 0xa43   : > { %v2283_v28 = vmul.f32 %v2275_v27, %v2216_v18 }
 0xa44   : > { %v2284_v49 = vmul.f32 %v2276_v26, %v2218_v10 }
 0xa45   : > { %v2287_v11 = vpack.c.bf16 %v2283_v28, %v2281_v47 }
 0xa46   : > { %v2288_v48 = vpack.c.bf16 %v2284_v49, %v2282_v29 }
 0xa48   : > { %2457 = vmatprep.mubr.bf16.mxu1 %v2288_v48 }
 0xa49   : > { %2458 = vmatmul.mubr.bf16.gmra.mrb[44].mxu1 %v2287_v11 }
 0xb14   : > { %v2744_v2 = vpop.f32.mrb[40].mxu1 }
 0xb15   : > { %v2745_v51 = vpop.f32.mrb[41].mxu1 }
 0xb16   : > { %v2746_v52 = vadd.f32 %v2745_v51, %v2744_v2  ;;  %v2747_v56 = vpop.f32.mrb[42].mxu1 }
 0xb17   : > { %v2748_v54 = vpop.f32.mrb[43].mxu1 }
 0xb18   : > { %v2749_v61 = vadd.f32 %v2748_v54, %v2747_v56  ;;  %v2452_v17 = vadd.f32 %v2746_v52, %v4273_v62 }
 0xb1a   : > { %v2455_v59 = vadd.f32 %v2749_v61, %v4279_v41 }
 0xb1c   : > { %v2685_v34 = vpack.c.bf16 %v2455_v59, %v2452_v17  ;;  %v2750_v13 = vpop.f32.mrb[44].mxu1 }
 0xb1d   : > { %v2751_v0 = vpop.f32.mrb[45].mxu1 }
 0xb1e   : > { %2686 = vst [vmem:[%s481_s26] sm:$0xff] %v2685_v34   ;;  %v2752_v18 = vadd.f32 %v2751_v0, %v2750_v13  ;;  %v2753_v44 = vpop.f32.mrb[46].mxu1 }
 0xb1f   : > { %v2754_v22 = vpop.f32.mrb[47].mxu1 }
 0xb20   : > { %v2755_v10 = vadd.f32 %v2754_v22, %v2753_v44  ;;  %v2460_v35 = vadd.f32 %v2752_v18, %v4276_v5 }
 0xb22   : > { %v2463_v38 = vadd.f32 %v2755_v10, %v4286_v15 }
 0xb24   : > { %v2690_v62 = vpack.c.bf16 %v2463_v38, %v2460_v35 }
 0xb26   : > { %2693 = vst [vmem:[%s481_s26 + $0x8] sm:$0xff] %v2690_v62  }
 0xb27 PF: > { %s24_s29 = sadd.s32 1, %s3238_s29  }
 0xb28   : > { %p21_p4 = scmp.ge.s32.totalorder %s24_s29, 4  }
 0xb2a   :  { %23 = sbr.rel (!%p21_p4) target bundleno = 1 (0x1), region = 109 }

</bundles_post_ra>
